<compile_context>
chip_gen: v7x
topology: tpu7x:2x2x1
jax: 0.10.0
libtpu: 0.0.40
codegen_flags: <defaults>
</compile_context>

<pallas_src>
from functools import partial

import numpy as np
import jax
import jax.numpy as jnp
from jax.experimental import pallas as pl
from jax.experimental.pallas import tpu as pltpu

INPUT_SIZE = 3      # DrBC defaults
EMBED = 128
BLOCKS = 5
FEATURE = 128
HIDDEN = 64
LANE = 128


def _l2norm(v):
    # F.normalize(v, p=2, dim=1)  (rsqrt -> EUP slot; eps keeps zero rows finite)
    return v * jax.lax.rsqrt(jnp.sum(v * v, axis=1, keepdims=True) + 1e-24)


# --------------------------------------------------------------------------
# Kernel
# --------------------------------------------------------------------------
def drbc_kernel(resident_a,                       # static (bound via partial)
                h0_ref, a_ref,
                wrz_ref, brz_ref, win_ref, bin_ref, whn_ref, bhn_ref,
                wh_ref, bh_ref, wo_ref, bo_ref,
                out_ref,
                cur_f32, cur_bf16, zmax_ref):
    b = pl.program_id(0)            # GRU block index (outer, sequential)
    i = pl.program_id(1)            # node row-tile index (inner)
    nblocks = pl.num_programs(0)
    tm = out_ref.shape[0]           # row tile size
    d = h0_ref.shape[1]             # embed size
    n_tot = h0_ref.shape[0]         # padded node count

    # ---- one-time prologue at (0, 0): seed state buffers from h0 (XLA embed)
    @pl.when(jnp.logical_and(b == 0, i == 0))
    def _init():
        h0 = h0_ref[...]                             # [N, D] bf16
        cur_bf16[pl.ds(0, n_tot), :] = h0            # slot 0 = state read by b=0
        cur_f32[...] = h0.astype(jnp.float32)
        zmax_ref[...] = h0

    # cur_bf16 is [2*N, D]; block parity selects which half is read/written.
    off_rd = pl.multiple_of((b % 2) * n_tot, tm)
    off_wr = pl.multiple_of(((b + 1) % 2) * n_tot, tm)
    row0 = pl.multiple_of(i * tm, tm)

    # ---- message passing: agg = A[row tile, :] @ cur_prev (bf16 MXU, f32 acc)
    if resident_a:                                   # whole A lives in VMEM
        a_tile = a_ref[pl.ds(row0, tm), :]           # [tm, N]
    else:                                            # streamed row tile
        a_tile = a_ref[...]                          # [tm, N]
    state_prev = cur_bf16[pl.ds(off_rd, n_tot), :]   # [N, D] bf16
    agg = jnp.dot(a_tile, state_prev, preferred_element_type=jnp.float32)
    cur_prev = cur_f32[pl.ds(row0, tm), :]           # [tm, D] f32

    # ---- GRU cell (gate order r | z | n); r/z fused into one K=2D bf16 matmul
    agg_bf = agg.astype(jnp.bfloat16)
    cur_bf = cur_prev.astype(jnp.bfloat16)
    ac = jnp.concatenate([agg_bf, cur_bf], axis=1)   # [tm, 2D] bf16
    rz = jax.nn.sigmoid(
        jnp.dot(ac, wrz_ref[0], preferred_element_type=jnp.float32) + brz_ref[0])
    r = rz[:, :d]
    z = rz[:, d:]
    gin = jnp.dot(agg_bf, win_ref[0], preferred_element_type=jnp.float32) + bin_ref[0]
    ghn = jnp.dot(cur_bf, whn_ref[0], preferred_element_type=jnp.float32) + bhn_ref[0]
    n_gate = jnp.tanh(gin + r * ghn)
    newh = _l2norm((1.0 - z) * n_gate + z * cur_prev)

    cur_f32[pl.ds(row0, tm), :] = newh
    cur_bf16[pl.ds(off_wr + row0, tm), :] = newh.astype(jnp.bfloat16)

    zt = jnp.maximum(zmax_ref[pl.ds(row0, tm), :].astype(jnp.float32), newh)
    zmax_ref[pl.ds(row0, tm), :] = zt.astype(jnp.bfloat16)

    # ---- decoder fused into the last block (hidden/output lane-padded to 128)
    @pl.when(b == nblocks - 1)
    def _decode():
        dec = jnp.maximum(
            jnp.dot(zt, wh_ref[...], preferred_element_type=jnp.float32)
            + bh_ref[...], 0.0)
        out_ref[...] = (jnp.dot(dec, wo_ref[...], preferred_element_type=jnp.float32)
                        + bo_ref[...])


# --------------------------------------------------------------------------
# Host-side glue
# --------------------------------------------------------------------------
def build_norm_adjacency(edge_idx, n, n_pad, dtype=jnp.bfloat16):
    # TODO(synk): build directly in bf16 chunk-wise (or CSR) to avoid the
    # N^2 f32 intermediate for large graphs.
    row, col = edge_idx[0], edge_idx[1]
    deg = jnp.zeros((n,), jnp.float32).at[col].add(1.0) + 1.0      # degree(col)+1
    dinv = deg ** -0.5
    norm = dinv[row] * dinv[col]
    a = jnp.zeros((n_pad, n_pad), jnp.float32).at[col, row].add(norm)  # [tgt, src]
    return a.astype(dtype)


def prepare_kernel_params(params):
    d = EMBED
    wih, whh = params["wih"], params["whh"]            # [B, D, 3D]
    bih, bhh = params["bih"], params["bhh"]            # [B, 1, 3D]
    # fused r|z weights: [agg | cur] @ wrz == agg@wih_rz + cur@whh_rz   (bf16 MXU)
    wrz = jnp.concatenate([wih[:, :, :2 * d], whh[:, :, :2 * d]],
                          axis=1).astype(jnp.bfloat16)             # [B,2D,2D]
    brz = bih[:, :, :2 * d] + bhh[:, :, :2 * d]                    # [B,1,2D] f32
    win = wih[:, :, 2 * d:].astype(jnp.bfloat16)                   # [B, D, D]
    b_in = bih[:, :, 2 * d:]                                       # [B, 1, D]
    whn = whh[:, :, 2 * d:].astype(jnp.bfloat16)
    bhn = bhh[:, :, 2 * d:]
    # decoder padded to lane width 128 (zeros are inert through relu/matmul)
    wh_p = jnp.zeros((FEATURE, LANE), jnp.float32).at[:, :HIDDEN].set(params["wh"])
    bh_p = jnp.zeros((1, LANE), jnp.float32).at[:, :HIDDEN].set(params["bh"])
    wo_p = jnp.zeros((LANE, LANE), jnp.float32).at[:HIDDEN, :1].set(params["wo"])
    bo_p = jnp.zeros((1, LANE), jnp.float32).at[:, :1].set(params["bo"])
    return (wrz, brz, win, b_in, whn, bhn, wh_p, bh_p, wo_p, bo_p)


def drbc_forward(x, edge_idx, params, *, tm=128):
    n = x.shape[0]
    n_pad = ((n + tm - 1) // tm) * tm
    t = n_pad // tm
    d = EMBED

    # ---- embedding hoisted to XLA (trivial K=3 matmul), state seed in bf16 ----
    h0 = _l2norm(jnp.maximum(x @ params["we"] + params["be"], 0.0))
    h0 = jnp.zeros((n_pad, d), jnp.float32).at[:n].set(h0).astype(jnp.bfloat16)

    a = build_norm_adjacency(edge_idx, n, n_pad, dtype=jnp.bfloat16)
    wts = prepare_kernel_params(params)

    # ---- generation-aware VMEM budget & adjacency-residency decision ----
    try:
        vmem_cap = int(pltpu.get_tpu_info().vmem_capacity_bytes)
    except Exception:                                   # pragma: no cover
        vmem_cap = 64 << 20
    vmem_budget = int(vmem_cap * 85 // 100)             # headroom for compiler

    wt_bytes = int(sum(int(np.prod(w.shape)) * w.dtype.itemsize for w in wts))
    scratch_bytes = n_pad * d * (4 + 2 * 2 + 2)          # cur_f32 + cur_bf16 + zmax
    base = (2 * wt_bytes                                 # weights (dbl-buf upper bound)
            + n_pad * d * 2                              # resident h0 (bf16)
            + 2 * tm * LANE * 4                          # out tile, dbl-buffered
            + scratch_bytes + (2 << 20))                 # compiler scratch slack
    a_bytes = n_pad * n_pad * 2
    resident_a = (base + a_bytes) <= vmem_budget         # keep A in VMEM for all blocks
    a_stream_bytes = 2 * tm * n_pad * 2
    vmem_need = base + (a_bytes if resident_a else a_stream_bytes)
    vmem_limit = int(max(min(vmem_need + (8 << 20), vmem_budget), 16 << 20))

    whole = pl.BlockSpec(memory_space=pltpu.MemorySpace.VMEM)

    def blk(shape):
        return pl.BlockSpec(shape, lambda bb, ii: (bb, 0, 0))

    a_spec = whole if resident_a else pl.BlockSpec((tm, n_pad), lambda bb, ii: (ii, 0))

    in_specs = [
        whole,                                               # h0 (resident bf16 seed)
        a_spec,                                              # A (resident or streamed)
        blk((1, 2 * d, 2 * d)),                              # wrz  (per-block, bf16)
        blk((1, 1, 2 * d)),                                  # brz
        blk((1, d, d)),                                      # win
        blk((1, 1, d)),                                      # b_in
        blk((1, d, d)),                                      # whn
        blk((1, 1, d)),                                      # bhn
        whole, whole, whole, whole,                          # decoder weights
    ]
    # Output block index only advances on the final GRU block -> each row tile
    # is flushed to HBM exactly once (no garbage writes for b < BLOCKS-1).
    out_spec = pl.BlockSpec(
        (tm, LANE), lambda bb, ii: (jnp.where(bb == BLOCKS - 1, ii, 0), 0))

    flops = int(BLOCKS * (2 * n_pad * n_pad * d
                          + 2 * n_pad * (2 * d * 2 * d + 2 * d * d))
                + 2 * n_pad * (d * LANE + LANE * LANE))
    transcendentals = int(BLOCKS * n_pad * 3 * d)
    bytes_accessed = int((1 if resident_a else BLOCKS) * a_bytes + wt_bytes
                         + n_pad * d * 2 + n_pad * LANE * 4)

    out = pl.pallas_call(
        partial(drbc_kernel, resident_a),
        out_shape=jax.ShapeDtypeStruct((n_pad, LANE), jnp.float32),
        grid=(BLOCKS, t),
        in_specs=in_specs,
        out_specs=out_spec,
        scratch_shapes=[
            pltpu.VMEM((n_pad, d), jnp.float32),         # cur f32 (GRU recurrence)
            pltpu.VMEM((2 * n_pad, d), jnp.bfloat16),    # cur bf16 ping-pong (A@cur)
            pltpu.VMEM((n_pad, d), jnp.bfloat16),        # running max over layers
        ],
        compiler_params=pltpu.CompilerParams(
            dimension_semantics=("arbitrary", "arbitrary"),
            vmem_limit_bytes=vmem_limit),
        cost_estimate=pl.CostEstimate(
            flops=flops, transcendentals=transcendentals,
            bytes_accessed=bytes_accessed),
    )(h0, a, *wts)
    return out[:n, :1]


# --------------------------------------------------------------------------
# Params + pure-JAX reference (mirrors the PyTorch forward, f32)
# --------------------------------------------------------------------------
def init_params(key):
    ks = jax.random.split(key, 12)

    def u(k, shape, fan_in):
        s = 1.0 / np.sqrt(fan_in)
        return jax.random.uniform(k, shape, jnp.float32, -s, s)

    return {
        "we": u(ks[0], (INPUT_SIZE, EMBED), INPUT_SIZE),
        "be": u(ks[1], (1, EMBED), INPUT_SIZE),
        # stacked GRU weights (gate order r|z|n), stored as [B, in, 3*hidden]
        "wih": u(ks[2], (BLOCKS, EMBED, 3 * EMBED), EMBED),
        "whh": u(ks[3], (BLOCKS, EMBED, 3 * EMBED), EMBED),
        "bih": u(ks[4], (BLOCKS, 1, 3 * EMBED), EMBED),
        "bhh": u(ks[5], (BLOCKS, 1, 3 * EMBED), EMBED),
        "wh": u(ks[6], (FEATURE, HIDDEN), FEATURE),
        "bh": u(ks[7], (1, HIDDEN), FEATURE),
        "wo": u(ks[8], (HIDDEN, 1), HIDDEN),
        "bo": u(ks[9], (1, 1), HIDDEN),
    }


def drbc_reference(x, edge_idx, params):
    n = x.shape[0]
    row, col = edge_idx[0], edge_idx[1]
    deg = jnp.zeros((n,), jnp.float32).at[col].add(1.0) + 1.0
    dinv = deg ** -0.5
    norm = dinv[row] * dinv[col]

    h = jnp.maximum(x @ params["we"] + params["be"], 0.0)
    h = _l2norm(h)
    cur = h
    layers = [h]
    D = EMBED
    for b in range(BLOCKS):
        msg = norm[:, None] * cur[row]
        agg = jnp.zeros((n, D), jnp.float32).at[col].add(msg)
        gi = agg @ params["wih"][b] + params["bih"][b]
        gh = cur @ params["whh"][b] + params["bhh"][b]
        r = jax.nn.sigmoid(gi[:, :D] + gh[:, :D])
        zg = jax.nn.sigmoid(gi[:, D:2 * D] + gh[:, D:2 * D])
        nn_ = jnp.tanh(gi[:, 2 * D:] + r * gh[:, 2 * D:])
        newh = (1.0 - zg) * nn_ + zg * cur
        newh = _l2norm(newh)
        layers.append(newh)
        cur = newh
    z = jnp.max(jnp.stack(layers), axis=0)
    dec = jnp.maximum(z @ params["wh"] + params["bh"], 0.0)
    return dec @ params["wo"] + params["bo"]


if __name__ == "__main__":
    key = jax.random.PRNGKey(0)
    kx, ke, kp = jax.random.split(key, 3)

    N, E = 300, 1200                      # small graph; grid = (5, 3) with tm=128
    x = jax.random.normal(kx, (N, INPUT_SIZE), jnp.float32)
    edge_idx = jax.random.randint(ke, (2, E), 0, N, dtype=jnp.int32)
    params = init_params(kp)

    out = jax.block_until_ready(drbc_forward(x, edge_idx, params))
    ref = drbc_reference(x, edge_idx, params)

    assert out.shape == (N, 1)
    max_err = float(jnp.max(jnp.abs(out - ref)))
    assert max_err < 2e-2, f"max abs err {max_err}"   # bf16 adjacency/gate tolerance
    print("KERNEL_OK")
</pallas_src>

<mosaic_0001>
module attributes {stable_mosaic.version = 11 : i64} {
  func.func @drbc_kernel(%arg0: i32, %arg1: i32, %arg2: memref<384x128xbf16, #tpu.memory_space<vmem>>, %arg3: memref<384x384xbf16, #tpu.memory_space<vmem>>, %arg4: memref<1x256x256xbf16, #tpu.memory_space<vmem>>, %arg5: memref<1x1x256xf32, #tpu.memory_space<vmem>>, %arg6: memref<1x128x128xbf16, #tpu.memory_space<vmem>>, %arg7: memref<1x1x128xf32, #tpu.memory_space<vmem>>, %arg8: memref<1x128x128xbf16, #tpu.memory_space<vmem>>, %arg9: memref<1x1x128xf32, #tpu.memory_space<vmem>>, %arg10: memref<128x128xf32, #tpu.memory_space<vmem>>, %arg11: memref<1x128xf32, #tpu.memory_space<vmem>>, %arg12: memref<128x128xf32, #tpu.memory_space<vmem>>, %arg13: memref<1x128xf32, #tpu.memory_space<vmem>>, %arg14: memref<128x128xf32, #tpu.memory_space<vmem>>, %arg15: memref<384x128xf32, #tpu.memory_space<vmem>>, %arg16: memref<768x128xbf16, #tpu.memory_space<vmem>>, %arg17: memref<384x128xbf16, #tpu.memory_space<vmem>>) attributes {dimension_semantics = [#tpu.dimension_semantics<arbitrary>, #tpu.dimension_semantics<arbitrary>], iteration_bounds = array<i64: 5, 3>, scalar_prefetch = 0 : i64, scratch_operands = 3 : i64, tpu.core_type = #tpu.core_type<tc>, window_params = [{pipeline_mode = #tpu.pipeline_mode<synchronous>, transform_indices = @transform_0, window_bounds = array<i64: 384, 128>}, {pipeline_mode = #tpu.pipeline_mode<synchronous>, transform_indices = @transform_1, window_bounds = array<i64: 384, 384>}, {transform_indices = @transform_2, window_bounds = array<i64: 1, 256, 256>}, {transform_indices = @transform_3, window_bounds = array<i64: 1, 1, 256>}, {transform_indices = @transform_4, window_bounds = array<i64: 1, 128, 128>}, {transform_indices = @transform_5, window_bounds = array<i64: 1, 1, 128>}, {transform_indices = @transform_6, window_bounds = array<i64: 1, 128, 128>}, {transform_indices = @transform_7, window_bounds = array<i64: 1, 1, 128>}, {pipeline_mode = #tpu.pipeline_mode<synchronous>, transform_indices = @transform_8, window_bounds = array<i64: 128, 128>}, {pipeline_mode = #tpu.pipeline_mode<synchronous>, transform_indices = @transform_9, window_bounds = array<i64: 1, 128>}, {pipeline_mode = #tpu.pipeline_mode<synchronous>, transform_indices = @transform_10, window_bounds = array<i64: 128, 128>}, {pipeline_mode = #tpu.pipeline_mode<synchronous>, transform_indices = @transform_11, window_bounds = array<i64: 1, 128>}, {transform_indices = @transform_12, window_bounds = array<i64: 128, 128>}]} {
    %c0_i32 = arith.constant 0 : i32
    %0 = arith.cmpi eq, %arg0, %c0_i32 : i32
    %c0_i32_0 = arith.constant 0 : i32
    %1 = arith.cmpi eq, %arg1, %c0_i32_0 : i32
    %2 = arith.andi %0, %1 : i1
    %3 = arith.extui %2 : i1 to i32
    %c0_i32_1 = arith.constant 0 : i32
    %4 = arith.cmpi ne, %3, %c0_i32_1 : i32
    scf.if %4 {
      %c0_46 = arith.constant 0 : index
      %c0_47 = arith.constant 0 : index
      %102 = vector.load %arg2[%c0_46, %c0_47] : memref<384x128xbf16, #tpu.memory_space<vmem>>, vector<384x128xbf16>
      %c0_48 = arith.constant 0 : index
      %c0_49 = arith.constant 0 : index
      %103 = vector.load %arg16[%c0_48, %c0_49] : memref<768x128xbf16, #tpu.memory_space<vmem>>, vector<384x128xbf16>
      tpu.vector_store %arg16[%c0_48, %c0_49], %102 {strides = array<i32>} : memref<768x128xbf16, #tpu.memory_space<vmem>>, vector<384x128xbf16>,
      %104 = arith.extf %102 : vector<384x128xbf16> to vector<384x128xf32>
      %c0_50 = arith.constant 0 : index
      %c0_51 = arith.constant 0 : index
      %105 = vector.load %arg15[%c0_50, %c0_51] : memref<384x128xf32, #tpu.memory_space<vmem>>, vector<384x128xf32>
      tpu.vector_store %arg15[%c0_50, %c0_51], %104 {strides = array<i32>} : memref<384x128xf32, #tpu.memory_space<vmem>>, vector<384x128xf32>,
      %c0_52 = arith.constant 0 : index
      %c0_53 = arith.constant 0 : index
      %106 = vector.load %arg17[%c0_52, %c0_53] : memref<384x128xbf16, #tpu.memory_space<vmem>>, vector<384x128xbf16>
      tpu.vector_store %arg17[%c0_52, %c0_53], %102 {strides = array<i32>} : memref<384x128xbf16, #tpu.memory_space<vmem>>, vector<384x128xbf16>,
    } else {
    }
    %c2_i32 = arith.constant 2 : i32
    %c0_i32_2 = arith.constant 0 : i32
    %5 = arith.cmpi eq, %c2_i32, %c0_i32_2 : i32
    %c1_i32 = arith.constant 1 : i32
    %6 = arith.select %5, %c1_i32, %c2_i32 : i32
    %7 = arith.remsi %arg0, %6 : i32
    %c0_i32_3 = arith.constant 0 : i32
    %8 = arith.cmpi ne, %7, %c0_i32_3 : i32
    %c0_i32_4 = arith.constant 0 : i32
    %9 = arith.cmpi slt, %7, %c0_i32_4 : i32
    %c0_i32_5 = arith.constant 0 : i32
    %10 = arith.cmpi slt, %6, %c0_i32_5 : i32
    %11 = arith.xori %9, %10 : i1
    %12 = arith.andi %11, %8 : i1
    %13 = arith.addi %7, %6 : i32
    %14 = arith.select %12, %13, %7 : i32
    %c384_i32 = arith.constant 384 : i32
    %15 = arith.muli %14, %c384_i32 : i32
    %16 = tpu.assume_multiple %15, 128 : i32
    %c1_i32_6 = arith.constant 1 : i32
    %17 = arith.addi %arg0, %c1_i32_6 : i32
    %c2_i32_7 = arith.constant 2 : i32
    %c0_i32_8 = arith.constant 0 : i32
    %18 = arith.cmpi eq, %c2_i32_7, %c0_i32_8 : i32
    %c1_i32_9 = arith.constant 1 : i32
    %19 = arith.select %18, %c1_i32_9, %c2_i32_7 : i32
    %20 = arith.remsi %17, %19 : i32
    %c0_i32_10 = arith.constant 0 : i32
    %21 = arith.cmpi ne, %20, %c0_i32_10 : i32
    %c0_i32_11 = arith.constant 0 : i32
    %22 = arith.cmpi slt, %20, %c0_i32_11 : i32
    %c0_i32_12 = arith.constant 0 : i32
    %23 = arith.cmpi slt, %19, %c0_i32_12 : i32
    %24 = arith.xori %22, %23 : i1
    %25 = arith.andi %24, %21 : i1
    %26 = arith.addi %20, %19 : i32
    %27 = arith.select %25, %26, %20 : i32
    %c384_i32_13 = arith.constant 384 : i32
    %28 = arith.muli %27, %c384_i32_13 : i32
    %29 = tpu.assume_multiple %28, 128 : i32
    %c128_i32 = arith.constant 128 : i32
    %30 = arith.muli %arg1, %c128_i32 : i32
    %31 = tpu.assume_multiple %30, 128 : i32
    %32 = arith.index_cast %31 : i32 to index
    %c0 = arith.constant 0 : index
    %33 = vector.load %arg3[%32, %c0] : memref<384x384xbf16, #tpu.memory_space<vmem>>, vector<128x384xbf16>
    %34 = arith.index_cast %16 : i32 to index
    %c0_14 = arith.constant 0 : index
    %35 = vector.load %arg16[%34, %c0_14] : memref<768x128xbf16, #tpu.memory_space<vmem>>, vector<384x128xbf16>
    %cst = arith.constant dense<0.000000e+00> : vector<128x128xf32>
    %36 = tpu.matmul %33, %35, %cst {dimension_numbers = #tpu.dot_dimension_numbers<[1], [0], [0], [1], [0, 0, 1, 1], [], []>} : vector<128x384xbf16>, vector<384x128xbf16>, vector<128x128xf32> -> vector<128x128xf32>
    %37 = arith.index_cast %31 : i32 to index
    %c0_15 = arith.constant 0 : index
    %38 = vector.load %arg15[%37, %c0_15] : memref<384x128xf32, #tpu.memory_space<vmem>>, vector<128x128xf32>
    %39 = arith.truncf %36 : vector<128x128xf32> to vector<128x128xbf16>
    %40 = arith.truncf %38 : vector<128x128xf32> to vector<128x128xbf16>
    %41 = tpu.concatenate %39, %40 in 1 : vector<128x128xbf16>, vector<128x128xbf16> -> vector<128x256xbf16>
    %c0_16 = arith.constant 0 : index
    %c0_17 = arith.constant 0 : index
    %c0_18 = arith.constant 0 : index
    %42 = vector.load %arg4[%c0_16, %c0_17, %c0_18] : memref<1x256x256xbf16, #tpu.memory_space<vmem>>, vector<1x256x256xbf16>
    %43 = vector.shape_cast %42 : vector<1x256x256xbf16> to vector<256x256xbf16>
    %cst_19 = arith.constant dense<0.000000e+00> : vector<128x256xf32>
    %44 = tpu.matmul %41, %43, %cst_19 {dimension_numbers = #tpu.dot_dimension_numbers<[1], [0], [0], [1], [0, 0, 1, 1], [], []>} : vector<128x256xbf16>, vector<256x256xbf16>, vector<128x256xf32> -> vector<128x256xf32>
    %c0_20 = arith.constant 0 : index
    %c0_21 = arith.constant 0 : index
    %c0_22 = arith.constant 0 : index
    %45 = vector.load %arg5[%c0_20, %c0_21, %c0_22] : memref<1x1x256xf32, #tpu.memory_space<vmem>>, vector<1x1x256xf32>
    %46 = vector.shape_cast %45 : vector<1x1x256xf32> to vector<1x256xf32>
    %47 = vector.broadcast %46 : vector<1x256xf32> to vector<128x256xf32>
    %48 = arith.addf %44, %47 : vector<128x256xf32>
    %49 = arith.negf %48 : vector<128x256xf32>
    %50 = math.exp %49 : vector<128x256xf32>
    %cst_23 = arith.constant 1.000000e+00 : f32
    %51 = vector.broadcast %cst_23 : f32 to vector<128x256xf32>
    %52 = arith.addf %51, %50 : vector<128x256xf32>
    %53 = arith.divf %51, %52 : vector<128x256xf32>
    %54 = vector.extract_strided_slice %53 {offsets = [0, 0], sizes = [128, 128], strides = [1, 1]} : vector<128x256xf32> to vector<128x128xf32>
    %55 = vector.extract_strided_slice %53 {offsets = [0, 128], sizes = [128, 128], strides = [1, 1]} : vector<128x256xf32> to vector<128x128xf32>
    %c0_24 = arith.constant 0 : index
    %c0_25 = arith.constant 0 : index
    %c0_26 = arith.constant 0 : index
    %56 = vector.load %arg6[%c0_24, %c0_25, %c0_26] : memref<1x128x128xbf16, #tpu.memory_space<vmem>>, vector<1x128x128xbf16>
    %57 = vector.shape_cast %56 : vector<1x128x128xbf16> to vector<128x128xbf16>
    %cst_27 = arith.constant dense<0.000000e+00> : vector<128x128xf32>
    %58 = tpu.matmul %39, %57, %cst_27 {dimension_numbers = #tpu.dot_dimension_numbers<[1], [0], [0], [1], [0, 0, 1, 1], [], []>} : vector<128x128xbf16>, vector<128x128xbf16>, vector<128x128xf32> -> vector<128x128xf32>
    %c0_28 = arith.constant 0 : index
    %c0_29 = arith.constant 0 : index
    %c0_30 = arith.constant 0 : index
    %59 = vector.load %arg7[%c0_28, %c0_29, %c0_30] : memref<1x1x128xf32, #tpu.memory_space<vmem>>, vector<1x1x128xf32>
    %60 = vector.shape_cast %59 : vector<1x1x128xf32> to vector<1x128xf32>
    %61 = vector.broadcast %60 : vector<1x128xf32> to vector<128x128xf32>
    %62 = arith.addf %58, %61 : vector<128x128xf32>
    %c0_31 = arith.constant 0 : index
    %c0_32 = arith.constant 0 : index
    %c0_33 = arith.constant 0 : index
    %63 = vector.load %arg8[%c0_31, %c0_32, %c0_33] : memref<1x128x128xbf16, #tpu.memory_space<vmem>>, vector<1x128x128xbf16>
    %64 = vector.shape_cast %63 : vector<1x128x128xbf16> to vector<128x128xbf16>
    %cst_34 = arith.constant dense<0.000000e+00> : vector<128x128xf32>
    %65 = tpu.matmul %40, %64, %cst_34 {dimension_numbers = #tpu.dot_dimension_numbers<[1], [0], [0], [1], [0, 0, 1, 1], [], []>} : vector<128x128xbf16>, vector<128x128xbf16>, vector<128x128xf32> -> vector<128x128xf32>
    %c0_35 = arith.constant 0 : index
    %c0_36 = arith.constant 0 : index
    %c0_37 = arith.constant 0 : index
    %66 = vector.load %arg9[%c0_35, %c0_36, %c0_37] : memref<1x1x128xf32, #tpu.memory_space<vmem>>, vector<1x1x128xf32>
    %67 = vector.shape_cast %66 : vector<1x1x128xf32> to vector<1x128xf32>
    %68 = vector.broadcast %67 : vector<1x128xf32> to vector<128x128xf32>
    %69 = arith.addf %65, %68 : vector<128x128xf32>
    %70 = arith.mulf %54, %69 : vector<128x128xf32>
    %71 = arith.addf %62, %70 : vector<128x128xf32>
    %72 = math.tanh %71 : vector<128x128xf32>
    %cst_38 = arith.constant 1.000000e+00 : f32
    %73 = vector.broadcast %cst_38 : f32 to vector<128x128xf32>
    %74 = arith.subf %73, %55 : vector<128x128xf32>
    %75 = arith.mulf %74, %72 : vector<128x128xf32>
    %76 = arith.mulf %55, %38 : vector<128x128xf32>
    %77 = arith.addf %75, %76 : vector<128x128xf32>
    %78 = arith.mulf %77, %77 : vector<128x128xf32>
    %cst_39 = arith.constant dense<0.000000e+00> : vector<128xf32>
    %79 = vector.multi_reduction <add>, %78, %cst_39 [1] : vector<128x128xf32> to vector<128xf32>
    %80 = vector.shape_cast %79 : vector<128xf32> to vector<128x1xf32>
    %cst_40 = arith.constant 1.000000e-24 : f32
    %81 = vector.broadcast %cst_40 : f32 to vector<128x1xf32>
    %82 = arith.addf %80, %81 : vector<128x1xf32>
    %83 = math.rsqrt %82 : vector<128x1xf32>
    %84 = vector.broadcast %83 : vector<128x1xf32> to vector<128x128xf32>
    %85 = arith.mulf %77, %84 : vector<128x128xf32>
    %86 = arith.index_cast %31 : i32 to index
    %c0_41 = arith.constant 0 : index
    %87 = vector.load %arg15[%86, %c0_41] : memref<384x128xf32, #tpu.memory_space<vmem>>, vector<128x128xf32>
    tpu.vector_store %arg15[%86, %c0_41], %85 {strides = array<i32>} : memref<384x128xf32, #tpu.memory_space<vmem>>, vector<128x128xf32>,
    %88 = arith.truncf %85 : vector<128x128xf32> to vector<128x128xbf16>
    %89 = arith.addi %29, %31 : i32
    %90 = arith.index_cast %89 : i32 to index
    %c0_42 = arith.constant 0 : index
    %91 = vector.load %arg16[%90, %c0_42] : memref<768x128xbf16, #tpu.memory_space<vmem>>, vector<128x128xbf16>
    tpu.vector_store %arg16[%90, %c0_42], %88 {strides = array<i32>} : memref<768x128xbf16, #tpu.memory_space<vmem>>, vector<128x128xbf16>,
    %92 = arith.index_cast %31 : i32 to index
    %c0_43 = arith.constant 0 : index
    %93 = vector.load %arg17[%92, %c0_43] : memref<384x128xbf16, #tpu.memory_space<vmem>>, vector<128x128xbf16>
    %94 = arith.extf %93 : vector<128x128xbf16> to vector<128x128xf32>
    %95 = arith.maximumf %94, %85 : vector<128x128xf32>
    %96 = arith.truncf %95 : vector<128x128xf32> to vector<128x128xbf16>
    %97 = arith.index_cast %31 : i32 to index
    %c0_44 = arith.constant 0 : index
    %98 = vector.load %arg17[%97, %c0_44] : memref<384x128xbf16, #tpu.memory_space<vmem>>, vector<128x128xbf16>
    tpu.vector_store %arg17[%97, %c0_44], %96 {strides = array<i32>} : memref<384x128xbf16, #tpu.memory_space<vmem>>, vector<128x128xbf16>,
    %c4_i32 = arith.constant 4 : i32
    %99 = arith.cmpi eq, %arg0, %c4_i32 : i32
    %100 = arith.extui %99 : i1 to i32
    %c0_i32_45 = arith.constant 0 : i32
    %101 = arith.cmpi ne, %100, %c0_i32_45 : i32
    scf.if %101 {
      %c0_46 = arith.constant 0 : index
      %c0_47 = arith.constant 0 : index
      %102 = vector.load %arg10[%c0_46, %c0_47] : memref<128x128xf32, #tpu.memory_space<vmem>>, vector<128x128xf32>
      %cst_48 = arith.constant dense<0.000000e+00> : vector<128x128xf32>
      %103 = tpu.matmul %95, %102, %cst_48 {dimension_numbers = #tpu.dot_dimension_numbers<[1], [0], [0], [1], [0, 0, 1, 1], [], []>} : vector<128x128xf32>, vector<128x128xf32>, vector<128x128xf32> -> vector<128x128xf32>
      %c0_49 = arith.constant 0 : index
      %c0_50 = arith.constant 0 : index
      %104 = vector.load %arg11[%c0_49, %c0_50] : memref<1x128xf32, #tpu.memory_space<vmem>>, vector<1x128xf32>
      %105 = vector.broadcast %104 : vector<1x128xf32> to vector<128x128xf32>
      %106 = arith.addf %103, %105 : vector<128x128xf32>
      %cst_51 = arith.constant 0.000000e+00 : f32
      %107 = vector.broadcast %cst_51 : f32 to vector<128x128xf32>
      %108 = arith.maximumf %106, %107 : vector<128x128xf32>
      %c0_52 = arith.constant 0 : index
      %c0_53 = arith.constant 0 : index
      %109 = vector.load %arg12[%c0_52, %c0_53] : memref<128x128xf32, #tpu.memory_space<vmem>>, vector<128x128xf32>
      %cst_54 = arith.constant dense<0.000000e+00> : vector<128x128xf32>
      %110 = tpu.matmul %108, %109, %cst_54 {dimension_numbers = #tpu.dot_dimension_numbers<[1], [0], [0], [1], [0, 0, 1, 1], [], []>} : vector<128x128xf32>, vector<128x128xf32>, vector<128x128xf32> -> vector<128x128xf32>
      %c0_55 = arith.constant 0 : index
      %c0_56 = arith.constant 0 : index
      %111 = vector.load %arg13[%c0_55, %c0_56] : memref<1x128xf32, #tpu.memory_space<vmem>>, vector<1x128xf32>
      %112 = vector.broadcast %111 : vector<1x128xf32> to vector<128x128xf32>
      %113 = arith.addf %110, %112 : vector<128x128xf32>
      %c0_57 = arith.constant 0 : index
      %c0_58 = arith.constant 0 : index
      %114 = vector.load %arg14[%c0_57, %c0_58] : memref<128x128xf32, #tpu.memory_space<vmem>>, vector<128x128xf32>
      tpu.vector_store %arg14[%c0_57, %c0_58], %113 {strides = array<i32>} : memref<128x128xf32, #tpu.memory_space<vmem>>, vector<128x128xf32>,
    } else {
    }
    return
  }
  func.func @transform_0(%arg0: i32, %arg1: i32) -> (i32, i32) {
    %c0_i32 = arith.constant 0 : i32
    %c0_i32_0 = arith.constant 0 : i32
    %c0_i32_1 = arith.constant 0 : i32
    return %c0_i32, %c0_i32_0 : i32, i32
  }
  func.func @transform_1(%arg0: i32, %arg1: i32) -> (i32, i32) {
    %c0_i32 = arith.constant 0 : i32
    %c0_i32_0 = arith.constant 0 : i32
    %c0_i32_1 = arith.constant 0 : i32
    return %c0_i32, %c0_i32_0 : i32, i32
  }
  func.func @transform_2(%arg0: i32, %arg1: i32) -> (i32, i32, i32) {
    %c0_i32 = arith.constant 0 : i32
    %c0_i32_0 = arith.constant 0 : i32
    %c0_i32_1 = arith.constant 0 : i32
    return %arg0, %c0_i32, %c0_i32_0 : i32, i32, i32
  }
  func.func @transform_3(%arg0: i32, %arg1: i32) -> (i32, i32, i32) {
    %c0_i32 = arith.constant 0 : i32
    %c0_i32_0 = arith.constant 0 : i32
    %c0_i32_1 = arith.constant 0 : i32
    return %arg0, %c0_i32, %c0_i32_0 : i32, i32, i32
  }
  func.func @transform_4(%arg0: i32, %arg1: i32) -> (i32, i32, i32) {
    %c0_i32 = arith.constant 0 : i32
    %c0_i32_0 = arith.constant 0 : i32
    %c0_i32_1 = arith.constant 0 : i32
    return %arg0, %c0_i32, %c0_i32_0 : i32, i32, i32
  }
  func.func @transform_5(%arg0: i32, %arg1: i32) -> (i32, i32, i32) {
    %c0_i32 = arith.constant 0 : i32
    %c0_i32_0 = arith.constant 0 : i32
    %c0_i32_1 = arith.constant 0 : i32
    return %arg0, %c0_i32, %c0_i32_0 : i32, i32, i32
  }
  func.func @transform_6(%arg0: i32, %arg1: i32) -> (i32, i32, i32) {
    %c0_i32 = arith.constant 0 : i32
    %c0_i32_0 = arith.constant 0 : i32
    %c0_i32_1 = arith.constant 0 : i32
    return %arg0, %c0_i32, %c0_i32_0 : i32, i32, i32
  }
  func.func @transform_7(%arg0: i32, %arg1: i32) -> (i32, i32, i32) {
    %c0_i32 = arith.constant 0 : i32
    %c0_i32_0 = arith.constant 0 : i32
    %c0_i32_1 = arith.constant 0 : i32
    return %arg0, %c0_i32, %c0_i32_0 : i32, i32, i32
  }
  func.func @transform_8(%arg0: i32, %arg1: i32) -> (i32, i32) {
    %c0_i32 = arith.constant 0 : i32
    %c0_i32_0 = arith.constant 0 : i32
    %c0_i32_1 = arith.constant 0 : i32
    return %c0_i32, %c0_i32_0 : i32, i32
  }
  func.func @transform_9(%arg0: i32, %arg1: i32) -> (i32, i32) {
    %c0_i32 = arith.constant 0 : i32
    %c0_i32_0 = arith.constant 0 : i32
    %c0_i32_1 = arith.constant 0 : i32
    return %c0_i32, %c0_i32_0 : i32, i32
  }
  func.func @transform_10(%arg0: i32, %arg1: i32) -> (i32, i32) {
    %c0_i32 = arith.constant 0 : i32
    %c0_i32_0 = arith.constant 0 : i32
    %c0_i32_1 = arith.constant 0 : i32
    return %c0_i32, %c0_i32_0 : i32, i32
  }
  func.func @transform_11(%arg0: i32, %arg1: i32) -> (i32, i32) {
    %c0_i32 = arith.constant 0 : i32
    %c0_i32_0 = arith.constant 0 : i32
    %c0_i32_1 = arith.constant 0 : i32
    return %c0_i32, %c0_i32_0 : i32, i32
  }
  func.func @transform_12(%arg0: i32, %arg1: i32) -> (i32, i32) {
    %c4_i32 = arith.constant 4 : i32
    %0 = arith.cmpi eq, %arg0, %c4_i32 : i32
    %c0_i32 = arith.constant 0 : i32
    %1 = arith.select %0, %arg1, %c0_i32 : i32
    %c0_i32_0 = arith.constant 0 : i32
    %c0_i32_1 = arith.constant 0 : i32
    return %1, %c0_i32_0 : i32, i32
  }
}

</mosaic_0001>

<bundles_post_ra>
// kernel: tpu_custom_call.1
= control target key start
LH: loop header
LB: loop body
LE: loop exit
PB: predicated region body
PF: predicated region fallthrough
CT: control target
= control target key end

     0   :  { %s6044_s0 = inlined_call_operand.hbm [shape: bf16[384,128], index: 0, kind: input, shape index: {}]   ;;  %s6045_s1 = inlined_call_operand.hbm [shape: bf16[384,384], index: 1, kind: input, shape index: {}]   ;;  %s6046_s2 = inlined_call_operand.hbm [shape: bf16[5,256,256], index: 2, kind: input, shape index: {}]   ;;  %s6047_s3 = inlined_call_operand.vmem [shape: f32[5,1,256], index: 3, kind: input, shape index: {}]   ;;  %s6048_s4 = inlined_call_operand.hbm [shape: bf16[5,128,128], index: 4, kind: input, shape index: {}]   ;;  %s6049_s5 = inlined_call_operand.vmem [shape: f32[5,1,128], index: 5, kind: input, shape index: {}]   ;;  %s6050_s6 = inlined_call_operand.hbm [shape: bf16[5,128,128], index: 6, kind: input, shape index: {}]   ;;  %s6051_s7 = inlined_call_operand.vmem [shape: f32[5,1,128], index: 7, kind: input, shape index: {}]   ;;  %s6052_s8 = inlined_call_operand.hbm [shape: f32[128,128], index: 8, kind: input, shape index: {}]   ;;  %s6053_s9 = inlined_call_operand.vmem [shape: f32[1,128], index: 9, kind: input, shape index: {}]   ;;  %s6054_s10 = inlined_call_operand.hbm [shape: f32[128,128], index: 10, kind: input, shape index: {}]   ;;  %s6055_s11 = inlined_call_operand.vmem [shape: f32[1,128], index: 11, kind: input, shape index: {}]   ;;  %s6056_s12 = inlined_call_operand.hbm [shape: f32[384,128], index: 12, kind: output, shape index: {}]  }
   0x1   :  { %6101 = sst [smem:[#allocation42_spill]] %s6044_s0 }
   0x2   :  { %6102 = sst [smem:[#allocation43_spill]] %s6045_s1 }
   0x3   :  { %6103 = sst [smem:[#allocation44_spill]] %s6046_s2 }
   0x4   :  { %6104 = sst [smem:[#allocation45_spill]] %s6047_s3 }
   0x5   :  { %6105 = sst [smem:[#allocation46_spill]] %s6048_s4 }
   0x6   :  { %6106 = sst [smem:[#allocation47_spill]] %s6049_s5 }
   0x7   :  { %6107 = sst [smem:[#allocation48_spill]] %s6051_s7 }
   0x8   :  { %6108 = sst [smem:[#allocation49_spill]] %s6053_s9 }
   0x9   :  { %6109 = sst [smem:[#allocation50_spill]] %s6055_s11 }
   0xa   :  { %6110 = sst [smem:[#allocation51_spill]] %s6056_s12 }
   0xb   :  { %17 = vsyncpa [#allocation6], 0 }
   0xc   :  { %18 = vsyncpa [#allocation9], 0 }
   0xd   :  { %19 = vsyncpa [#allocation15], 0 }
   0xe   :  { %20 = vsyncpa [#allocation7], 0 }
   0xf   :  { %22 = vsyncpa [#allocation7 + $0x1], 0  ;;  %s4709_s21 = smov 0   ;;  %s4711_s22 = smov 0  }
  0x10   :  { %s4713_s23 = smov 0   ;;  %s4715_s24 = smov 0  }
  0x11   :  { %s4717_s25 = smov 0   ;;  %s4719_s26 = smov 0  }
  0x12   :  { %s4721_s27 = smov 0   ;;  %s4723_s28 = smov 0  }
  0x13   :  { %s4725_s29 = smov 0   ;;  %s4727_s30 = smov 0  }
  0x14   :  { %s4729_s13 = smov 0  }
  0x15 LB: > { %6111 = sst [smem:[#allocation23_spill]] %s4586_s21  ;;  %s4763_s14 = sadd.s32 4294967295, %s4626_s13   ;;  %s4626_s13 = sphi %s4729_s13, %s28_s13   ;;  %s4622_s30 = sphi %s4727_s30, %s6207_s30   ;;  %s4618_s29 = sphi %s4725_s29, %s6202_s29   ;;  %s4614_s28 = sphi %s4723_s28, %s6206_s28   ;;  %s4610_s27 = sphi %s4721_s27, %s6201_s27   ;;  %s4606_s26 = sphi %s4719_s26, %s6200_s26   ;;  %s4602_s25 = sphi %s4717_s25, %s6199_s25   ;;  %s4598_s24 = sphi %s4715_s24, %s6198_s24   ;;  %s4594_s23 = sphi %s4713_s23, %s6205_s23   ;;  %s4590_s22 = sphi %s4711_s22, %s6204_s22   ;;  %s4586_s21 = sphi %s4709_s21, %s6196_s21  }
  0x16   : > { %6112 = sst [smem:[#allocation24_spill]] %s4590_s22  ;;  %s3158_s15 = sadd.s32 4294967294, %s4626_s13  }
  0x17   : > { %6113 = sst [smem:[#allocation25_spill]] %s4602_s25  ;;  %p102_p0 = scmp.ne.s32.totalorder %s4602_s25, %s4598_s24 }
  0x18   : > { %6114 = sst [smem:[#allocation26_spill]] %s4606_s26  ;;  %p6062_p1 = scmp.eq.s32.totalorder %s4763_s14, 0 }
  0x19   : > { %6115 = sst [smem:[#allocation27_spill]] %s4610_s27  ;;  %p343_p2 = scmp.ne.s32.totalorder %s4594_s23, %s4590_s22 }
  0x1a   : > { %6116 = sst [smem:[#allocation28_spill]] %s4614_s28  ;;  %p4773_p3 = por %p6062_p1, %p102_p0 }
  0x1b   : > { %6117 = sst [smem:[#allocation29_spill]] %s4618_s29  ;;  %p344_p4 = scmp.eq.s32.totalorder %s4763_s14, 14 }
  0x1c   : > { %6118 = sst [smem:[#allocation30_spill]] %s4763_s14  ;;  %p349_p5 = scmp.ne.s32.totalorder %s4590_s22, %s4586_s21 }
  0x1d   : > { %s6119_s17 = scalar_select %p4773_p3, 1, 0 }
  0x1e   : > { %p350_p6 = scmp.eq.s32.totalorder %s3158_s15, 14  ;;  %p4780_p7 = por %p344_p4, %p343_p2 }
  0x1f   : > { %6120 = sst [smem:[#allocation31_spill]] %s6119_s17  ;;  %p3159_p8 = scmp.ge.s32.totalorder %s4626_s13, 1 }
  0x20   : > { %s6121_s18 = scalar_select %p4780_p7, 1, 0 }
  0x21   : > { %p4785_p9 = por %p350_p6, %p349_p5  ;;  %p357_p10 = scmp.lt.s32.totalorder %s4626_s13, 16 }
  0x22   : > { %6122 = sst [smem:[#allocation32_spill]] %s6121_s18  ;;  %s4628_s24 = smov [#allocation5]  }
  0x23   : > { %s6123_s19 = scalar_select %p4785_p9, 1, 0 }
  0x24   : > { %p4790_p11 = pnand %p3159_p8, %p357_p10  ;;  %s369_s16 = sshll.u32 %s4628_s24, 4  ;;  %s370_s16 = int_to_ptr.vmem [resolvable:$true] %s369_s16 }
  0x25   : > { %6124 = sst [smem:[#allocation33_spill]] %s6123_s19 }
  0x26   : > { %s6125_s20 = scalar_select %p4790_p11, 1, 0 }
  0x27   : > { %p3810_p12 = pneg %p4790_p11  ;;  %s6127_s0 = sld [smem:[#allocation42_spill]] }
  0x29   : > { %p4798_p13 = pnand %p3810_p12, %p6062_p1 }
  0x2b   : > { %s6126_s15 = scalar_select %p4798_p13, 1, 0 }
  0x2c   : > { %p4810_p2 = pneg %p4798_p13 }
  0x2d   : > { %s4286_s19 = scalar_lea.hbm %s6127_s0, 3072 }
  0x2e   : > { %p4287_p0 = scmp.ne.s32.totalorder %s6127_s0, %s4286_s19  ;;  %p4293_p6 = scmp.lt.u32.totalorder %s4286_s19, %s6127_s0 }
  0x2f   : > { %s6128_s24 = scalar_select %p4810_p2, 1, 0 }
  0x30   : > { %p4289_p4 = pnand %p4810_p2, %p4287_p0 }
  0x32   : > { %p4290_p5 = pneg %p4289_p4 }
  0x34   : > { %p4295_p8 = pnand %p4293_p6, %p4290_p5 }
  0x36   : > { %4298 = shalt.err (!%p4295_p8)
}
  0x37   : > { %s4299_s12 = scalar_lea.vmem %s370_s16, 3072  ;;  %p4307_p9 = scmp.lt.s32.totalorder %s370_s16, %s370_s16 }
  0x38   : > { %p4300_p10 = scmp.ne.s32.totalorder %s370_s16, %s4299_s12  ;;  %p4308_p7 = scmp.lt.s32.totalorder %s4299_s12, %s4299_s12 }
  0x3a   : > { %p4302_p12 = pnand %p4300_p10, %p4810_p2  ;;  %p4309_p3 = por %p4308_p7, %p4307_p9 }
  0x3c   : > { %p4303_p1 = pneg %p4302_p12 }
  0x3e   : > { %p4310_p11 = pnand %p4309_p3, %p4303_p1 }
  0x40   : > { %4313 = shalt.err (!%p4310_p11)
}
  0x41   : > { %s6066_s11 = smov 64   ;;  %s6068_s7 = smov 4  }
  0x42   : > { %3813 = dma.hbm_to_vmem [thread:$0]  (!%p4798_p13), %s6127_s0, 3072, %s370_s16, [#allocation6], %s6066_s11, %s6066_s11, %s6068_s7  }
  0x43   : > { %s37_s18 = sadd.s32 1, %s4618_s29  ;;  %s40_s19 = sadd.s32 1, %s4622_s30 }
  0x44   : > { %p38_p1 = scmp.ge.s32.totalorder %s37_s18, 3  ;;  %s89_s12 = sadd.s32 1, %s4606_s26 }
  0x45   : > { %p96_p3 = scmp.ne.s32.totalorder %s4606_s26, %s4602_s25  ;;  %p97_p7 = scmp.eq.s32.totalorder %s4626_s13, 0 }
  0x46   : > { %s6209_s18 = smov (%p38_p1, %s37_s18), 0  ;;  %s6211_s19 = smov (!%p38_p1, %s40_s19), %s4622_s30 }
  0x47   : > { %6129 = sst [smem:[#allocation34_spill]] %s6209_s18  ;;  %p326_p9 = scmp.eq.s32.totalorder %s4622_s30, 4 }
  0x48   : > { %p42_p11 = scmp.ge.s32.totalorder %s6211_s19, 5  ;;  %p4839_p0 = por %p97_p7, %p96_p3 }
  0x49   : > { %s327_s9 = scalar_select %p326_p9, %s4618_s29, 0 }
  0x4a   : > { %s6213_s19 = smov (%p42_p11, %s6211_s19), 0  ;;  %p3841_p6 = scmp.lt.s32.totalorder %s4626_s13, 15 }
  0x4b   : > { %6131 = sst [smem:[#allocation35_spill]] %s6213_s19  ;;  %s86_s21 = ssub.s32 %s4622_s30, %s6213_s19 }
  0x4c   : > { %p328_p4 = scmp.eq.s32.totalorder %s6213_s19, 4  ;;  %p87_p5 = scmp.eq.s32.totalorder %s86_s21, 0 }
  0x4d   : > { %s428_s3 = sand.u32 1, %s4626_s13   ;;  %s6084_s5 = sand.u32 1, %s4606_s26  }
  0x4e   : > { %s329_s11 = scalar_select %p328_p4, %s6209_s18, 0 }
  0x4f   : > { %s4852_s7 = scalar_select %p87_p5, %s4606_s26, %s89_s12  }
  0x50   : > { %s330_s0 = ssub.s32 %s327_s9, %s329_s11  ;;  %s3333_s27 = sshll.u32 %s4622_s30, 12 }
  0x51   : > { %6132 = sst [smem:[#allocation36_spill]] %s4852_s7  ;;  %p331_p8 = scmp.eq.s32.totalorder %s330_s0, 0 }
  0x52   : > { %s6133_s28 = sadd.s32 1, %s4594_s23  ;;  %s3165_s17 = sshll.u32 %s6084_s5, 8 }
  0x53   : > { %s4860_s22 = scalar_select %p331_p8, %s4594_s23, %s6133_s28  }
  0x54   : > { %s6135_s2 = sld [smem:[#allocation44_spill]]  ;;  %p4871_p10 = pnand %p3841_p6, %p4839_p0 }
  0x55   : > { %6134 = sst [smem:[#allocation37_spill]] %s4860_s22  ;;  %s432_s0 = scalar_lea.vmem [#allocation10], %s3165_s17 }
  0x56   : > { %s6136_s11 = scalar_select %p4871_p10, 1, 0 }
  0x57   : > { %s439_s28 = sshll.u32 %s432_s0, 4  ;;  %s4877_s12 = scalar_lea.sflag [#allocation6], %s428_s3  ;;  %s4875_s28 = int_to_ptr.vmem [resolvable:$true] %s439_s28 }
  0x58   : > { %p4883_p1 = pneg %p4871_p10 }
  0x5a   : > { %s4867_s29 = scalar_lea.hbm %s6135_s2, %s3333_s27  ;;  %s4319_s17 = scalar_lea.hbm %s6135_s2, 20480 }
  0x5b   : > { %s4314_s9 = scalar_lea.hbm %s4867_s29, 4096  ;;  %p4320_p9 = scmp.lt.u32.totalorder %s4867_s29, %s6135_s2 }
  0x5c   : > { %p4315_p12 = scmp.ne.s32.totalorder %s4867_s29, %s4314_s9  ;;  %p4321_p11 = scmp.lt.u32.totalorder %s4319_s17, %s4314_s9 }
  0x5d   : > { %s6137_s25 = scalar_select %p4883_p1, 1, 0 }
  0x5e   : > { %p4317_p3 = pnand %p4883_p1, %p4315_p12  ;;  %p4322_p0 = por %p4321_p11, %p4320_p9 }
  0x5f   : > { %p4323_p4 = scmp.lt.u32.totalorder %s4314_s9, %s4867_s29 }
  0x60   : > { %p4318_p7 = pneg %p4317_p3 }
  0x61   : > { %p4324_p5 = por %p4323_p4, %p4322_p0 }
  0x63   : > { %p4325_p6 = pnand %p4324_p5, %p4318_p7 }
  0x65   : > { %4328 = shalt.err (!%p4325_p6)
}
  0x66   : > { %s4329_s3 = scalar_lea.vmem %s4875_s28, 4096  ;;  %s4631_s0 = smov [#allocation10]  }
  0x67   : > { %p4330_p8 = scmp.ne.s32.totalorder %s4875_s28, %s4329_s3  ;;  %s4334_s27 = sshll.u32 %s4631_s0, 4  ;;  %s4335_s27 = int_to_ptr.vmem [resolvable:$false] %s4334_s27 }
  0x68   : > { %s4336_s14 = scalar_lea.vmem %s4335_s27, 8192  ;;  %p4337_p13 = scmp.lt.s32.totalorder %s4875_s28, %s4335_s27 }
  0x69   : > { %p4332_p12 = pnand %p4330_p8, %p4883_p1  ;;  %p4338_p2 = scmp.lt.s32.totalorder %s4336_s14, %s4329_s3 }
  0x6b   : > { %p4333_p3 = pneg %p4332_p12  ;;  %p4339_p9 = por %p4338_p2, %p4337_p13 }
  0x6d   : > { %p4340_p11 = pnand %p4339_p9, %p4333_p3 }
  0x6f   : > { %4343 = shalt.err (!%p4340_p11)
}
  0x70   : > { %s6088_s9 = smov 128   ;;  %s6090_s17 = smov 8  }
  0x71   : > { %3826 = dma.hbm_to_vmem [thread:$0]  (!%p4871_p10), %s4867_s29, 4096, %s4875_s28, %s4877_s12, %s6088_s9, %s6088_s9, %s6090_s17  }
  0x72   : > { %s4634_s16 = smov [#allocation8]   ;;  %s6138_s1 = sld [smem:[#allocation43_spill]] }
  0x73   : > { %s382_s21 = sshll.u32 %s4634_s16, 4  ;;  %p6139_p2 = scmp.ne.s32.totalorder %s6128_s24, 0  ;;  %s383_s21 = int_to_ptr.vmem [resolvable:$true] %s382_s21 }
  0x78   : > { %s4344_s27 = scalar_lea.hbm %s6138_s1, 9216 }
  0x79   : > { %p4345_p13 = scmp.ne.s32.totalorder %s6138_s1, %s4344_s27  ;;  %p4351_p4 = scmp.lt.u32.totalorder %s4344_s27, %s6138_s1 }
  0x7b   : > { %p4347_p7 = pnand %p4345_p13, %p6139_p2 }
  0x7d   : > { %p4348_p0 = pneg %p4347_p7 }
  0x7f   : > { %p4353_p5 = pnand %p4351_p4, %p4348_p0 }
  0x81   : > { %4356 = shalt.err (!%p4353_p5)
}
  0x82   : > { %s4357_s29 = scalar_lea.vmem %s383_s21, 9216  ;;  %p4365_p3 = scmp.lt.s32.totalorder %s383_s21, %s383_s21 }
  0x83   : > { %p4358_p6 = scmp.ne.s32.totalorder %s383_s21, %s4357_s29  ;;  %p4366_p9 = scmp.lt.s32.totalorder %s4357_s29, %s4357_s29 }
  0x85   : > { %p4360_p8 = pnand %p4358_p6, %p6139_p2  ;;  %p4367_p11 = por %p4366_p9, %p4365_p3 }
  0x87   : > { %p4361_p12 = pneg %p4360_p8 }
  0x89   : > { %p4368_p10 = pnand %p4367_p11, %p4361_p12 }
  0x8b   : > { %4371 = shalt.err (!%p4368_p10)
}
  0x8c   : > { %s4635_s5 = smov 192   ;;  %s4636_s2 = smov 12  }
  0x8d   : > { %p6140_p13 = scmp.ne.s32.totalorder %s6126_s15, 0  ;;  %s6141_s16 = sand.u32 1, %s4606_s26  }
  0x8e   : > { %s4930_s0 = sshll.u32 %s6141_s16, 6  ;;  %s6092_s3 = sshll.u32 %s4622_s30, 10 }
  0x8f   : > { %3816 = dma.hbm_to_vmem [thread:$0]  (!%p6140_p13), %s6138_s1, 9216, %s383_s21, [#allocation9], %s4635_s5, %s4635_s5, %s4636_s2  }
  0x90   : > { %s6142_s4 = sld [smem:[#allocation46_spill]]  ;;  %s460_s9 = scalar_lea.vmem [#allocation11], %s4930_s0 }
  0x91   : > { %s467_s17 = sshll.u32 %s460_s9, 4  ;;  %s4637_s21 = smov [#allocation13]   ;;  %s4941_s17 = int_to_ptr.vmem [resolvable:$true] %s467_s17 }
  0x92   : > { %s4943_s5 = sshll.u32 %s4637_s21, 4  ;;  %s396_s5 = int_to_ptr.vmem [resolvable:$true] %s4943_s5 }
  0x96   : > { %s4938_s29 = scalar_lea.hbm %s6142_s4, %s6092_s3  ;;  %s4377_s16 = scalar_lea.hbm %s6142_s4, 5120 }
  0x97   : > { %s4372_s2 = scalar_lea.hbm %s4938_s29, 1024  ;;  %p4378_p4 = scmp.lt.u32.totalorder %s4938_s29, %s6142_s4 }
  0x98   : > { %p4373_p10 = scmp.ne.s32.totalorder %s4938_s29, %s4372_s2  ;;  %p4379_p5 = scmp.lt.u32.totalorder %s4377_s16, %s4372_s2 }
  0x99   : > { %p4381_p8 = scmp.lt.u32.totalorder %s4372_s2, %s4938_s29 }
  0x9a   : > { %p4375_p7 = pnand %p4373_p10, %p4883_p1  ;;  %p4380_p6 = por %p4379_p5, %p4378_p4 }
  0x9c   : > { %p4376_p0 = pneg %p4375_p7  ;;  %p4382_p12 = por %p4381_p8, %p4380_p6 }
  0x9e   : > { %p4383_p3 = pnand %p4382_p12, %p4376_p0 }
  0xa0   : > { %4386 = shalt.err (!%p4383_p3)
}
  0xa1   : > { %s4387_s9 = scalar_lea.vmem %s4941_s17, 1024  ;;  %s4638_s21 = smov [#allocation11]  }
  0xa2   : > { %p4388_p9 = scmp.ne.s32.totalorder %s4941_s17, %s4387_s9  ;;  %s4392_s19 = sshll.u32 %s4638_s21, 4  ;;  %s4393_s19 = int_to_ptr.vmem [resolvable:$false] %s4392_s19 }
  0xa3   : > { %s4394_s28 = scalar_lea.vmem %s4393_s19, 2048  ;;  %p4395_p7 = scmp.lt.s32.totalorder %s4941_s17, %s4393_s19 }
  0xa4   : > { %p4390_p11 = pnand %p4388_p9, %p4883_p1  ;;  %p4396_p13 = scmp.lt.s32.totalorder %s4394_s28, %s4387_s9 }
  0xa6   : > { %p4391_p10 = pneg %p4390_p11  ;;  %p4397_p4 = por %p4396_p13, %p4395_p7 }
  0xa8   : > { %p4398_p5 = pnand %p4397_p4, %p4391_p10 }
  0xaa   : > { %4401 = shalt.err (!%p4398_p5)
}
  0xab   : > { %p6143_p0 = scmp.ne.s32.totalorder %s6136_s11, 0  ;;  %s6144_s2 = smov 4  }
  0xac   : > { %s6145_s16 = smov 64   ;;  %s4402_s21 = scalar_lea.hbm %s6052_s8, 2048 }
  0xad   : > { %3829 = dma.hbm_to_vmem [thread:$0]  (!%p6143_p0), %s4938_s29, 1024, %s4941_s17, %s4877_s12, %s6145_s16, %s6145_s16, %s6144_s2  }
  0xae   : > { %p4403_p13 = scmp.ne.s32.totalorder %s6052_s8, %s4402_s21  ;;  %p4409_p12 = scmp.lt.u32.totalorder %s4402_s21, %s6052_s8 }
  0xb0   : > { %p4405_p6 = pnand %p4403_p13, %p6139_p2 }
  0xb2   : > { %p4406_p8 = pneg %p4405_p6 }
  0xb4   : > { %p4411_p3 = pnand %p4409_p12, %p4406_p8 }
  0xb6   : > { %4414 = shalt.err (!%p4411_p3)
}
  0xb7   : > { %s4415_s1 = scalar_lea.vmem %s396_s5, 2048  ;;  %p4423_p7 = scmp.lt.s32.totalorder %s396_s5, %s396_s5 }
  0xb8   : > { %p4416_p9 = scmp.ne.s32.totalorder %s396_s5, %s4415_s1  ;;  %p4424_p4 = scmp.lt.s32.totalorder %s4415_s1, %s4415_s1 }
  0xba   : > { %p4418_p11 = pnand %p4416_p9, %p6139_p2  ;;  %p4425_p5 = por %p4424_p4, %p4423_p7 }
  0xbc   : > { %p4419_p10 = pneg %p4418_p11 }
  0xbe   : > { %p4426_p0 = pnand %p4425_p5, %p4419_p10 }
  0xc0   : > { %4429 = shalt.err (!%p4426_p0)
}
  0xc1   : > { %p6146_p13 = scmp.ne.s32.totalorder %s6126_s15, 0  ;;  %s6147_s17 = smov 8  }
  0xc2   : > { %s6148_s29 = smov 128   ;;  %s4639_s14 = smov [#allocation14]  }
  0xc3   : > { %3819 = dma.hbm_to_vmem [thread:$0]  (!%p6146_p13), %s6052_s8, 2048, %s396_s5, [#allocation9], %s6148_s29, %s6148_s29, %s6147_s17  }
  0xc4   : > { %s411_s21 = sshll.u32 %s4639_s14, 4  ;;  %s6149_s9 = sshll.u32 %s4622_s30, 10  ;;  %s412_s21 = int_to_ptr.vmem [resolvable:$true] %s411_s21 }
  0xc5   : > { %s4997_s28 = scalar_lea.hbm %s6050_s6, %s6149_s9  ;;  %s4430_s7 = scalar_lea.hbm %s6054_s10, 2048 }
  0xc6   : > { %p4431_p0 = scmp.ne.s32.totalorder %s6054_s10, %s4430_s7  ;;  %p4437_p12 = scmp.lt.u32.totalorder %s4430_s7, %s6054_s10 }
  0xc8   : > { %p4433_p6 = pnand %p4431_p0, %p6139_p2 }
  0xca   : > { %p4434_p8 = pneg %p4433_p6 }
  0xcc   : > { %p4439_p3 = pnand %p4437_p12, %p4434_p8 }
  0xce   : > { %4442 = shalt.err (!%p4439_p3)
}
  0xcf   : > { %s4443_s27 = scalar_lea.vmem %s412_s21, 2048  ;;  %p4451_p7 = scmp.lt.s32.totalorder %s412_s21, %s412_s21 }
  0xd0   : > { %p4444_p9 = scmp.ne.s32.totalorder %s412_s21, %s4443_s27  ;;  %p4452_p4 = scmp.lt.s32.totalorder %s4443_s27, %s4443_s27 }
  0xd2   : > { %p4446_p11 = pnand %p4444_p9, %p6139_p2  ;;  %p4453_p5 = por %p4452_p4, %p4451_p7 }
  0xd4   : > { %p4447_p10 = pneg %p4446_p11 }
  0xd6   : > { %p4454_p1 = pnand %p4453_p5, %p4447_p10 }
  0xd8   : > { %4457 = shalt.err (!%p4454_p1)
}
  0xd9   : > { %3822 = dma.hbm_to_vmem [thread:$0]  (!%p6146_p13), %s6054_s10, 2048, %s412_s21, [#allocation15], %s6148_s29, %s6148_s29, %s6147_s17  }
  0xda   : > { %s487_s26 = scalar_lea.vmem [#allocation12], %s4930_s0  ;;  %s4458_s7 = scalar_lea.hbm %s4997_s28, 1024 }
  0xdb   : > { %s494_s24 = sshll.u32 %s487_s26, 4  ;;  %p4459_p1 = scmp.ne.s32.totalorder %s4997_s28, %s4458_s7  ;;  %s5021_s24 = int_to_ptr.vmem [resolvable:$true] %s494_s24 }
  0xdc   : > { %p6150_p2 = scmp.ne.s32.totalorder %s6137_s25, 0  ;;  %s4463_s14 = scalar_lea.hbm %s6050_s6, 5120 }
  0xdd   : > { %p4464_p8 = scmp.lt.u32.totalorder %s4997_s28, %s6050_s6  ;;  %p4465_p12 = scmp.lt.u32.totalorder %s4463_s14, %s4458_s7 }
  0xde   : > { %p4461_p0 = pnand %p4459_p1, %p6150_p2  ;;  %p4467_p13 = scmp.lt.u32.totalorder %s4458_s7, %s4997_s28 }
  0xdf   : > { %p4466_p3 = por %p4465_p12, %p4464_p8 }
  0xe0   : > { %p4462_p6 = pneg %p4461_p0 }
  0xe1   : > { %p4468_p9 = por %p4467_p13, %p4466_p3 }
  0xe3   : > { %p4469_p11 = pnand %p4468_p9, %p4462_p6 }
  0xe5   : > { %4472 = shalt.err (!%p4469_p11)
}
  0xe6   : > { %s4473_s0 = scalar_lea.vmem %s5021_s24, 1024  ;;  %s4640_s17 = smov [#allocation12]  }
  0xe7   : > { %p4474_p10 = scmp.ne.s32.totalorder %s5021_s24, %s4473_s0  ;;  %s4478_s29 = sshll.u32 %s4640_s17, 4  ;;  %s4479_s29 = int_to_ptr.vmem [resolvable:$false] %s4478_s29 }
  0xe8   : > { %s4480_s21 = scalar_lea.vmem %s4479_s29, 2048  ;;  %p4481_p5 = scmp.lt.s32.totalorder %s5021_s24, %s4479_s29 }
  0xe9   : > { %p4476_p7 = pnand %p4474_p10, %p6150_p2  ;;  %p4482_p1 = scmp.lt.s32.totalorder %s4480_s21, %s4473_s0 }
  0xeb   : > { %p4477_p4 = pneg %p4476_p7  ;;  %p4483_p0 = por %p4482_p1, %p4481_p5 }
  0xed   : > { %p4484_p8 = pnand %p4483_p0, %p4477_p4 }
  0xef   : > { %4487 = shalt.err (!%p4484_p8)
}
  0xf0   : > { %p6151_p6 = scmp.ne.s32.totalorder %s6136_s11, 0  ;;  %p6152_p2 = scmp.ne.s32.totalorder %s6125_s20, 0 }
  0xf2   : > { %3832 = dma.hbm_to_vmem [thread:$0]  (!%p6151_p6), %s4997_s28, 1024, %s5021_s24, %s4877_s12, %s6145_s16, %s6145_s16, %s6144_s2  }
  0xf3   : > { %512 = sbr.rel (%p6152_p2) target bundleno = 1626 (0x65a), region = 68 }
  0xfa   : > { %s6153_s25 = sld [smem:[#allocation30_spill]] }
 0x100   : > { %p6154_p12 = scmp.eq.s32.totalorder %s6153_s25, 0 }
 0x102   : > { %4561 = dma.done.wait (%p6154_p12), [#allocation6], 3072   ;;  %p6155_p3 = pmov %p6154_p12 }
 0x104   : > { %4563 = vsyncadd (%p6155_p3), [#allocation6], 4294964224  ;;  %p6156_p13 = pmov %p6155_p3 }
 0x105   : > { %p6157_p9 = pmov %p6155_p3 }
 0x106   : > { %4565 = dma.done.wait (%p6156_p13), [#allocation9], 9216  }
 0x107   : > { %4567 = vsyncadd (%p6157_p9), [#allocation9], 4294958080  ;;  %s6158_s11 = sld [smem:[#allocation25_spill]]  ;;  %s6159_s1 = sld [smem:[#allocation31_spill]] }
 0x108   : > { %s522_s5 = sand.u32 1, %s6153_s25  }
 0x109   : > { %s523_s20 = scalar_lea.sflag [#allocation6], %s522_s5 }
 0x10d   : > { %s524_s12 = sand.u32 1, %s6158_s11   ;;  %p6160_p11 = scmp.ne.s32.totalorder %s6159_s1, 0 }
 0x10e   : > { %s3177_s2 = sshll.u32 %s524_s12, 8 }
 0x10f   : > { %s5060_s16 = scalar_lea.vmem [#allocation10], %s3177_s2 }
 0x110   : > { %4569 = dma.done.wait (%p6160_p11), %s523_s20, 6144  }
 0x111   : > { %4571 = vsyncadd (%p6160_p11), %s523_s20, 4294961152  ;;  %s3178_s28 = sshll.u32 %s524_s12, 6  ;;  %p6161_p10 = pmov %p6155_p3 }
 0x112   : > { %s5066_s3 = scalar_lea.vmem [#allocation11], %s3178_s28  ;;  %s5068_s27 = scalar_lea.vmem [#allocation12], %s3178_s28 }
 0x113   : > { %4573 = dma.done.wait (%p6161_p10), [#allocation9], 2048   ;;  %p6162_p7 = pmov %p6155_p3 }
 0x114   : > { %p6163_p4 = pmov %p6155_p3 }
 0x115   : > { %4575 = vsyncadd (%p6162_p7), [#allocation9], 4294965248 }
 0x116   : > { %4577 = dma.done.wait (%p6163_p4), [#allocation15], 2048   ;;  %p6164_p5 = pmov %p6155_p3 }
 0x117   : > { %s6165_s4 = sld [smem:[#allocation24_spill]]  ;;  %s6166_s22 = sld [smem:[#allocation28_spill]] }
 0x118   : > { %4579 = vsyncadd (%p6164_p5), [#allocation15], 4294965248  ;;  %s6167_s26 = sld [smem:[#allocation27_spill]]  ;;  %s6168_s9 = sld [smem:[#allocation47_spill]] }
 0x119   : > { %s6169_s29 = sld [smem:[#allocation45_spill]]  ;;  %s6170_s1 = sld [smem:[#allocation48_spill]] }
 0x11d   : > { %s610_s24 = sand.u32 1, %s6165_s4   ;;  %p613_p1 = scmp.lt.s32.totalorder %s6166_s22, 4 }
 0x11e   : > { %s3182_s7 = sshll.u32 %s610_s24, 7  ;;  %p627_p0 = scmp.eq.s32.totalorder %s6166_s22, 0 }
 0x11f   : > { %p628_p8 = scmp.eq.s32.totalorder %s6167_s26, 0  ;;  %s6215_s22 = smov (!%p613_p1, %s6166_s22), 4 }
 0x120   : > { %s3183_s15 = sshll.u32 %s6215_s22, 1  ;;  %s619_s19 = scalar_lea.vmem %s6168_s9, %s6215_s22 }
 0x121   : > { %p629_p6 = pnand %p628_p8, %p627_p0  ;;  %s5095_s21 = scalar_lea.vmem %s6169_s29, %s3183_s15 }
 0x122   : > { %s622_s5 = scalar_lea.vmem %s6170_s1, %s6215_s22  ;;  %s5101_s12 = scalar_lea.vmem [#allocation16], %s3182_s7  ;;  %v633_v0 = vld [vmem:[#allocation5] sm:$0xff] (!%p629_p6)   ;;  %v635_v1 = vld [vmem:[#allocation5 + $0x8] sm:$0xff] (!%p629_p6)   ;;  %v5103_v2 = vld [vmem:[#allocation5 + $0x10] sm:$0xff] (!%p629_p6)  }
 0x123   : > { %632 = sbr.rel (%p629_p6) target bundleno = 340 (0x154), region = 100  ;;  %v5105_v3 = vld [vmem:[#allocation5 + $0x18] sm:$0xff] (!%p629_p6)   ;;  %v5107_v4 = vld [vmem:[#allocation5 + $0x20] sm:$0xff] (!%p629_p6)   ;;  %v5109_v5 = vld [vmem:[#allocation5 + $0x28] sm:$0xff] (!%p629_p6)   ;;  %v849_v6 = vunpack.c.l.bf16 (!%p629_p6), %v633_v0  ;;  %v850_v10 = vunpack.c.h.bf16 (!%p629_p6), %v633_v0  ;;  %825 = vst [vmem:[#allocation3] sm:$0xff] (!%p629_p6), %v633_v0  ;;  %v851_v14 = vunpack.c.l.bf16 (!%p629_p6), %v635_v1  ;;  %v852_v18 = vunpack.c.h.bf16 (!%p629_p6), %v635_v1 }
 0x124   : > { %v5111_v7 = vld [vmem:[#allocation5 + $0x30] sm:$0xff] (!%p629_p6)   ;;  %v5113_v8 = vld [vmem:[#allocation5 + $0x38] sm:$0xff] (!%p629_p6)   ;;  %v5115_v9 = vld [vmem:[#allocation5 + $0x40] sm:$0xff] (!%p629_p6)   ;;  %945 = vst [vmem:[#allocation4] sm:$0xff] (!%p629_p6), %v633_v0  ;;  %v853_v22 = vunpack.c.l.bf16 (!%p629_p6), %v5103_v2  ;;  %v854_v26 = vunpack.c.h.bf16 (!%p629_p6), %v5103_v2  ;;  %v855_v30 = vunpack.c.l.bf16 (!%p629_p6), %v5105_v3  ;;  %v856_v31 = vunpack.c.h.bf16 (!%p629_p6), %v5105_v3 }
 0x125   : > { %826 = vst [vmem:[#allocation3 + $0x8] sm:$0xff] (!%p629_p6), %v635_v1  ;;  %946 = vst [vmem:[#allocation4 + $0x8] sm:$0xff] (!%p629_p6), %v635_v1  ;;  %v5119_v11 = vld [vmem:[#allocation5 + $0x48] sm:$0xff] (!%p629_p6)   ;;  %v5121_v12 = vld [vmem:[#allocation5 + $0x50] sm:$0xff] (!%p629_p6)   ;;  %v857_v32 = vunpack.c.l.bf16 (!%p629_p6), %v5107_v4  ;;  %v858_v33 = vunpack.c.h.bf16 (!%p629_p6), %v5107_v4  ;;  %v859_v34 = vunpack.c.l.bf16 (!%p629_p6), %v5109_v5  ;;  %v860_v35 = vunpack.c.h.bf16 (!%p629_p6), %v5109_v5 }
 0x126   : > { %827 = vst [vmem:[#allocation3 + $0x10] sm:$0xff] (!%p629_p6), %v5103_v2  ;;  %947 = vst [vmem:[#allocation4 + $0x10] sm:$0xff] (!%p629_p6), %v5103_v2  ;;  %v5123_v13 = vld [vmem:[#allocation5 + $0x58] sm:$0xff] (!%p629_p6)   ;;  %v5131_v15 = vld [vmem:[#allocation5 + $0x60] sm:$0xff] (!%p629_p6)   ;;  %v861_v36 = vunpack.c.l.bf16 (!%p629_p6), %v5111_v7  ;;  %v862_v37 = vunpack.c.h.bf16 (!%p629_p6), %v5111_v7  ;;  %v863_v38 = vunpack.c.l.bf16 (!%p629_p6), %v5113_v8  ;;  %v864_v39 = vunpack.c.h.bf16 (!%p629_p6), %v5113_v8 }
 0x127   : > { %897 = vst [vmem:[#allocation2] sm:$0xff] (!%p629_p6), %v849_v6  ;;  %828 = vst [vmem:[#allocation3 + $0x18] sm:$0xff] (!%p629_p6), %v5105_v3  ;;  %v5133_v16 = vld [vmem:[#allocation5 + $0x68] sm:$0xff] (!%p629_p6)   ;;  %v5135_v17 = vld [vmem:[#allocation5 + $0x70] sm:$0xff] (!%p629_p6)   ;;  %v865_v40 = vunpack.c.l.bf16 (!%p629_p6), %v5115_v9  ;;  %v866_v41 = vunpack.c.h.bf16 (!%p629_p6), %v5115_v9  ;;  %v867_v42 = vunpack.c.l.bf16 (!%p629_p6), %v5119_v11  ;;  %v868_v43 = vunpack.c.h.bf16 (!%p629_p6), %v5119_v11 }
 0x128   : > { %948 = vst [vmem:[#allocation4 + $0x18] sm:$0xff] (!%p629_p6), %v5105_v3  ;;  %829 = vst [vmem:[#allocation3 + $0x20] sm:$0xff] (!%p629_p6), %v5107_v4  ;;  %v5143_v19 = vld [vmem:[#allocation5 + $0x78] sm:$0xff] (!%p629_p6)   ;;  %v5145_v20 = vld [vmem:[#allocation5 + $0x80] sm:$0xff] (!%p629_p6)   ;;  %v869_v44 = vunpack.c.l.bf16 (!%p629_p6), %v5121_v12  ;;  %v870_v45 = vunpack.c.h.bf16 (!%p629_p6), %v5121_v12  ;;  %v871_v46 = vunpack.c.l.bf16 (!%p629_p6), %v5123_v13  ;;  %v872_v47 = vunpack.c.h.bf16 (!%p629_p6), %v5123_v13 }
 0x129   : > { %949 = vst [vmem:[#allocation4 + $0x20] sm:$0xff] (!%p629_p6), %v5107_v4  ;;  %830 = vst [vmem:[#allocation3 + $0x28] sm:$0xff] (!%p629_p6), %v5109_v5  ;;  %v5147_v21 = vld [vmem:[#allocation5 + $0x88] sm:$0xff] (!%p629_p6)   ;;  %v5156_v23 = vld [vmem:[#allocation5 + $0x90] sm:$0xff] (!%p629_p6)   ;;  %v873_v48 = vunpack.c.l.bf16 (!%p629_p6), %v5131_v15  ;;  %v874_v49 = vunpack.c.h.bf16 (!%p629_p6), %v5131_v15  ;;  %v875_v50 = vunpack.c.l.bf16 (!%p629_p6), %v5133_v16  ;;  %v876_v51 = vunpack.c.h.bf16 (!%p629_p6), %v5133_v16 }
 0x12a   : > { %950 = vst [vmem:[#allocation4 + $0x28] sm:$0xff] %v5109_v5  ;;  %898 = vst [vmem:[#allocation2 + $0x8] sm:$0xff] %v850_v10  ;;  %v5158_v24 = vld [vmem:[#allocation5 + $0x98] sm:$0xff]   ;;  %v5160_v25 = vld [vmem:[#allocation5 + $0xa0] sm:$0xff]   ;;  %v877_v52 = vunpack.c.l.bf16 %v5135_v17  ;;  %v878_v53 = vunpack.c.h.bf16 %v5135_v17  ;;  %v879_v54 = vunpack.c.l.bf16 %v5143_v19  ;;  %v880_v55 = vunpack.c.h.bf16 %v5143_v19 }
 0x12b   : > { %831 = vst [vmem:[#allocation3 + $0x30] sm:$0xff] %v5111_v7  ;;  %951 = vst [vmem:[#allocation4 + $0x30] sm:$0xff] %v5111_v7  ;;  %v5169_v27 = vld [vmem:[#allocation5 + $0xa8] sm:$0xff]   ;;  %v5171_v28 = vld [vmem:[#allocation5 + $0xb0] sm:$0xff]   ;;  %v881_v56 = vunpack.c.l.bf16 %v5145_v20  ;;  %v882_v57 = vunpack.c.h.bf16 %v5145_v20  ;;  %v883_v58 = vunpack.c.l.bf16 %v5147_v21  ;;  %v884_v59 = vunpack.c.h.bf16 %v5147_v21 }
 0x12c   : > { %832 = vst [vmem:[#allocation3 + $0x38] sm:$0xff] %v5113_v8  ;;  %952 = vst [vmem:[#allocation4 + $0x38] sm:$0xff] %v5113_v8  ;;  %v5173_v29 = vld [vmem:[#allocation5 + $0xb8] sm:$0xff]   ;;  %v885_v60 = vunpack.c.l.bf16 %v5156_v23  ;;  %v886_v61 = vunpack.c.h.bf16 %v5156_v23  ;;  %v887_v62 = vunpack.c.l.bf16 %v5158_v24  ;;  %v888_v63 = vunpack.c.h.bf16 %v5158_v24 }
 0x12d   : > { %833 = vst [vmem:[#allocation3 + $0x40] sm:$0xff] %v5115_v9  ;;  %953 = vst [vmem:[#allocation4 + $0x40] sm:$0xff] %v5115_v9  ;;  %v889_v0 = vunpack.c.l.bf16 %v5160_v25  ;;  %v890_v1 = vunpack.c.h.bf16 %v5160_v25  ;;  %v891_v2 = vunpack.c.l.bf16 %v5169_v27  ;;  %v892_v3 = vunpack.c.h.bf16 %v5169_v27 }
 0x12e   : > { %899 = vst [vmem:[#allocation2 + $0x10] sm:$0xff] %v851_v14  ;;  %834 = vst [vmem:[#allocation3 + $0x48] sm:$0xff] %v5119_v11  ;;  %v893_v4 = vunpack.c.l.bf16 %v5171_v28  ;;  %v894_v5 = vunpack.c.h.bf16 %v5171_v28  ;;  %v895_v6 = vunpack.c.l.bf16 %v5173_v29  ;;  %v896_v7 = vunpack.c.h.bf16 %v5173_v29 }
 0x12f   : > { %954 = vst [vmem:[#allocation4 + $0x48] sm:$0xff] %v5119_v11  ;;  %835 = vst [vmem:[#allocation3 + $0x50] sm:$0xff] %v5121_v12 }
 0x130   : > { %955 = vst [vmem:[#allocation4 + $0x50] sm:$0xff] %v5121_v12  ;;  %836 = vst [vmem:[#allocation3 + $0x58] sm:$0xff] %v5123_v13 }
 0x131   : > { %956 = vst [vmem:[#allocation4 + $0x58] sm:$0xff] %v5123_v13  ;;  %900 = vst [vmem:[#allocation2 + $0x18] sm:$0xff] %v852_v18 }
 0x132   : > { %837 = vst [vmem:[#allocation3 + $0x60] sm:$0xff] %v5131_v15  ;;  %957 = vst [vmem:[#allocation4 + $0x60] sm:$0xff] %v5131_v15 }
 0x133   : > { %838 = vst [vmem:[#allocation3 + $0x68] sm:$0xff] %v5133_v16  ;;  %958 = vst [vmem:[#allocation4 + $0x68] sm:$0xff] %v5133_v16 }
 0x134   : > { %839 = vst [vmem:[#allocation3 + $0x70] sm:$0xff] %v5135_v17  ;;  %959 = vst [vmem:[#allocation4 + $0x70] sm:$0xff] %v5135_v17 }
 0x135   : > { %901 = vst [vmem:[#allocation2 + $0x20] sm:$0xff] %v853_v22  ;;  %840 = vst [vmem:[#allocation3 + $0x78] sm:$0xff] %v5143_v19 }
 0x136   : > { %960 = vst [vmem:[#allocation4 + $0x78] sm:$0xff] %v5143_v19  ;;  %841 = vst [vmem:[#allocation3 + $0x80] sm:$0xff] %v5145_v20 }
 0x137   : > { %961 = vst [vmem:[#allocation4 + $0x80] sm:$0xff] %v5145_v20  ;;  %842 = vst [vmem:[#allocation3 + $0x88] sm:$0xff] %v5147_v21 }
 0x138   : > { %962 = vst [vmem:[#allocation4 + $0x88] sm:$0xff] %v5147_v21  ;;  %902 = vst [vmem:[#allocation2 + $0x28] sm:$0xff] %v854_v26 }
 0x139   : > { %843 = vst [vmem:[#allocation3 + $0x90] sm:$0xff] %v5156_v23  ;;  %963 = vst [vmem:[#allocation4 + $0x90] sm:$0xff] %v5156_v23 }
 0x13a   : > { %844 = vst [vmem:[#allocation3 + $0x98] sm:$0xff] %v5158_v24  ;;  %964 = vst [vmem:[#allocation4 + $0x98] sm:$0xff] %v5158_v24 }
 0x13b   : > { %845 = vst [vmem:[#allocation3 + $0xa0] sm:$0xff] %v5160_v25  ;;  %965 = vst [vmem:[#allocation4 + $0xa0] sm:$0xff] %v5160_v25 }
 0x13c   : > { %903 = vst [vmem:[#allocation2 + $0x30] sm:$0xff] %v855_v30  ;;  %846 = vst [vmem:[#allocation3 + $0xa8] sm:$0xff] %v5169_v27 }
 0x13d   : > { %966 = vst [vmem:[#allocation4 + $0xa8] sm:$0xff] %v5169_v27  ;;  %847 = vst [vmem:[#allocation3 + $0xb0] sm:$0xff] %v5171_v28 }
 0x13e   : > { %967 = vst [vmem:[#allocation4 + $0xb0] sm:$0xff] %v5171_v28  ;;  %848 = vst [vmem:[#allocation3 + $0xb8] sm:$0xff] %v5173_v29 }
 0x13f   : > { %968 = vst [vmem:[#allocation4 + $0xb8] sm:$0xff] %v5173_v29  ;;  %904 = vst [vmem:[#allocation2 + $0x38] sm:$0xff] %v856_v31 }
 0x140   : > { %905 = vst [vmem:[#allocation2 + $0x40] sm:$0xff] %v857_v32  ;;  %906 = vst [vmem:[#allocation2 + $0x48] sm:$0xff] %v858_v33 }
 0x141   : > { %907 = vst [vmem:[#allocation2 + $0x50] sm:$0xff] %v859_v34  ;;  %908 = vst [vmem:[#allocation2 + $0x58] sm:$0xff] %v860_v35 }
 0x142   : > { %909 = vst [vmem:[#allocation2 + $0x60] sm:$0xff] %v861_v36  ;;  %910 = vst [vmem:[#allocation2 + $0x68] sm:$0xff] %v862_v37 }
 0x143   : > { %911 = vst [vmem:[#allocation2 + $0x70] sm:$0xff] %v863_v38  ;;  %912 = vst [vmem:[#allocation2 + $0x78] sm:$0xff] %v864_v39 }
 0x144   : > { %913 = vst [vmem:[#allocation2 + $0x80] sm:$0xff] %v865_v40  ;;  %914 = vst [vmem:[#allocation2 + $0x88] sm:$0xff] %v866_v41 }
 0x145   : > { %915 = vst [vmem:[#allocation2 + $0x90] sm:$0xff] %v867_v42  ;;  %916 = vst [vmem:[#allocation2 + $0x98] sm:$0xff] %v868_v43 }
 0x146   : > { %917 = vst [vmem:[#allocation2 + $0xa0] sm:$0xff] %v869_v44  ;;  %918 = vst [vmem:[#allocation2 + $0xa8] sm:$0xff] %v870_v45 }
 0x147   : > { %919 = vst [vmem:[#allocation2 + $0xb0] sm:$0xff] %v871_v46  ;;  %920 = vst [vmem:[#allocation2 + $0xb8] sm:$0xff] %v872_v47 }
 0x148   : > { %921 = vst [vmem:[#allocation2 + $0xc0] sm:$0xff] %v873_v48  ;;  %922 = vst [vmem:[#allocation2 + $0xc8] sm:$0xff] %v874_v49 }
 0x149   : > { %923 = vst [vmem:[#allocation2 + $0xd0] sm:$0xff] %v875_v50  ;;  %924 = vst [vmem:[#allocation2 + $0xd8] sm:$0xff] %v876_v51 }
 0x14a   : > { %925 = vst [vmem:[#allocation2 + $0xe0] sm:$0xff] %v877_v52  ;;  %926 = vst [vmem:[#allocation2 + $0xe8] sm:$0xff] %v878_v53 }
 0x14b   : > { %927 = vst [vmem:[#allocation2 + $0xf0] sm:$0xff] %v879_v54  ;;  %928 = vst [vmem:[#allocation2 + $0xf8] sm:$0xff] %v880_v55 }
 0x14c   : > { %929 = vst [vmem:[#allocation2 + $0x100] sm:$0xff] %v881_v56  ;;  %930 = vst [vmem:[#allocation2 + $0x108] sm:$0xff] %v882_v57 }
 0x14d   : > { %931 = vst [vmem:[#allocation2 + $0x110] sm:$0xff] %v883_v58  ;;  %932 = vst [vmem:[#allocation2 + $0x118] sm:$0xff] %v884_v59 }
 0x14e   : > { %933 = vst [vmem:[#allocation2 + $0x120] sm:$0xff] %v885_v60  ;;  %934 = vst [vmem:[#allocation2 + $0x128] sm:$0xff] %v886_v61 }
 0x14f   : > { %935 = vst [vmem:[#allocation2 + $0x130] sm:$0xff] %v887_v62  ;;  %936 = vst [vmem:[#allocation2 + $0x138] sm:$0xff] %v888_v63 }
 0x150   : > { %937 = vst [vmem:[#allocation2 + $0x140] sm:$0xff] %v889_v0  ;;  %938 = vst [vmem:[#allocation2 + $0x148] sm:$0xff] %v890_v1 }
 0x151   : > { %939 = vst [vmem:[#allocation2 + $0x150] sm:$0xff] %v891_v2  ;;  %940 = vst [vmem:[#allocation2 + $0x158] sm:$0xff] %v892_v3 }
 0x152   : > { %941 = vst [vmem:[#allocation2 + $0x160] sm:$0xff] %v893_v4  ;;  %942 = vst [vmem:[#allocation2 + $0x168] sm:$0xff] %v894_v5 }
 0x153   : > { %943 = vst [vmem:[#allocation2 + $0x170] sm:$0xff] %v895_v6  ;;  %944 = vst [vmem:[#allocation2 + $0x178] sm:$0xff] %v896_v7 }
 0x154 PF: > { %s6171_s2 = sld [smem:[#allocation28_spill]]  ;;  %s6172_s20 = sld [smem:[#allocation27_spill]]  ;;  %v4029_v33 = vld [vmem:[%s5060_s16 + $0x4] ss:$8 sps:$4 sm:$0xff]   ;;  %v4027_v39 = vld [vmem:[%s5060_s16] ss:$8 sps:$4 sm:$0xff]  }
 0x155   : > { %v4060_v36 = vld [vmem:[%s5066_s3] sm:$0xff]   ;;  %v4032_v41 = vld [vmem:[%s5060_s16 + $0x14] ss:$8 sps:$4 sm:$0xff]   ;;  %v4064_v42 = vld [vmem:[%s5066_s3 + $0x8] sm:$0xff]  }
 0x156   : > { %v4030_v43 = vld [vmem:[%s5060_s16 + $0x10] ss:$8 sps:$4 sm:$0xff]   ;;  %v4035_v44 = vld [vmem:[%s5060_s16 + $0x24] ss:$8 sps:$4 sm:$0xff]   ;;  %v4033_v50 = vld [vmem:[%s5060_s16 + $0x20] ss:$8 sps:$4 sm:$0xff]  }
 0x157   : > { %v4068_v47 = vld [vmem:[%s5066_s3 + $0x10] sm:$0xff]   ;;  %v4072_v52 = vld [vmem:[%s5066_s3 + $0x18] sm:$0xff]   ;;  %v4041_v54 = vld [vmem:[%s5060_s16 + $0x44] ss:$8 sps:$4 sm:$0xff]  }
 0x158   : > { %v4038_v51 = vld [vmem:[%s5060_s16 + $0x34] ss:$8 sps:$4 sm:$0xff]   ;;  %v4036_v53 = vld [vmem:[%s5060_s16 + $0x30] ss:$8 sps:$4 sm:$0xff]   ;;  %v4039_v59 = vld [vmem:[%s5060_s16 + $0x40] ss:$8 sps:$4 sm:$0xff]  }
 0x159   : > { %v4044_v60 = vld [vmem:[%s5060_s16 + $0x54] ss:$8 sps:$4 sm:$0xff]   ;;  %v4042_v61 = vld [vmem:[%s5060_s16 + $0x50] ss:$8 sps:$4 sm:$0xff]   ;;  %v4047_v62 = vld [vmem:[%s5060_s16 + $0x64] ss:$8 sps:$4 sm:$0xff]  }
 0x15a   : > { %p969_p2 = scmp.lt.s32.totalorder %s6171_s2, 0  ;;  %s970_s28 = ssub.s32 0, %s6171_s2  ;;  %v4045_v2 = vld [vmem:[%s5060_s16 + $0x60] ss:$8 sps:$4 sm:$0xff]   ;;  %v4050_v3 = vld [vmem:[%s5060_s16 + $0x74] ss:$8 sps:$4 sm:$0xff]  }
 0x15b   : > { %s3208_s4 = smin.u32 %s6171_s2, %s970_s28  ;;  %s5239_s15 = sshll.u32 %s6172_s20, 7  ;;  %v4048_v4 = vld [vmem:[%s5060_s16 + $0x70] ss:$8 sps:$4 sm:$0xff]   ;;  %v4053_v5 = vld [vmem:[%s5060_s16 + $0x84] ss:$8 sps:$4 sm:$0xff]  }
 0x15c   : > { %s972_s26 = sand.u32 1, %s3208_s4   ;;  %s997_s14 = sshra.s32 %s5239_s15, 3 }
 0x15d   : > { %s973_s7 = ssub.s32 0, %s972_s26  ;;  %s3336_s9 = smul.u32 12, %s997_s14 }
 0x15e   : > { %s6217_s7 = smov (!%p969_p2, %s973_s7), %s972_s26  ;;  %s5333_s1 = scalar_lea.vmem [#allocation2], %s5239_s15 }
 0x15f   : > { %p3210_p12 = scmp.lt.s32.totalorder %s6217_s7, 0  ;;  %s979_s18 = sadd.s32 2, %s6217_s7 }
 0x160   : > { %s5242_s25 = scalar_lea.vmem [#allocation8], %s3336_s9  ;;  %s982_s22 = sadd.s32 1, %s6171_s2 }
 0x161   : > { %s6219_s18 = smov (!%p3210_p12, %s979_s18), %s6217_s7  ;;  %v3997_v8 = vld [vmem:[%s5242_s25 + $0x4] ss:$12 sps:$4 sm:$0xff]   ;;  %v3998_v20 = vld [vmem:[%s5242_s25 + $0x8] ss:$12 sps:$4 sm:$0xff]   ;;  %v3995_v35 = vld [vmem:[%s5242_s25] ss:$12 sps:$4 sm:$0xff]  }
 0x162   : > { %s981_s0 = smul.u32 384, %s6219_s18  ;;  %1222 = vmatprep.mubr.bf16.mxu0 %v3997_v8  ;;  %3530 = vmatprep.mubr.bf16.mxu1 %v3998_v20  ;;  %v3999_v37 = vld [vmem:[%s5242_s25 + $0x20] ss:$12 sps:$4 sm:$0xff]   ;;  %v4000_v38 = vld [vmem:[%s5242_s25 + $0x1c] ss:$12 sps:$4 sm:$0xff]   ;;  %p983_p3 = scmp.lt.s32.totalorder %s982_s22, 0 }
 0x163   : > { %v4006_v40 = vld [vmem:[%s5242_s25 + $0x38] ss:$12 sps:$4 sm:$0xff]   ;;  %v4007_v46 = vld [vmem:[%s5242_s25 + $0x50] ss:$12 sps:$4 sm:$0xff]   ;;  %v4003_v48 = vld [vmem:[%s5242_s25 + $0x34] ss:$12 sps:$4 sm:$0xff]  }
 0x164   : > { %s1034_s17 = sshra.s32 %s981_s0, 4  ;;  %v4002_v45 = vld [vmem:[%s5242_s25 + $0x18] ss:$12 sps:$4 sm:$0xff]   ;;  %v4014_v49 = vld [vmem:[%s5242_s25 + $0x68] ss:$12 sps:$4 sm:$0xff]   ;;  %s2507_s18 = sshra.s32 %s5239_s15, 4 }
 0x165   : > { %s3216_s29 = sshll.u32 %s1034_s17, 3  ;;  %v4005_v55 = vld [vmem:[%s5242_s25 + $0x30] ss:$12 sps:$4 sm:$0xff]   ;;  %v4015_v56 = vld [vmem:[%s5242_s25 + $0x80] ss:$12 sps:$4 sm:$0xff]   ;;  %s3324_s9 = sshll.u32 %s2507_s18, 3 }
 0x166   : > { %s5245_s11 = scalar_lea.vmem [#allocation3], %s3216_s29  ;;  %v4008_v57 = vld [vmem:[%s5242_s25 + $0x4c] ss:$12 sps:$4 sm:$0xff]   ;;  %v4010_v63 = vld [vmem:[%s5242_s25 + $0x48] ss:$12 sps:$4 sm:$0xff]   ;;  %s5821_s29 = scalar_lea.vmem [#allocation4], %s3324_s9 }
 0x167   : > { %v1046_v9 = vld [vmem:[%s5245_s11 + $0x40] sm:$0xff]  ;;  %v1047_v12 = vld [vmem:[%s5245_s11 + $0x48] sm:$0xff]  ;;  %v1048_v15 = vld [vmem:[%s5245_s11 + $0x50] sm:$0xff]  ;;  %p3325_p9 = scmp.ne.s32.totalorder %s6171_s2, 4 }
 0x168   : > { %v1038_v10 = vld [vmem:[%s5245_s11] sm:$0xff]  ;;  %3338 = vmatprep.subr.bf16.mxu0 %v1046_v9  ;;  %v1055_v13 = vld [vmem:[%s5245_s11 + $0x88] sm:$0xff]  ;;  %v1056_v16 = vld [vmem:[%s5245_s11 + $0x90] sm:$0xff] }
 0x169   : > { %v1054_v11 = vld [vmem:[%s5245_s11 + $0x80] sm:$0xff]  ;;  %3339 = vmatpush3.bf16.msra.mxu0 %v1038_v10  ;;  %v1039_v14 = vld [vmem:[%s5245_s11 + $0x8] sm:$0xff]  ;;  %v1040_v17 = vld [vmem:[%s5245_s11 + $0x10] sm:$0xff] }
 0x16a   : > { %3514 = vmatprep.subr.bf16.mxu1 %v1054_v11  ;;  %3340 = vmatprep.subr.bf16.mxu0 %v1047_v12  ;;  %v1049_v18 = vld [vmem:[%s5245_s11 + $0x58] sm:$0xff]  ;;  %v1050_v22 = vld [vmem:[%s5245_s11 + $0x60] sm:$0xff]  ;;  %v1051_v25 = vld [vmem:[%s5245_s11 + $0x68] sm:$0xff] }
 0x16b   : > { %3515 = vmatpush3.bf16.msra.mxu1 %v1054_v11  ;;  %v1057_v19 = vld [vmem:[%s5245_s11 + $0x98] sm:$0xff]  ;;  %v1058_v23 = vld [vmem:[%s5245_s11 + $0xa0] sm:$0xff]  ;;  %v1059_v26 = vld [vmem:[%s5245_s11 + $0xa8] sm:$0xff] }
 0x16c   : > { %3516 = vmatprep.subr.bf16.mxu1 %v1055_v13  ;;  %v1041_v21 = vld [vmem:[%s5245_s11 + $0x18] sm:$0xff]  ;;  %v1042_v24 = vld [vmem:[%s5245_s11 + $0x20] sm:$0xff]  ;;  %v1043_v27 = vld [vmem:[%s5245_s11 + $0x28] sm:$0xff] }
 0x16d   : > { %3341 = vmatpush3.bf16.msra.mxu0 %v1039_v14  ;;  %v1052_v28 = vld [vmem:[%s5245_s11 + $0x70] sm:$0xff]  ;;  %v1053_v31 = vld [vmem:[%s5245_s11 + $0x78] sm:$0xff]  ;;  %v4013_v6 = vld [vmem:[%s5242_s25 + $0x60] ss:$12 sps:$4 sm:$0xff]  }
 0x16e   : > { %3342 = vmatprep.subr.bf16.mxu0 %v1048_v15  ;;  %v1060_v29 = vld [vmem:[%s5245_s11 + $0xb0] sm:$0xff]  ;;  %v1061_v32 = vld [vmem:[%s5245_s11 + $0xb8] sm:$0xff]  ;;  %v4051_v8 = vld [vmem:[%s5060_s16 + $0x80] ss:$8 sps:$4 sm:$0xff]  }
 0x16f   : > { %3517 = vmatpush3.bf16.msra.mxu1 %v1055_v13  ;;  %v1044_v30 = vld [vmem:[%s5245_s11 + $0x30] sm:$0xff]  ;;  %v1045_v34 = vld [vmem:[%s5245_s11 + $0x38] sm:$0xff]  ;;  %v4059_v11 = vld [vmem:[%s5060_s16 + $0xa4] ss:$8 sps:$4 sm:$0xff]  }
 0x170   : > { %3518 = vmatprep.subr.bf16.mxu1 %v1056_v16  ;;  %v4022_v58 = vld [vmem:[%s5242_s25 + $0x98] ss:$12 sps:$4 sm:$0xff]   ;;  %v4023_v0 = vld [vmem:[%s5242_s25 + $0xb0] ss:$12 sps:$4 sm:$0xff]   ;;  %v4019_v13 = vld [vmem:[%s5242_s25 + $0x94] ss:$12 sps:$4 sm:$0xff]  }
 0x171   : > { %3343 = vmatpush3.bf16.msra.mxu0 %v1040_v17  ;;  %v4011_v1 = vld [vmem:[%s5242_s25 + $0x64] ss:$12 sps:$4 sm:$0xff]   ;;  %v4016_v7 = vld [vmem:[%s5242_s25 + $0x7c] ss:$12 sps:$4 sm:$0xff]  }
 0x172   : > { %3344 = vmatprep.subr.bf16.mxu0 %v1049_v18  ;;  %v4056_v9 = vld [vmem:[%s5060_s16 + $0x94] ss:$8 sps:$4 sm:$0xff]   ;;  %v4054_v10 = vld [vmem:[%s5060_s16 + $0x90] ss:$8 sps:$4 sm:$0xff]   ;;  %v4057_v14 = vld [vmem:[%s5060_s16 + $0xa0] ss:$8 sps:$4 sm:$0xff]  }
 0x173   : > { %3519 = vmatpush3.bf16.msra.mxu1 %v1056_v16  ;;  %v4018_v12 = vld [vmem:[%s5242_s25 + $0x78] ss:$12 sps:$4 sm:$0xff]   ;;  %v4063_v15 = vld [vmem:[%s5060_s16 + $0xb4] ss:$8 sps:$4 sm:$0xff]   ;;  %v4065_v20 = vld [vmem:[%s5060_s16 + $0xc0] ss:$8 sps:$4 sm:$0xff]  }
 0x174   : > { %3520 = vmatprep.subr.bf16.mxu1 %v1057_v19  ;;  %v4061_v16 = vld [vmem:[%s5060_s16 + $0xb0] ss:$8 sps:$4 sm:$0xff]   ;;  %v4067_v17 = vld [vmem:[%s5060_s16 + $0xc4] ss:$8 sps:$4 sm:$0xff]  }
 0x175   : > { %3345 = vmatpush3.bf16.msra.mxu0 %v1041_v21  ;;  %v4021_v18 = vld [vmem:[%s5242_s25 + $0x90] ss:$12 sps:$4 sm:$0xff]  }
 0x176   : > { %3346 = vmatprep.subr.bf16.mxu0 %v1050_v22  ;;  %v4071_v21 = vld [vmem:[%s5060_s16 + $0xd4] ss:$8 sps:$4 sm:$0xff]   ;;  %v4069_v22 = vld [vmem:[%s5060_s16 + $0xd0] ss:$8 sps:$4 sm:$0xff]  }
 0x177   : > { %3521 = vmatpush3.bf16.msra.mxu1 %v1057_v19  ;;  %v4024_v19 = vld [vmem:[%s5242_s25 + $0xac] ss:$12 sps:$4 sm:$0xff]  }
 0x178   : > { %3522 = vmatprep.subr.bf16.mxu1 %v1058_v23 }
 0x179   : > { %3347 = vmatpush3.bf16.msra.mxu0 %v1042_v24  ;;  %v4075_v24 = vld [vmem:[%s5060_s16 + $0xe4] ss:$8 sps:$4 sm:$0xff]  }
 0x17a   : > { %3348 = vmatprep.subr.bf16.mxu0 %v1051_v25  ;;  %v4076_v25 = vld [vmem:[%s5066_s3 + $0x20] sm:$0xff]  }
 0x17b   : > { %3523 = vmatpush3.bf16.msra.mxu1 %v1058_v23  ;;  %v4026_v23 = vld [vmem:[%s5242_s25 + $0xa8] ss:$12 sps:$4 sm:$0xff]  }
 0x17c   : > { %3524 = vmatprep.subr.bf16.mxu1 %v1059_v26 }
 0x17d   : > { %3349 = vmatpush3.bf16.msra.mxu0 %v1043_v27  ;;  %v4079_v27 = vld [vmem:[%s5060_s16 + $0xf4] ss:$8 sps:$4 sm:$0xff]  }
 0x17e   : > { %3350 = vmatprep.subr.bf16.mxu0 %v1052_v28  ;;  %v4080_v28 = vld [vmem:[%s5066_s3 + $0x28] sm:$0xff]  }
 0x17f   : > { %3525 = vmatpush3.bf16.msra.mxu1 %v1059_v26  ;;  %v4073_v26 = vld [vmem:[%s5060_s16 + $0xe0] ss:$8 sps:$4 sm:$0xff]  }
 0x180   : > { %3526 = vmatprep.subr.bf16.mxu1 %v1060_v29 }
 0x181   : > { %3351 = vmatpush3.bf16.msra.mxu0 %v1044_v30  ;;  %v5336_v30 = vld [vmem:[%s5333_s1] sm:$0xff] }
 0x182   : > { %3352 = vmatprep.subr.bf16.mxu0 %v1053_v31  ;;  %v5339_v31 = vld [vmem:[%s5333_s1 + $0x8] sm:$0xff] }
 0x183   : > { %3527 = vmatpush3.bf16.msra.mxu1 %v1060_v29  ;;  %v4077_v29 = vld [vmem:[%s5060_s16 + $0xf0] ss:$8 sps:$4 sm:$0xff]  }
 0x184   : > { %3528 = vmatprep.subr.bf16.mxu1 %v1061_v32 }
 0x185   : > { %3353 = vmatpush3.bf16.msra.mxu0 %v1045_v34  ;;  %v4082_v34 = vld [vmem:[%s5066_s3 + $0x38] sm:$0xff]  }
 0x186   : > { %1621 = vmatprep.subr.bf16.mxu0 %v4029_v33  ;;  %v4081_v33 = vld [vmem:[%s5066_s3 + $0x30] sm:$0xff]  }
 0x187   : > { %3529 = vmatpush3.bf16.msra.mxu1 %v1061_v32  ;;  %v5343_v32 = vpack.c.bf16 %v5339_v31, %v5336_v30 }
 0x188   : > { %3546 = vmatprep.subr.bf16.mxu1 %v4060_v36  ;;  %1223 = vmatmul.mubr.bf16.vlgmr.msra.gmra.mrb[0].mxu0 %v3995_v35  ;;  %v4083_v35 = vld [vmem:[%s5068_s27] sm:$0xff]  }
 0x189   : > { %1230 = vmatprep.mubr.bf16.mxu0 %v4000_v38  ;;  %1622 = vmatpush1.bf16.msra.mxu0 %v4027_v39 }
 0x18a   : > { %3531 = vmatmul.mubr.bf16.vlgmr.msra.gmra.mrb[0].mxu1 %v3999_v37  ;;  %1623 = vmatprep.subr.bf16.mxu0 %v4032_v41 }
 0x18b   : > { %3534 = vmatprep.mubr.bf16.mxu1 %v4006_v40  ;;  %3547 = vmatpush3.bf16.msra.mxu1 %v4060_v36 }
 0x18c   : > { %3548 = vmatprep.subr.bf16.mxu1 %v4064_v42 }
 0x18d   : > { %1624 = vmatpush1.bf16.msra.mxu0 %v4030_v43 }
 0x18e   : > { %1625 = vmatprep.subr.bf16.mxu0 %v4035_v44 }
 0x18f   : > { %3549 = vmatpush3.bf16.msra.mxu1 %v4064_v42 }
 0x190   : > { %3550 = vmatprep.subr.bf16.mxu1 %v4068_v47  ;;  %1231 = vmatmul.mubr.bf16.gmra.mrb[4].mxu0 %v4002_v45 }
 0x191   : > { %1238 = vmatprep.mubr.bf16.mxu0 %v4003_v48  ;;  %1626 = vmatpush1.bf16.msra.mxu0 %v4033_v50  ;;  %v5353_v48 = vld [vmem:[%s5333_s1 + $0x18] sm:$0xff] }
 0x192   : > { %3535 = vmatmul.mubr.bf16.gmra.mrb[4].mxu1 %v4007_v46  ;;  %1627 = vmatprep.subr.bf16.mxu0 %v4038_v51 }
 0x193   : > { %3538 = vmatprep.mubr.bf16.mxu1 %v4014_v49  ;;  %3551 = vmatpush3.bf16.msra.mxu1 %v4068_v47  ;;  %v5350_v47 = vld [vmem:[%s5333_s1 + $0x10] sm:$0xff] }
 0x194   : > { %3552 = vmatprep.subr.bf16.mxu1 %v4072_v52  ;;  %v5357_v50 = vpack.c.bf16 %v5353_v48, %v5350_v47 }
 0x195   : > { %1628 = vmatpush1.bf16.msra.mxu0 %v4036_v53 }
 0x196   : > { %1629 = vmatprep.subr.bf16.mxu0 %v4041_v54 }
 0x197   : > { %3553 = vmatpush3.bf16.msra.mxu1 %v4072_v52 }
 0x198   : > { %1239 = vmatmul.mubr.bf16.gmra.mrb[8].mxu0 %v4005_v55  ;;  %3554 = vmatprep.subr.bf16.mxu1 %v4076_v25 }
 0x199   : > { %1246 = vmatprep.mubr.bf16.mxu0 %v4008_v57  ;;  %1630 = vmatpush1.bf16.msra.mxu0 %v4039_v59 }
 0x19a   : > { %3539 = vmatmul.mubr.bf16.gmra.mrb[8].mxu1 %v4015_v56  ;;  %1631 = vmatprep.subr.bf16.mxu0 %v4044_v60 }
 0x19b   : > { %3542 = vmatprep.mubr.bf16.mxu1 %v4022_v58  ;;  %3555 = vmatpush3.bf16.msra.mxu1 %v4076_v25 }
 0x19c   : > { %3556 = vmatprep.subr.bf16.mxu1 %v4080_v28 }
 0x19d   : > { %1632 = vmatpush1.bf16.msra.mxu0 %v4042_v61 }
 0x19e   : > { %1633 = vmatprep.subr.bf16.mxu0 %v4047_v62 }
 0x19f   : > { %3557 = vmatpush3.bf16.msra.mxu1 %v4080_v28 }
 0x1a0   : > { %1247 = vmatmul.mubr.bf16.gmra.mrb[12].mxu0 %v4010_v63  ;;  %3558 = vmatprep.subr.bf16.mxu1 %v4081_v33  ;;  %v5361_v63 = vld [vmem:[%s5333_s1 + $0x20] sm:$0xff] }
 0x1a1   : > { %1254 = vmatprep.mubr.bf16.mxu0 %v4011_v1  ;;  %1634 = vmatpush1.bf16.msra.mxu0 %v4045_v2 }
 0x1a2   : > { %3543 = vmatmul.mubr.bf16.gmra.mrb[12].mxu1 %v4023_v0  ;;  %1635 = vmatprep.subr.bf16.mxu0 %v4050_v3  ;;  %v5364_v0 = vld [vmem:[%s5333_s1 + $0x28] sm:$0xff] }
 0x1a3   : > { %3559 = vmatpush3.bf16.msra.mxu1 %v4081_v33  ;;  %v5368_v2 = vpack.c.bf16 %v5364_v0, %v5361_v63 }
 0x1a4   : > { %3560 = vmatprep.subr.bf16.mxu1 %v4082_v34 }
 0x1a5   : > { %1636 = vmatpush1.bf16.msra.mxu0 %v4048_v4 }
 0x1a6   : > { %1637 = vmatprep.subr.bf16.mxu0 %v4053_v5 }
 0x1a7   : > { %3561 = vmatpush3.bf16.msra.mxu1 %v4082_v34 }
 0x1a8   : > { %1255 = vmatmul.mubr.bf16.gmra.mrb[16].mxu0 %v4013_v6  ;;  %3578 = vmatprep.subr.bf16.mxu1 %v4083_v35  ;;  %v4084_v6 = vld [vmem:[%s5068_s27 + $0x8] sm:$0xff]  }
 0x1a9   : > { %1262 = vmatprep.mubr.bf16.mxu0 %v4016_v7  ;;  %1638 = vmatpush1.bf16.msra.mxu0 %v4051_v8 }
 0x1aa   : > { %1639 = vmatprep.subr.bf16.mxu0 %v4056_v9 }
 0x1ad   : > { %1640 = vmatpush1.bf16.msra.mxu0 %v4054_v10 }
 0x1ae   : > { %1641 = vmatprep.subr.bf16.mxu0 %v4059_v11 }
 0x1b0   : > { %1263 = vmatmul.mubr.bf16.gmra.mrb[20].mxu0 %v4018_v12 }
 0x1b1   : > { %1270 = vmatprep.mubr.bf16.mxu0 %v4019_v13  ;;  %1642 = vmatpush1.bf16.msra.mxu0 %v4057_v14 }
 0x1b2   : > { %1643 = vmatprep.subr.bf16.mxu0 %v4063_v15 }
 0x1b5   : > { %1644 = vmatpush1.bf16.msra.mxu0 %v4061_v16  ;;  %v5377_v16 = vld [vmem:[%s5333_s1 + $0x30] sm:$0xff] }
 0x1b6   : > { %1645 = vmatprep.subr.bf16.mxu0 %v4067_v17  ;;  %v5380_v17 = vld [vmem:[%s5333_s1 + $0x38] sm:$0xff] }
 0x1b8   : > { %1271 = vmatmul.mubr.bf16.gmra.mrb[24].mxu0 %v4021_v18  ;;  %v4085_v18 = vld [vmem:[%s5068_s27 + $0x10] sm:$0xff]  }
 0x1b9   : > { %1278 = vmatprep.mubr.bf16.mxu0 %v4024_v19  ;;  %1646 = vmatpush1.bf16.msra.mxu0 %v4065_v20  ;;  %v5385_v20 = vpack.c.bf16 %v5380_v17, %v5377_v16 }
 0x1ba   : > { %1647 = vmatprep.subr.bf16.mxu0 %v4071_v21 }
 0x1bd   : > { %1648 = vmatpush1.bf16.msra.mxu0 %v4069_v22 }
 0x1be   : > { %1649 = vmatprep.subr.bf16.mxu0 %v4075_v24  ;;  %v4086_v24 = vld [vmem:[%s5068_s27 + $0x18] sm:$0xff]  }
 0x1c0   : > { %1279 = vmatmul.mubr.bf16.gmra.mrb[28].mxu0 %v4026_v23 }
 0x1c1   : > { %1650 = vmatpush1.bf16.msra.mxu0 %v4073_v26  ;;  %1653 = vmatprep.mubr.bf16.mxu0 %v5343_v32 }
 0x1c2   : > { %1651 = vmatprep.subr.bf16.mxu0 %v4079_v27 }
 0x1c5   : > { %1652 = vmatpush1.bf16.msra.mxu0 %v4077_v29 }
 0x25b   : > { %v3354_v36 = vpop.f32.mrb[0].mxu0 }
 0x25c   : > { %v3355_v38 = vpop.f32.mrb[1].mxu0 }
 0x25d   : > { %v3532_v37 = vpop.f32.mrb[0].mxu1  ;;  %v3356_v40 = vadd.f32 %v3355_v38, %v3354_v36  ;;  %v3357_v41 = vpop.f32.mrb[2].mxu0  ;;  %v1394_v38 = vld [vmem:[%s5333_s1 + $0x48] sm:$0xff] }
 0x25e   : > { %v1321_v39 = vpop.f32.mrb[1].mxu1  ;;  %v3358_v43 = vpop.f32.mrb[3].mxu0 }
 0x25f   : > { %v3533_v42 = vpop.f32.mrb[2].mxu1  ;;  %v3359_v45 = vadd.f32 %v3358_v43, %v3357_v41  ;;  %v1322_v46 = vadd.f32 %v3356_v40, %v1321_v39  ;;  %v4087_v39 = vld [vmem:[%s5068_s27 + $0x20] sm:$0xff]  }
 0x260   : > { %v1324_v44 = vpop.f32.mrb[3].mxu1 }
 0x261   : > { %v1325_v49 = vadd.f32 %v3359_v45, %v1324_v44  ;;  %v4088_v44 = vld [vmem:[%s5068_s27 + $0x28] sm:$0xff]  }
 0x263   : > { %v1401_v51 = vpack.c.bf16 %v1325_v49, %v1322_v46  ;;  %v3360_v52 = vpop.f32.mrb[4].mxu0 }
 0x264   : > { %v3361_v54 = vpop.f32.mrb[5].mxu0 }
 0x265   : > { %v3536_v53 = vpop.f32.mrb[4].mxu1  ;;  %v3362_v56 = vadd.f32 %v3361_v54, %v3360_v52  ;;  %v3363_v57 = vpop.f32.mrb[6].mxu0  ;;  %1654 = vmatmul.mubr.bf16.vlgmr.msra.gmra.mrb[32].mxu0 %v1401_v51  ;;  %3562 = vmatprep.mubr.bf16.mxu1 %v1401_v51  ;;  %v5405_v54 = vld [vmem:[%s5333_s1 + $0x50] sm:$0xff] }
 0x266   : > { %v1337_v55 = vpop.f32.mrb[5].mxu1  ;;  %v3364_v59 = vpop.f32.mrb[7].mxu0  ;;  %1663 = vmatprep.mubr.bf16.mxu0 %v5357_v50 }
 0x267   : > { %v3537_v58 = vpop.f32.mrb[6].mxu1  ;;  %v1330_v61 = vadd.f32 %v3532_v37, %v3362_v56  ;;  %v3365_v62 = vadd.f32 %v3364_v59, %v3363_v57  ;;  %v1393_v37 = vld [vmem:[%s5333_s1 + $0x40] sm:$0xff]  ;;  %v4089_v56 = vld [vmem:[%s5068_s27 + $0x30] sm:$0xff]  }
 0x268   : > { %v1340_v60 = vpop.f32.mrb[7].mxu1  ;;  %v5400_v41 = vpack.c.bf16 %v1394_v38, %v1393_v37 }
 0x269   : > { %v1333_v1 = vadd.f32 %v3533_v42, %v3365_v62 }
 0x26b   : > { %v3366_v3 = vpop.f32.mrb[8].mxu0  ;;  %v1402_v4 = vpack.c.bf16 %v1333_v1, %v1330_v61  ;;  %v4090_v61 = vld [vmem:[%s5068_s27 + $0x38] sm:$0xff]   ;;  %s6186_s27 = sld [smem:[#allocation50_spill]] (!%p3325_p9) }
 0x26c   : > { %v3367_v7 = vpop.f32.mrb[9].mxu0 }
 0x26d   : > { %v5370_v5 = vpop.f32.mrb[8].mxu1  ;;  %v3368_v9 = vadd.f32 %v3367_v7, %v3366_v3  ;;  %v3369_v10 = vpop.f32.mrb[10].mxu0  ;;  %1664 = vmatmul.mubr.bf16.gmra.mrb[36].mxu0 %v1402_v4  ;;  %3563 = vmatmul.mubr.bf16.vlgmr.msra.gmra.mrb[16].mxu1 %v1402_v4 }
 0x26e   : > { %v1353_v8 = vpop.f32.mrb[9].mxu1  ;;  %v3370_v12 = vpop.f32.mrb[11].mxu0  ;;  %1673 = vmatprep.mubr.bf16.mxu0 %v5368_v2  ;;  %3579 = vmatpush3.bf16.msra.mxu1 %v4083_v35 }
 0x26f   : > { %v5373_v11 = vpop.f32.mrb[10].mxu1  ;;  %v3371_v14 = vadd.f32 %v3370_v12, %v3369_v10  ;;  %v1338_v15 = vadd.f32 %v3368_v9, %v1337_v55  ;;  %3580 = vmatprep.subr.bf16.mxu1 %v4084_v6  ;;  %v5408_v55 = vld [vmem:[%s5333_s1 + $0x58] sm:$0xff]  ;;  %v1398_v9 = vld [vmem:[%s5333_s1 + $0x68] sm:$0xff] }
 0x270   : > { %v1356_v13 = vpop.f32.mrb[11].mxu1  ;;  %6173 = vst [vmem:[#allocation38_spill] sm:$0xff] %v5408_v55 }
 0x271   : > { %v1341_v19 = vadd.f32 %v3371_v14, %v1340_v60 }
 0x272   : > { %3581 = vmatpush3.bf16.msra.mxu1 %v4084_v6 }
 0x273   : > { %v1403_v21 = vpack.c.bf16 %v1341_v19, %v1338_v15  ;;  %v3372_v22 = vpop.f32.mrb[12].mxu0  ;;  %3582 = vmatprep.subr.bf16.mxu1 %v4085_v18 }
 0x274   : > { %v3373_v25 = vpop.f32.mrb[13].mxu0 }
 0x275   : > { %v5387_v23 = vpop.f32.mrb[12].mxu1  ;;  %v3374_v27 = vadd.f32 %v3373_v25, %v3372_v22  ;;  %v3375_v28 = vpop.f32.mrb[14].mxu0  ;;  %1674 = vmatmul.mubr.bf16.gmra.mrb[40].mxu0 %v1403_v21  ;;  %3566 = vmatprep.mubr.bf16.mxu1 %v1403_v21  ;;  %v5426_v25 = vld [vmem:[%s5333_s1 + $0x78] sm:$0xff] }
 0x276   : > { %v5390_v26 = vpop.f32.mrb[13].mxu1  ;;  %v3376_v33 = vpop.f32.mrb[15].mxu0  ;;  %1683 = vmatprep.mubr.bf16.mxu0 %v5385_v20  ;;  %3583 = vmatpush3.bf16.msra.mxu1 %v4085_v18  ;;  %6176 = vst [vmem:[#allocation41_spill] sm:$0xff] %v5426_v25 }
 0x277   : > { %v5392_v29 = vpop.f32.mrb[14].mxu1  ;;  %v1346_v35 = vadd.f32 %v3536_v53, %v3374_v27  ;;  %v3377_v36 = vadd.f32 %v3376_v33, %v3375_v28  ;;  %3584 = vmatprep.subr.bf16.mxu1 %v4086_v24 }
 0x278   : > { %v5395_v34 = vpop.f32.mrb[15].mxu1 }
 0x279   : > { %v1349_v40 = vadd.f32 %v3537_v58, %v3377_v36  ;;  %v1414_v58 = vpack.c.bf16 %v5408_v55, %v5405_v54 }
 0x27a   : > { %3585 = vmatpush3.bf16.msra.mxu1 %v4086_v24  ;;  %v5423_v24 = vld [vmem:[%s5333_s1 + $0x70] sm:$0xff] }
 0x27b   : > { %v3378_v42 = vpop.f32.mrb[16].mxu0  ;;  %v1404_v43 = vpack.c.bf16 %v1349_v40, %v1346_v35  ;;  %3586 = vmatprep.subr.bf16.mxu1 %v4087_v39  ;;  %6175 = vst [vmem:[#allocation40_spill] sm:$0xff] %v5423_v24  ;;  %v1416_v27 = vpack.c.bf16 %v5426_v25, %v5423_v24 }
 0x27c   : > { %v3379_v45 = vpop.f32.mrb[17].mxu0 }
 0x27d   : > { %v3380_v46 = vadd.f32 %v3379_v45, %v3378_v42  ;;  %v3381_v49 = vpop.f32.mrb[18].mxu0  ;;  %1684 = vmatmul.mubr.bf16.gmra.mrb[44].mxu0 %v1404_v43  ;;  %3567 = vmatmul.mubr.bf16.gmra.mrb[20].mxu1 %v1404_v43 }
 0x27e   : > { %v3382_v51 = vpop.f32.mrb[19].mxu0  ;;  %1693 = vmatprep.mubr.bf16.mxu0 %v5400_v41  ;;  %3587 = vmatpush3.bf16.msra.mxu1 %v4087_v39 }
 0x27f   : > { %v3383_v52 = vadd.f32 %v3382_v51, %v3381_v49  ;;  %v1354_v53 = vadd.f32 %v3380_v46, %v1353_v8  ;;  %3588 = vmatprep.subr.bf16.mxu1 %v4088_v44  ;;  %v5416_v8 = vld [vmem:[%s5333_s1 + $0x60] sm:$0xff] }
 0x280   : > { %6174 = vst [vmem:[#allocation39_spill] sm:$0xff] %v5416_v8  ;;  %v1415_v12 = vpack.c.bf16 %v1398_v9, %v5416_v8 }
 0x281   : > { %v1357_v57 = vadd.f32 %v3383_v52, %v1356_v13 }
 0x282   : > { %3589 = vmatpush3.bf16.msra.mxu1 %v4088_v44 }
 0x283   : > { %v1405_v59 = vpack.c.bf16 %v1357_v57, %v1354_v53  ;;  %v3384_v60 = vpop.f32.mrb[20].mxu0  ;;  %3590 = vmatprep.subr.bf16.mxu1 %v4089_v56 }
 0x284   : > { %v3385_v62 = vpop.f32.mrb[21].mxu0 }
 0x285   : > { %v3386_v1 = vadd.f32 %v3385_v62, %v3384_v60  ;;  %v3387_v3 = vpop.f32.mrb[22].mxu0  ;;  %1694 = vmatmul.mubr.bf16.gmra.mrb[48].mxu0 %v1405_v59  ;;  %3570 = vmatprep.mubr.bf16.mxu1 %v1405_v59 }
 0x286   : > { %v3388_v4 = vpop.f32.mrb[23].mxu0  ;;  %1703 = vmatprep.mubr.bf16.mxu0 %v1414_v58  ;;  %3591 = vmatpush3.bf16.msra.mxu1 %v4089_v56 }
 0x287   : > { %v1362_v6 = vadd.f32 %v5370_v5, %v3386_v1  ;;  %v3389_v7 = vadd.f32 %v3388_v4, %v3387_v3  ;;  %3592 = vmatprep.subr.bf16.mxu1 %v4090_v61 }
 0x289   : > { %v1365_v10 = vadd.f32 %v5373_v11, %v3389_v7 }
 0x28a   : > { %3593 = vmatpush3.bf16.msra.mxu1 %v4090_v61 }
 0x28b   : > { %v3390_v13 = vpop.f32.mrb[24].mxu0  ;;  %v1406_v14 = vpack.c.bf16 %v1365_v10, %v1362_v6 }
 0x28c   : > { %v3391_v15 = vpop.f32.mrb[25].mxu0 }
 0x28d   : > { %v3392_v18 = vadd.f32 %v3391_v15, %v3390_v13  ;;  %v3393_v19 = vpop.f32.mrb[26].mxu0  ;;  %1704 = vmatmul.mubr.bf16.gmra.mrb[52].mxu0 %v1406_v14  ;;  %3571 = vmatmul.mubr.bf16.gmra.mrb[24].mxu1 %v1406_v14 }
 0x28e   : > { %v3394_v5 = vpop.f32.mrb[27].mxu0  ;;  %1713 = vmatprep.mubr.bf16.mxu0 %v1415_v12 }
 0x28f   : > { %v3395_v21 = vadd.f32 %v3394_v5, %v3393_v19  ;;  %v1370_v22 = vadd.f32 %v3392_v18, %v5390_v26 }
 0x291   : > { %v1373_v11 = vadd.f32 %v3395_v21, %v5395_v34 }
 0x293   : > { %v1407_v28 = vpack.c.bf16 %v1373_v11, %v1370_v22  ;;  %v3396_v33 = vpop.f32.mrb[28].mxu0 }
 0x294   : > { %v3397_v35 = vpop.f32.mrb[29].mxu0 }
 0x295   : > { %v3398_v36 = vadd.f32 %v3397_v35, %v3396_v33  ;;  %v3399_v37 = vpop.f32.mrb[30].mxu0  ;;  %1714 = vmatmul.mubr.bf16.gmra.mrb[56].mxu0 %v1407_v28  ;;  %3574 = vmatprep.mubr.bf16.mxu1 %v1407_v28 }
 0x296   : > { %v3400_v38 = vpop.f32.mrb[31].mxu0  ;;  %1723 = vmatprep.mubr.bf16.mxu0 %v1416_v27 }
 0x297   : > { %v1378_v26 = vadd.f32 %v5387_v23, %v3398_v36  ;;  %v3401_v39 = vadd.f32 %v3400_v38, %v3399_v37  ;;  %v1451_v23 = vlaneseq }
 0x299   : > { %v1381_v40 = vadd.f32 %v5392_v29, %v3401_v39  ;;  %v1452_v34 = vshrl.u32 %v1451_v23, 7  ;;  %v1449_v29 = vld [vmem:[%s5095_s21] sm:$0x3] }
 0x29b   : > { %v1408_v42 = vpack.c.bf16 %v1381_v40, %v1378_v26  ;;  %v1453_v43 = vsub.s32 0, %v1452_v34  ;;  %v1457_v44 = vsub.s32 1, %v1452_v34 }
 0x29d   : > { %1724 = vmatmul.mubr.bf16.gmra.mrb[60].mxu0 %v1408_v42  ;;  %3575 = vmatmul.mubr.bf16.gmra.mrb[28].mxu1 %v1408_v42  ;;  %v5439_v45 = vrot.slane %v1449_v29, %v1453_v43  ;;  %v5441_v46 = vrot.slane %v1449_v29, %v1457_v44 }
 0x29e   : > { %3594 = vmatprep.mubr.bf16.mxu1 %v5343_v32 }
 0x2a5   : > { %3595 = vmatmul.mubr.bf16.vlgmr.msra.gmra.mrb[32].mxu1 %v5357_v50 }
 0x2a6   : > { %3598 = vmatprep.mubr.bf16.mxu1 %v5368_v2 }
 0x2ad   : > { %3599 = vmatmul.mubr.bf16.gmra.mrb[36].mxu1 %v5385_v20 }
 0x2ae   : > { %3602 = vmatprep.mubr.bf16.mxu1 %v5400_v41 }
 0x2b5   : > { %3603 = vmatmul.mubr.bf16.gmra.mrb[40].mxu1 %v1414_v58 }
 0x2b6   : > { %3606 = vmatprep.mubr.bf16.mxu1 %v1415_v12 }
 0x2bd   : > { %3607 = vmatmul.mubr.bf16.gmra.mrb[44].mxu1 %v1416_v27 }
 0x338   : > { %v1655_v32 = vpop.f32.mrb[32].mxu0 }
 0x339   : > { %v1656_v50 = vadd.f32 %v1655_v32, %v5439_v45  ;;  %v1657_v2 = vpop.f32.mrb[33].mxu0 }
 0x33a   : > { %v1658_v20 = vadd.f32 %v1657_v2, %v5441_v46  ;;  %v1659_v49 = vpop.f32.mrb[34].mxu0 }
 0x33b   : > { %v3273_v41 = vmul.f32 -1.442695, %v1656_v50  ;;  %v1660_v51 = vadd.f32 %v1659_v49, %v5439_v45  ;;  %v1661_v52 = vpop.f32.mrb[35].mxu0 }
 0x33c   : > { %v3274_v53 = vmul.f32 -1.442695, %v1658_v20  ;;  %v1662_v56 = vadd.f32 %v1661_v52, %v5441_v46 }
 0x33d   : > { %4091 = vpow2.f32 %v3273_v41  ;;  %v3275_v57 = vmul.f32 -1.442695, %v1660_v51 }
 0x33e   : > { %4093 = vpow2.f32 %v3274_v53  ;;  %v3276_v58 = vmul.f32 -1.442695, %v1662_v56 }
 0x33f   : > { %4095 = vpow2.f32 %v3275_v57 }
 0x340   : > { %v1665_v59 = vpop.f32.mrb[36].mxu0  ;;  %v5447_v60 = vpop.f32.mrb[16].mxu1  ;;  %4097 = vpow2.f32 %v3276_v58 }
 0x341   : > { %v1666_v61 = vadd.f32 %v1665_v59, %v5439_v45  ;;  %v1667_v62 = vpop.f32.mrb[37].mxu0  ;;  %v5450_v1 = vpop.f32.mrb[17].mxu1 }
 0x342   : > { %v1668_v3 = vadd.f32 %v1667_v62, %v5441_v46  ;;  %v1669_v4 = vpop.f32.mrb[38].mxu0  ;;  %v5453_v6 = vpop.f32.mrb[18].mxu1 }
 0x343   : > { %v3277_v7 = vmul.f32 -1.442695, %v1666_v61  ;;  %v1670_v9 = vadd.f32 %v1669_v4, %v5439_v45  ;;  %v1671_v10 = vpop.f32.mrb[39].mxu0  ;;  %v5456_v12 = vpop.f32.mrb[19].mxu1 }
 0x344   : > { %v3278_v13 = vmul.f32 -1.442695, %v1668_v3  ;;  %v1672_v14 = vadd.f32 %v1671_v10, %v5441_v46 }
 0x345   : > { %v3279_v15 = vmul.f32 -1.442695, %v1670_v9  ;;  %4099 = vpow2.f32 %v3277_v7 }
 0x346   : > { %4101 = vpow2.f32 %v3278_v13  ;;  %v3280_v19 = vmul.f32 -1.442695, %v1672_v14 }
 0x347   : > { %v4092_v18 = vpop.eup %4091  ;;  %4103 = vpow2.f32 %v3279_v15 }
 0x348   : > { %v1675_v5 = vpop.f32.mrb[40].mxu0  ;;  %v4094_v11 = vpop.eup %4093  ;;  %v1830_v33 = vadd.f32 1.0, %v4092_v18  ;;  %4105 = vpow2.f32 %v3280_v19 }
 0x349   : > { %v1676_v21 = vadd.f32 %v1675_v5, %v5439_v45  ;;  %v1677_v22 = vpop.f32.mrb[41].mxu0  ;;  %v4096_v38 = vpop.eup %4095  ;;  %v1831_v40 = vadd.f32 1.0, %v4094_v11 }
 0x34a   : > { %v1678_v27 = vadd.f32 %v1677_v22, %v5441_v46  ;;  %v1679_v28 = vpop.f32.mrb[42].mxu0  ;;  %v4098_v42 = vpop.eup %4097  ;;  %v1832_v34 = vadd.f32 1.0, %v4096_v38 }
 0x34b   : > { %v3281_v35 = vmul.f32 -1.442695, %v1676_v21  ;;  %v1680_v36 = vadd.f32 %v1679_v28, %v5439_v45  ;;  %v1681_v37 = vpop.f32.mrb[43].mxu0  ;;  %v1833_v50 = vadd.f32 1.0, %v4098_v42 }
 0x34c   : > { %v3282_v26 = vmul.f32 -1.442695, %v1678_v27  ;;  %v1682_v39 = vadd.f32 %v1681_v37, %v5441_v46 }
 0x34d   : > { %4107 = vpow2.f32 %v3281_v35  ;;  %v3283_v23 = vmul.f32 -1.442695, %v1680_v36 }
 0x34e   : > { %4109 = vrcp.f32 %v1830_v33  ;;  %v3284_v29 = vmul.f32 -1.442695, %v1682_v39 }
 0x34f   : > { %v4100_v43 = vpop.eup %4099  ;;  %4111 = vpow2.f32 %v3282_v26 }
 0x350   : > { %v1685_v44 = vpop.f32.mrb[44].mxu0  ;;  %v5463_v32 = vpop.f32.mrb[20].mxu1  ;;  %4113 = vrcp.f32 %v1831_v40  ;;  %v1834_v57 = vadd.f32 1.0, %v4100_v43 }
 0x351   : > { %v1686_v2 = vadd.f32 %v1685_v44, %v5439_v45  ;;  %v1687_v20 = vpop.f32.mrb[45].mxu0  ;;  %v5466_v49 = vpop.f32.mrb[21].mxu1  ;;  %4115 = vpow2.f32 %v3283_v23 }
 0x352   : > { %v4102_v41 = vpop.eup %4101  ;;  %v1688_v51 = vadd.f32 %v1687_v20, %v5441_v46  ;;  %v1689_v52 = vpop.f32.mrb[46].mxu0  ;;  %4117 = vrcp.f32 %v1832_v34 }
 0x353   : > { %v5469_v53 = vpop.f32.mrb[22].mxu1  ;;  %v4104_v56 = vpop.eup %4103  ;;  %v3285_v58 = vmul.f32 -1.442695, %v1686_v2  ;;  %v1690_v59 = vadd.f32 %v1689_v52, %v5439_v45  ;;  %4119 = vpow2.f32 %v3284_v29  ;;  %v1835_v7 = vadd.f32 1.0, %v4102_v41 }
 0x354   : > { %v1691_v61 = vpop.f32.mrb[47].mxu0  ;;  %v5472_v62 = vpop.f32.mrb[23].mxu1  ;;  %v3286_v3 = vmul.f32 -1.442695, %v1688_v51  ;;  %4121 = vrcp.f32 %v1833_v50  ;;  %v1836_v10 = vadd.f32 1.0, %v4104_v56 }
 0x355   : > { %v1692_v4 = vadd.f32 %v1691_v61, %v5441_v46  ;;  %v4106_v9 = vpop.eup %4105  ;;  %4123 = vpow2.f32 %v3285_v58  ;;  %v3287_v13 = vmul.f32 -1.442695, %v1690_v59 }
 0x356   : > { %4125 = vrcp.f32 %v1834_v57  ;;  %v1837_v5 = vadd.f32 1.0, %v4106_v9 }
 0x357   : > { %v4108_v14 = vpop.eup %4107  ;;  %4127 = vpow2.f32 %v3286_v3  ;;  %v3288_v15 = vmul.f32 -1.442695, %v1692_v4 }
 0x358   : > { %v1695_v18 = vpop.f32.mrb[48].mxu0  ;;  %v5475_v19 = vpop.eup %4109  ;;  %4129 = vrcp.f32 %v1835_v7  ;;  %v1838_v27 = vadd.f32 1.0, %v4108_v14 }
 0x359   : > { %v1696_v21 = vadd.f32 %v1695_v18, %v5439_v45  ;;  %v1697_v22 = vpop.f32.mrb[49].mxu0  ;;  %v4112_v11 = vpop.eup %4111  ;;  %4131 = vrcp.f32 %v1836_v10 }
 0x35a   : > { %v1698_v28 = vadd.f32 %v1697_v22, %v5441_v46  ;;  %v1699_v33 = vpop.f32.mrb[50].mxu0  ;;  %v5479_v35 = vpop.eup %4113  ;;  %4133 = vpow2.f32 %v3287_v13  ;;  %v1839_v23 = vadd.f32 1.0, %v4112_v11 }
 0x35b   : > { %v3289_v36 = vmul.f32 -1.442695, %v1696_v21  ;;  %v1700_v37 = vadd.f32 %v1699_v33, %v5439_v45  ;;  %v1701_v38 = vpop.f32.mrb[51].mxu0  ;;  %v4116_v26 = vpop.eup %4115  ;;  %4135 = vpow2.f32 %v3288_v15 }
 0x35c   : > { %v3290_v39 = vmul.f32 -1.442695, %v1698_v28  ;;  %v1702_v40 = vadd.f32 %v1701_v38, %v5441_v46  ;;  %v5483_v42 = vpop.eup %4117  ;;  %4137 = vrcp.f32 %v1837_v5  ;;  %v1840_v44 = vadd.f32 1.0, %v4116_v26 }
 0x35d   : > { %v4120_v34 = vpop.eup %4119  ;;  %4139 = vrcp.f32 %v1838_v27  ;;  %v3291_v43 = vmul.f32 -1.442695, %v1700_v37 }
 0x35e   : > { %v5485_v29 = vpop.eup %4121  ;;  %4141 = vpow2.f32 %v3289_v36  ;;  %v3292_v2 = vmul.f32 -1.442695, %v1702_v40  ;;  %v1841_v52 = vadd.f32 1.0, %v4120_v34 }
 0x35f   : > { %v4124_v50 = vpop.eup %4123  ;;  %4143 = vpow2.f32 %v3290_v39 }
 0x360   : > { %v1705_v20 = vpop.f32.mrb[52].mxu0  ;;  %v5487_v41 = vpop.f32.mrb[24].mxu1  ;;  %4145 = vrcp.f32 %v1839_v23  ;;  %v1842_v61 = vadd.f32 1.0, %v4124_v50 }
 0x361   : > { %v5489_v51 = vpop.eup %4125  ;;  %v1706_v56 = vadd.f32 %v1705_v20, %v5439_v45  ;;  %v1707_v57 = vpop.f32.mrb[53].mxu0  ;;  %4147 = vpow2.f32 %v3291_v43 }
 0x362   : > { %v5492_v58 = vpop.f32.mrb[25].mxu1  ;;  %v4128_v59 = vpop.eup %4127  ;;  %v1708_v3 = vadd.f32 %v1707_v57, %v5441_v46  ;;  %4149 = vrcp.f32 %v1840_v44 }
 0x363   : > { %v1709_v4 = vpop.f32.mrb[54].mxu0  ;;  %v5495_v7 = vpop.f32.mrb[26].mxu1  ;;  %v3293_v10 = vmul.f32 -1.442695, %v1706_v56  ;;  %4151 = vpow2.f32 %v3292_v2  ;;  %v1843_v22 = vadd.f32 1.0, %v4128_v59 }
 0x364   : > { %v5497_v9 = vpop.eup %4129  ;;  %v1710_v13 = vadd.f32 %v1709_v4, %v5439_v45  ;;  %v1711_v14 = vpop.f32.mrb[55].mxu0  ;;  %v3294_v5 = vmul.f32 -1.442695, %v1708_v3  ;;  %4153 = vrcp.f32 %v1841_v52 }
 0x365   : > { %v5500_v15 = vpop.f32.mrb[27].mxu1  ;;  %v5502_v18 = vpop.eup %4131  ;;  %v1712_v11 = vadd.f32 %v1711_v14, %v5441_v46  ;;  %4155 = vrcp.f32 %v1842_v61 }
 0x366   : > { %v4134_v21 = vpop.eup %4133  ;;  %v3295_v28 = vmul.f32 -1.442695, %v1710_v13  ;;  %4157 = vpow2.f32 %v3293_v10 }
 0x367   : > { %v4136_v27 = vpop.eup %4135  ;;  %v3296_v36 = vmul.f32 -1.442695, %v1712_v11  ;;  %v1844_v38 = vadd.f32 1.0, %v4134_v21  ;;  %4159 = vpow2.f32 %v3294_v5 }
 0x368   : > { %v5505_v33 = vpop.eup %4137  ;;  %v1715_v26 = vpop.f32.mrb[56].mxu0  ;;  %4161 = vrcp.f32 %v1843_v22  ;;  %v1845_v40 = vadd.f32 1.0, %v4136_v27 }
 0x369   : > { %v5507_v37 = vpop.eup %4139  ;;  %v1716_v23 = vadd.f32 %v1715_v26, %v5439_v45  ;;  %v1717_v34 = vpop.f32.mrb[57].mxu0  ;;  %4163 = vpow2.f32 %v3295_v28 }
 0x36a   : > { %v4142_v39 = vpop.eup %4141  ;;  %v1718_v50 = vadd.f32 %v1717_v34, %v5441_v46  ;;  %v1719_v2 = vpop.f32.mrb[58].mxu0  ;;  %4165 = vpow2.f32 %v3296_v36 }
 0x36b   : > { %v4144_v43 = vpop.eup %4143  ;;  %v1846_v44 = vadd.f32 1.0, %v4142_v39  ;;  %v1720_v56 = vadd.f32 %v1719_v2, %v5439_v45  ;;  %v1721_v57 = vpop.f32.mrb[59].mxu0  ;;  %4167 = vrcp.f32 %v1844_v38  ;;  %v3297_v61 = vmul.f32 -1.442695, %v1716_v23  ;;  %v5528_v38 = vld [vmem:[%s619_s19] ss:$0 sm:$0xff] }
 0x36c   : > { %v5511_v20 = vpop.eup %4145  ;;  %v1847_v52 = vadd.f32 1.0, %v4144_v43  ;;  %v1722_v3 = vadd.f32 %v1721_v57, %v5441_v46  ;;  %4169 = vrcp.f32 %v1845_v40  ;;  %v3298_v10 = vmul.f32 -1.442695, %v1718_v50 }
 0x36d   : > { %v4148_v59 = vpop.eup %4147  ;;  %4171 = vrcp.f32 %v1846_v44  ;;  %v3299_v14 = vmul.f32 -1.442695, %v1720_v56 }
 0x36e   : > { %v5515_v4 = vpop.eup %4149  ;;  %4173 = vrcp.f32 %v1847_v52  ;;  %v1848_v21 = vadd.f32 1.0, %v4148_v59  ;;  %v3300_v11 = vmul.f32 -1.442695, %v1722_v3 }
 0x36f   : > { %v4152_v13 = vpop.eup %4151  ;;  %4175 = vpow2.f32 %v3297_v61 }
 0x370   : > { %v5517_v5 = vpop.eup %4153  ;;  %v1725_v27 = vpop.f32.mrb[60].mxu0  ;;  %v1849_v26 = vadd.f32 1.0, %v4152_v13  ;;  %4177 = vpow2.f32 %v3298_v10  ;;  %v2040_v10 = vadd.f32 %v5447_v60, %v5528_v38  ;;  %v2032_v13 = vadd.f32 %v5528_v38, %v5450_v1 }
 0x371   : > { %v5519_v22 = vpop.eup %4155  ;;  %v5521_v28 = vpop.f32.mrb[28].mxu1  ;;  %v1726_v39 = vadd.f32 %v1725_v27, %v5439_v45  ;;  %4179 = vpow2.f32 %v3299_v14  ;;  %v5554_v60 = vadd.f32 %v5463_v32, %v5528_v38 }
 0x372   : > { %v4158_v36 = vpop.eup %4157  ;;  %v1727_v40 = vpop.f32.mrb[61].mxu0  ;;  %4181 = vrcp.f32 %v1848_v21  ;;  %v2043_v21 = vadd.f32 %v5453_v6, %v5528_v38  ;;  %v5561_v6 = vld [vmem:[%s622_s5] ss:$0 sm:$0xff]  ;;  %s984_s5 = ssub.s32 0, %s982_s22 }
 0x373   : > { %v5531_v23 = vpop.f32.mrb[29].mxu1  ;;  %v4160_v34 = vpop.eup %4159  ;;  %v1850_v43 = vadd.f32 1.0, %v4158_v36  ;;  %v1728_v44 = vadd.f32 %v1727_v40, %v5441_v46  ;;  %4183 = vpow2.f32 %v3300_v11  ;;  %v3301_v14 = vmul.f32 -1.442695, %v1726_v39  ;;  %s3211_s28 = smin.u32 %s984_s5, %s982_s22 }
 0x374   : > { %v1729_v50 = vpop.f32.mrb[62].mxu0  ;;  %v5534_v2 = vpop.f32.mrb[30].mxu1  ;;  %v1851_v56 = vadd.f32 1.0, %v4160_v34  ;;  %4185 = vrcp.f32 %v1849_v26  ;;  %v2035_v34 = vadd.f32 %v5528_v38, %v5456_v12  ;;  %v5571_v12 = vadd.f32 %v5469_v53, %v5528_v38  ;;  %s986_s4 = sand.u32 1, %s3211_s28  }
 0x375   : > { %v5536_v52 = vpop.eup %4161  ;;  %v1730_v57 = vadd.f32 %v1729_v50, %v5439_v45  ;;  %v1731_v59 = vpop.f32.mrb[63].mxu0  ;;  %v3302_v36 = vmul.f32 -1.442695, %v1728_v44  ;;  %4187 = vrcp.f32 %v1850_v43  ;;  %v5577_v39 = vadd.f32 %v5528_v38, %v5472_v62  ;;  %s987_s26 = ssub.s32 0, %s986_s4 }
 0x376   : > { %v5539_v61 = vpop.f32.mrb[31].mxu1  ;;  %v4164_v3 = vpop.eup %4163  ;;  %v1732_v45 = vadd.f32 %v1731_v59, %v5441_v46  ;;  %v5567_v46 = vadd.f32 %v5528_v38, %v5466_v49  ;;  %4189 = vrcp.f32 %v1851_v56  ;;  %v5585_v56 = vmul.f32 %v5479_v35, %v5336_v30  ;;  %s6221_s26 = smov (!%p983_p3, %s987_s26), %s986_s4 }
 0x377   : > { %v4166_v27 = vpop.eup %4165  ;;  %v3303_v1 = vmul.f32 -1.442695, %v1730_v57  ;;  %v1852_v32 = vadd.f32 1.0, %v4164_v3  ;;  %4191 = vpow2.f32 %v3301_v14  ;;  %v5591_v50 = vmul.f32 %v5485_v29, %v5339_v31  ;;  %p3213_p13 = scmp.lt.s32.totalorder %s6221_s26, 0  ;;  %s993_s7 = sadd.s32 2, %s6221_s26 }
 0x378   : > { %v5548_v40 = vpop.eup %4167  ;;  %v1853_v43 = vadd.f32 1.0, %v4166_v27  ;;  %v3596_v44 = vpop.f32.mrb[32].mxu1  ;;  %4193 = vpow2.f32 %v3302_v36  ;;  %v3304_v49 = vmul.f32 -1.442695, %v1732_v45 }
 0x379   : > { %v5563_v11 = vpop.eup %4169  ;;  %v2208_v53 = vadd.f32 %v3596_v44, %v5561_v6  ;;  %v2199_v59 = vpop.f32.mrb[33].mxu1  ;;  %4195 = vpow2.f32 %v3303_v1  ;;  %s6223_s7 = smov (!%p3213_p13, %s993_s7), %s6221_s26 }
 0x37a   : > { %v5573_v26 = vpop.eup %4171  ;;  %v2200_v62 = vadd.f32 %v5561_v6, %v2199_v59  ;;  %v3597_v27 = vpop.f32.mrb[34].mxu1  ;;  %4197 = vrcp.f32 %v1852_v32  ;;  %s995_s14 = smul.u32 384, %s6223_s7 }
 0x37b   : > { %v5580_v57 = vpop.eup %4173  ;;  %v2264_v44 = vmul.f32 %v5489_v51, %v2208_v53  ;;  %v2211_v25 = vadd.f32 %v3597_v27, %v5561_v6  ;;  %v2202_v30 = vpop.f32.mrb[35].mxu1  ;;  %4199 = vrcp.f32 %v1853_v43  ;;  %v2312_v27 = vsub.f32 1.0, %v5497_v9 }
 0x37c   : > { %v4176_v3 = vpop.eup %4175  ;;  %v2262_v59 = vmul.f32 %v5475_v19, %v2200_v62  ;;  %v2203_v24 = vadd.f32 %v5561_v6, %v2202_v30  ;;  %4201 = vpow2.f32 %v3304_v49  ;;  %v5606_v62 = vmul.f32 %v5497_v9, %v5350_v47  ;;  %s2494_s0 = sadd.s32 %s5239_s15, %s995_s14 }
 0x37d   : > { %v4178_v36 = vpop.eup %4177  ;;  %v1854_v45 = vadd.f32 1.0, %v4176_v3  ;;  %v2280_v31 = vadd.f32 %v2264_v44, %v2040_v10  ;;  %v2265_v32 = vmul.f32 %v5502_v18, %v2211_v25  ;;  %v5613_v25 = vadd.f32 %v5487_v41, %v5528_v38  ;;  %s2495_s17 = sshra.s32 %s2494_s0, 4 }
 0x37e   : > { %v4180_v8 = vpop.eup %4179  ;;  %v1855_v1 = vadd.f32 1.0, %v4178_v36  ;;  %v2278_v51 = vadd.f32 %v2262_v59, %v2032_v13  ;;  %v2263_v53 = vmul.f32 %v5483_v42, %v2203_v24  ;;  %v5617_v18 = vmul.f32 %v5505_v33, %v5353_v48  ;;  %s5827_s15 = sshll.u32 %s2495_s17, 3 }
 0x37f   : > { %v5597_v14 = vpop.eup %4181  ;;  %v1856_v55 = vadd.f32 1.0, %v4180_v8  ;;  %4203 = vrcp.f32 %v1854_v45  ;;  %v2281_v19 = vadd.f32 %v2265_v32, %v2043_v21  ;;  %v2313_v8 = vsub.f32 1.0, %v5505_v33  ;;  %s5845_s25 = scalar_lea.vmem [#allocation3], %s5827_s15 }
 0x380   : > { %v4184_v3 = vpop.eup %4183  ;;  %4205 = vrcp.f32 %v1855_v1  ;;  %v2279_v24 = vadd.f32 %v2263_v53, %v2035_v34  ;;  %v3600_v42 = vpop.f32.mrb[36].mxu1  ;;  %v5623_v47 = vadd.f32 %v5528_v38, %v5492_v58  ;;  %v5632_v48 = vadd.f32 %v5528_v38, %v5500_v15 }
 0x381   : > { %v5602_v43 = vpop.eup %4185  ;;  %4207 = vrcp.f32 %v1856_v55  ;;  %v1857_v21 = vadd.f32 1.0, %v4184_v3  ;;  %v2224_v49 = vadd.f32 %v3600_v42, %v5561_v6  ;;  %v2215_v36 = vpop.f32.mrb[37].mxu1  ;;  %v5628_v55 = vadd.f32 %v5495_v7, %v5528_v38 }
 0x382   : > { %v5609_v10 = vpop.eup %4187  ;;  %4209 = vtanh.f32 %v2280_v31  ;;  %v2216_v34 = vadd.f32 %v5561_v6, %v2215_v36  ;;  %v3601_v45 = vpop.f32.mrb[38].mxu1 }
 0x383   : > { %v5619_v13 = vpop.eup %4189  ;;  %4211 = vtanh.f32 %v2278_v51  ;;  %v2268_v30 = vmul.f32 %v5519_v22, %v2224_v49  ;;  %v2227_v1 = vadd.f32 %v3601_v45, %v5561_v6  ;;  %v2218_v59 = vpop.f32.mrb[39].mxu1 }
 0x384   : > { %v4192_v41 = vpop.eup %4191  ;;  %4213 = vtanh.f32 %v2281_v19  ;;  %v2266_v7 = vmul.f32 %v5507_v37, %v2216_v34  ;;  %v2219_v15 = vadd.f32 %v5561_v6, %v2218_v59  ;;  %v5658_v34 = vmul.f32 %v5517_v5, %v5364_v0 }
 0x385   : > { %v4194_v58 = vpop.eup %4193  ;;  %v1858_v44 = vadd.f32 1.0, %v4192_v41  ;;  %4215 = vtanh.f32 %v2279_v24  ;;  %v2284_v53 = vadd.f32 %v2268_v30, %v5554_v60  ;;  %v2269_v42 = vmul.f32 %v5548_v40, %v2227_v1 }
 0x386   : > { %v4196_v31 = vpop.eup %4195  ;;  %v1859_v32 = vadd.f32 1.0, %v4194_v58  ;;  %4217 = vrcp.f32 %v1857_v21  ;;  %v2282_v22 = vadd.f32 %v2266_v7, %v5567_v46  ;;  %v2267_v49 = vmul.f32 %v5515_v4, %v2219_v15 }
 0x387   : > { %v4198_v3 = vpop.eup %4197  ;;  %v1860_v51 = vadd.f32 1.0, %v4196_v31  ;;  %4219 = vrcp.f32 %v1858_v44  ;;  %v2314_v24 = vsub.f32 1.0, %v5511_v20  ;;  %v2285_v37 = vadd.f32 %v2269_v42, %v5571_v12 }
 0x388   : > { %v5641_v19 = vpop.eup %4199  ;;  %4221 = vrcp.f32 %v1859_v32  ;;  %v5649_v21 = vmul.f32 %v5511_v20, %v5361_v63  ;;  %v2315_v60 = vsub.f32 1.0, %v5517_v5  ;;  %v2283_v41 = vadd.f32 %v2267_v49, %v5577_v39  ;;  %v3604_v46 = vpop.f32.mrb[40].mxu1 }
 0x389   : > { %v4202_v36 = vpop.eup %4201  ;;  %4223 = vrcp.f32 %v1860_v51  ;;  %v2316_v4 = vsub.f32 1.0, %v5536_v52  ;;  %v5664_v63 = vadd.f32 %v5521_v28, %v5528_v38  ;;  %v2240_v12 = vadd.f32 %v3604_v46, %v5561_v6  ;;  %v2231_v58 = vpop.f32.mrb[41].mxu1 }
 0x38a   : > { %v5652_v40 = vpop.eup %4203  ;;  %4225 = vtanh.f32 %v2284_v53  ;;  %v5669_v39 = vmul.f32 %v5536_v52, %v5377_v16  ;;  %v5675_v0 = vadd.f32 %v5528_v38, %v5531_v23  ;;  %v2232_v30 = vadd.f32 %v5561_v6, %v2231_v58  ;;  %v3605_v1 = vpop.f32.mrb[42].mxu1 }
 0x38b   : > { %v5660_v45 = vpop.eup %4205  ;;  %4227 = vtanh.f32 %v2282_v22  ;;  %v2317_v28 = vsub.f32 1.0, %v5563_v11  ;;  %v5681_v31 = vadd.f32 %v5534_v2, %v5528_v38  ;;  %v2272_v16 = vmul.f32 %v5609_v10, %v2240_v12  ;;  %v2234_v7 = vpop.f32.mrb[43].mxu1 }
 0x38c   : > { %v5671_v44 = vpop.eup %4207  ;;  %4229 = vtanh.f32 %v2285_v37  ;;  %v2243_v32 = vadd.f32 %v3605_v1, %v5561_v6  ;;  %v2270_v23 = vmul.f32 %v5573_v26, %v2232_v30  ;;  %v2235_v51 = vadd.f32 %v5561_v6, %v2234_v7 }
 0x38d   : > { %v4210_v59 = vpop.eup %4209  ;;  %4231 = vtanh.f32 %v2283_v41  ;;  %v1861_v22 = vadd.f32 1.0, %v4202_v36  ;;  %v2288_v2 = vadd.f32 %v2272_v16, %v5613_v25  ;;  %v6179_v37 = vsub.f32 1.0, %v5479_v35 }
 0x38e   : > { %v4212_v15 = vpop.eup %4211  ;;  %v2328_v53 = vmul.f32 %v4210_v59, %v2312_v27  ;;  %v2273_v49 = vmul.f32 %v4198_v3, %v2243_v32  ;;  %v2286_v12 = vadd.f32 %v2270_v23, %v5623_v47  ;;  %v2271_v41 = vmul.f32 %v5597_v14, %v2235_v51 }
 0x38f   : > { %v4214_v42 = vpop.eup %4213  ;;  %v2326_v10 = vmul.f32 %v4212_v15, %v6179_v37  ;;  %4233 = vtanh.f32 %v2288_v2  ;;  %v6180_v35 = vsub.f32 1.0, %v5485_v29  ;;  %v2083_v1 = vadd.f32 %v5528_v38, %v5539_v61 }
 0x390   : > { %v4216_v46 = vpop.eup %4215  ;;  %v5695_v26 = vadd.f32 %v5606_v62, %v2328_v53  ;;  %v2329_v9 = vmul.f32 %v4214_v42, %v2313_v8  ;;  %v2289_v25 = vadd.f32 %v2273_v49, %v5628_v55  ;;  %4235 = vtanh.f32 %v2286_v12  ;;  %v3608_v62 = vpop.f32.mrb[44].mxu1 }
 0x391   : > { %v5699_v27 = vpop.eup %4217  ;;  %v5703_v3 = vadd.f32 %v5585_v56, %v2326_v10  ;;  %v2327_v36 = vmul.f32 %v4216_v46, %v6180_v35  ;;  %v2287_v14 = vadd.f32 %v2271_v41, %v5632_v48  ;;  %v2256_v56 = vadd.f32 %v3608_v62, %v5561_v6  ;;  %v2247_v55 = vpop.f32.mrb[45].mxu1 }
 0x392   : > { %v4220_v47 = vpop.eup %4219  ;;  %v2376_v33 = vmul.f32 %v5695_v26, %v5695_v26  ;;  %v5711_v8 = vadd.f32 %v5617_v18, %v2329_v9  ;;  %4237 = vtanh.f32 %v2289_v25  ;;  %v2248_v18 = vadd.f32 %v5561_v6, %v2247_v55  ;;  %v3609_v59 = vpop.f32.mrb[46].mxu1  ;;  %v4283_v25 = vld [vmem:[%s5333_s1 + $0x40] sm:$0xff] }
 0x393   : > { %v5713_v58 = vpop.eup %4221  ;;  %v2374_v29 = vmul.f32 %v5703_v3, %v5703_v3  ;;  %v5719_v30 = vadd.f32 %v5591_v50, %v2327_v36  ;;  %4239 = vtanh.f32 %v2287_v14  ;;  %v2349_v16 = vmul.f32 %v5563_v11, %v5380_v17  ;;  %v2250_v50 = vpop.f32.mrb[47].mxu1 }
 0x394   : > { %v4224_v48 = vpop.eup %4223  ;;  %2394 = vadd.xlane.f32.xlu1 %v2376_v33  ;;  %4241 = vrcp.f32 %v1861_v22  ;;  %v2276_v7 = vmul.f32 %v4220_v47, %v2256_v56  ;;  %v2259_v15 = vadd.f32 %v3609_v59, %v5561_v6  ;;  %v2320_v23 = vsub.f32 1.0, %v5619_v13  ;;  %v6181_v47 = vld [vmem:[#allocation38_spill] sm:$0xff] }
 0x395   : > { %v4226_v32 = vpop.eup %4225  ;;  %2390 = vadd.xlane.f32.xlu0 %v2374_v29  ;;  %v2274_v38 = vmul.f32 %v5652_v40, %v2248_v18  ;;  %v2251_v61 = vadd.f32 %v5561_v6, %v2250_v50  ;;  %v2377_v53 = vmul.f32 %v5711_v8, %v5711_v8  ;;  %v2375_v49 = vmul.f32 %v5719_v30, %v5719_v30  ;;  %v4284_v29 = vld [vmem:[%s5333_s1 + $0x48] sm:$0xff]  ;;  %v6182_v50 = vld [vmem:[#allocation40_spill] sm:$0xff] }
 0x396   : > { %v4228_v51 = vpop.eup %4227  ;;  %v2332_v17 = vmul.f32 %v4226_v32, %v2316_v4  ;;  %v2292_v22 = vadd.f32 %v2276_v7, %v5664_v63  ;;  %v2277_v2 = vmul.f32 %v4224_v48, %v2259_v15  ;;  %v2321_v12 = vsub.f32 1.0, %v5641_v19 }
 0x397   : > { %v4230_v42 = vpop.eup %4229  ;;  %v2330_v37 = vmul.f32 %v4228_v51, %v2314_v24  ;;  %v2290_v40 = vadd.f32 %v2274_v38, %v5675_v0  ;;  %v2275_v6 = vmul.f32 %v5671_v44, %v2251_v61  ;;  %v2319_v35 = vsub.f32 1.0, %v5602_v43 }
 0x398   : > { %v4232_v10 = vpop.eup %4231  ;;  %2396 = vadd.xlane.f32.xlu1 %v2377_v53  ;;  %v5742_v46 = vadd.f32 %v5669_v39, %v2332_v17  ;;  %v2333_v52 = vmul.f32 %v4230_v42, %v2317_v28  ;;  %4243 = vtanh.f32 %v2292_v22  ;;  %v2293_v4 = vadd.f32 %v2277_v2, %v5681_v31  ;;  %v6183_v53 = vld [vmem:[#allocation39_spill] sm:$0xff] }
 0x399   : > { %2392 = vadd.xlane.f32.xlu0 %v2375_v49  ;;  %v5748_v63 = vadd.f32 %v5649_v21, %v2330_v37  ;;  %v2331_v20 = vmul.f32 %v4232_v10, %v2315_v60  ;;  %4245 = vtanh.f32 %v2290_v40  ;;  %v2291_v24 = vadd.f32 %v2275_v6, %v2083_v1  ;;  %v4234_v11 = vpop.eup %4233  ;;  %v6184_v37 = vld [vmem:[#allocation41_spill] sm:$0xff] }
 0x39a   : > { %v2380_v39 = vmul.f32 %v5742_v46, %v5742_v46  ;;  %v5754_v44 = vadd.f32 %v2349_v16, %v2333_v52  ;;  %4247 = vtanh.f32 %v2293_v4  ;;  %v2352_v21 = vmul.f32 %v5619_v13, %v5405_v54  ;;  %v4236_v5 = vpop.eup %4235  ;;  %v4285_v52 = vld [vmem:[%s5333_s1 + $0x68] sm:$0xff] }
 0x39b   : > { %v5757_v0 = vadd.f32 %v5658_v34, %v2331_v20  ;;  %v2318_v28 = vsub.f32 1.0, %v5580_v57  ;;  %4249 = vtanh.f32 %v2291_v24  ;;  %v2336_v31 = vmul.f32 %v4234_v11, %v2320_v23 }
 0x39c   : > { %v2381_v60 = vmul.f32 %v5754_v44, %v5754_v44  ;;  %v4238_v41 = vpop.eup %4237  ;;  %v2350_v34 = vmul.f32 %v4283_v25, %v5580_v57  ;;  %v2353_v14 = vmul.f32 %v5641_v19, %v6181_v47  ;;  %v2378_v33 = vmul.f32 %v5748_v63, %v5748_v63 }
 0x39d   : > { %2402 = vadd.xlane.f32.xlu0 %v2380_v39  ;;  %v2334_v9 = vmul.f32 %v4236_v5, %v2318_v28  ;;  %v4240_v54 = vpop.eup %4239  ;;  %v5768_v13 = vadd.f32 %v2352_v21, %v2336_v31  ;;  %v2337_v36 = vmul.f32 %v4238_v41, %v2321_v12  ;;  %v2351_v57 = vmul.f32 %v4284_v29, %v5602_v43  ;;  %v2511_v29 = vld [vmem:[%s5821_s29] sm:$0xff] }
 0x39e   : > { %2404 = vadd.xlane.f32.xlu1 %v2381_v60  ;;  %v4242_v62 = vpop.eup %4241  ;;  %v2335_v55 = vmul.f32 %v4240_v54, %v2319_v35  ;;  %v2379_v48 = vmul.f32 %v5757_v0, %v5757_v0  ;;  %v2324_v16 = vsub.f32 1.0, %v5713_v58  ;;  %v2322_v43 = vsub.f32 1.0, %v5660_v45 }
 0x39f   : > { %v5774_v56 = vadd.f32 %v2350_v34, %v2334_v9  ;;  %v5780_v1 = vadd.f32 %v2353_v14, %v2337_v36  ;;  %v2384_v18 = vmul.f32 %v5768_v13, %v5768_v13  ;;  %v2356_v23 = vmul.f32 %v5713_v58, %v6182_v50  ;;  %v2512_v14 = vld [vmem:[%s5821_s29 + $0x8] sm:$0xff] }
 0x3a0   : > { %v5784_v19 = vadd.f32 %v2351_v57, %v2335_v55  ;;  %v2325_v51 = vsub.f32 1.0, %v4242_v62  ;;  %v2354_v17 = vmul.f32 %v5660_v45, %v6183_v53  ;;  %v2323_v42 = vsub.f32 1.0, %v5699_v27 }
 0x3a1   : > { %2398 = vadd.xlane.f32.xlu0 %v2378_v33  ;;  %v2385_v59 = vmul.f32 %v5780_v1, %v5780_v1  ;;  %v2357_v10 = vmul.f32 %v4242_v62, %v6184_v37  ;;  %v2382_v40 = vmul.f32 %v5774_v56, %v5774_v56  ;;  %v2355_v4 = vmul.f32 %v4285_v52, %v5699_v27 }
 0x3a2   : > { %2400 = vadd.xlane.f32.xlu1 %v2379_v48  ;;  %v4244_v32 = vpop.eup %4243  ;;  %v2383_v45 = vmul.f32 %v5784_v19, %v5784_v19  ;;  %v2520_v50 = vunpack.c.h.bf16 %v2511_v29 }
 0x3a3   : > { %v4246_v7 = vpop.eup %4245  ;;  %v2340_v15 = vmul.f32 %v4244_v32, %v2324_v16  ;;  %v2521_v16 = vunpack.c.l.bf16 %v2512_v14  ;;  %v2522_v32 = vunpack.c.h.bf16 %v2512_v14 }
 0x3a4   : > { %v4248_v38 = vpop.eup %4247  ;;  %v2338_v61 = vmul.f32 %v4246_v7, %v2322_v43  ;;  %v2514_v43 = vld [vmem:[%s5821_s29 + $0x18] sm:$0xff] }
 0x3a5   : > { %2410 = vadd.xlane.f32.xlu0 %v2384_v18  ;;  %v4250_v22 = vpop.eup %4249  ;;  %v5795_v2 = vadd.f32 %v2356_v23, %v2340_v15  ;;  %v2341_v49 = vmul.f32 %v4248_v38, %v2325_v51  ;;  %v2519_v15 = vunpack.c.l.bf16 %v2511_v29  ;;  %v2525_v53 = vunpack.c.l.bf16 %v2514_v43 }
 0x3a6   : > { %2412 = vadd.xlane.f32.xlu1 %v2385_v59  ;;  %v5800_v58 = vadd.f32 %v2354_v17, %v2338_v61  ;;  %v2339_v6 = vmul.f32 %v4250_v22, %v2323_v42  ;;  %v2526_v52 = vunpack.c.h.bf16 %v2514_v43 }
 0x3a7   : > { %v5806_v20 = vadd.f32 %v2357_v10, %v2341_v49  ;;  %v2388_v27 = vmul.f32 %v5795_v2, %v5795_v2 }
 0x3a8   : > { %v2386_v24 = vmul.f32 %v5800_v58, %v5800_v58  ;;  %v5810_v39 = vadd.f32 %v2355_v4, %v2339_v6  ;;  %v2513_v4 = vld [vmem:[%s5821_s29 + $0x10] sm:$0xff] }
 0x3a9   : > { %2406 = vadd.xlane.f32.xlu0 %v2382_v40  ;;  %v2389_v21 = vmul.f32 %v5806_v20, %v5806_v20 }
 0x3aa   : > { %2408 = vadd.xlane.f32.xlu1 %v2383_v45  ;;  %v2387_v11 = vmul.f32 %v5810_v39, %v5810_v39 }
 0x3ad   : > { %2414 = vadd.xlane.f32.xlu0 %v2386_v24 }
 0x3ae   : > { %2416 = vadd.xlane.f32.xlu1 %v2387_v11 }
 0x3b1   : > { %2418 = vadd.xlane.f32.xlu0 %v2388_v27 }
 0x3b2   : > { %2420 = vadd.xlane.f32.xlu1 %v2389_v21 }
 0x421   : > { %v2395_v28 = vpop.xlane.xlu1 %2394 }
 0x422   : > { %v2424_v5 = vadd.f32 1e-24, %v2395_v28  ;;  %v2391_v60 = vpop.xlane.xlu0 %2390 }
 0x423   : > { %v2422_v31 = vadd.f32 1e-24, %v2391_v60 }
 0x424   : > { %4251 = vrsqrt.f32 %v2424_v5 }
 0x425   : > { %4253 = vrsqrt.f32 %v2422_v31  ;;  %v2397_v12 = vpop.xlane.xlu1 %2396  ;;  %v2523_v31 = vunpack.c.l.bf16 %v2513_v4 }
 0x426   : > { %v2425_v41 = vadd.f32 1e-24, %v2397_v12  ;;  %v2393_v9 = vpop.xlane.xlu0 %2392 }
 0x427   : > { %v2423_v25 = vadd.f32 1e-24, %v2393_v9 }
 0x428   : > { %4255 = vrsqrt.f32 %v2425_v41 }
 0x429   : > { %4257 = vrsqrt.f32 %v2423_v25 }
 0x42a   : > { %v2403_v34 = vpop.xlane.xlu0 %2402 }
 0x42b   : > { %v2428_v35 = vadd.f32 1e-24, %v2403_v34  ;;  %v2405_v54 = vpop.xlane.xlu1 %2404  ;;  %v2516_v34 = vld [vmem:[%s5821_s29 + $0x28] sm:$0xff] }
 0x42c   : > { %v2429_v36 = vadd.f32 1e-24, %v2405_v54 }
 0x42d   : > { %4259 = vrsqrt.f32 %v2428_v35 }
 0x42e   : > { %v4252_v47 = vpop.eup %4251  ;;  %4261 = vrsqrt.f32 %v2429_v36  ;;  %v2399_v62 = vpop.xlane.xlu0 %2398 }
 0x42f   : > { %v4254_v33 = vpop.eup %4253  ;;  %v2456_v55 = vmul.f32 %v4252_v47, %v5695_v26  ;;  %v2426_v57 = vadd.f32 1e-24, %v2399_v62  ;;  %v2401_v48 = vpop.xlane.xlu1 %2400 }
 0x430   : > { %v2454_v18 = vmul.f32 %v4254_v33, %v5703_v3  ;;  %v2427_v59 = vadd.f32 1e-24, %v2401_v48 }
 0x431   : > { %2472 = vst [vmem:[%s5333_s1 + $0x10] sm:$0xff] %v2456_v55  ;;  %4263 = vrsqrt.f32 %v2426_v57  ;;  %v5834_v42 = vmax.f32 %v2521_v16, %v2456_v55 }
 0x432   : > { %v4256_v7 = vpop.eup %4255  ;;  %2470 = vst [vmem:[%s5333_s1] sm:$0xff] %v2454_v18  ;;  %4265 = vrsqrt.f32 %v2427_v59  ;;  %v2411_v26 = vpop.xlane.xlu0 %2410  ;;  %v5839_v37 = vmax.f32 %v2519_v15, %v2454_v18  ;;  %v2515_v59 = vld [vmem:[%s5821_s29 + $0x20] sm:$0xff] }
 0x433   : > { %v4258_v23 = vpop.eup %4257  ;;  %v2457_v51 = vmul.f32 %v4256_v7, %v5711_v8  ;;  %v2432_v3 = vadd.f32 1e-24, %v2411_v26  ;;  %v2413_v38 = vpop.xlane.xlu1 %2412 }
 0x434   : > { %v2455_v61 = vmul.f32 %v4258_v23, %v5719_v30  ;;  %v2433_v17 = vadd.f32 1e-24, %v2413_v38  ;;  %v2527_v23 = vunpack.c.l.bf16 %v2515_v59  ;;  %v2528_v38 = vunpack.c.h.bf16 %v2515_v59  ;;  %3642 = vmatprep.mubr.f32.mxu0 (!%p3325_p9), %v5839_v37  ;;  %v2578_v59 = vld [vmem:[#allocation13 + $0x38] sm:$0xff] (!%p3325_p9) }
 0x435   : > { %2473 = vst [vmem:[%s5333_s1 + $0x18] sm:$0xff] %v2457_v51  ;;  %v2487_v22 = vpack.c.bf16 %v2457_v51, %v2456_v55  ;;  %v5837_v49 = vmax.f32 %v2522_v32, %v2457_v51  ;;  %4267 = vrsqrt.f32 %v2432_v3  ;;  %v2529_v55 = vunpack.c.l.bf16 %v2516_v34 }
 0x436   : > { %2471 = vst [vmem:[%s5333_s1 + $0x8] sm:$0xff] %v2455_v61  ;;  %v2486_v10 = vpack.c.bf16 %v2455_v61, %v2454_v18  ;;  %v5842_v8 = vmax.f32 %v2520_v50, %v2455_v61  ;;  %4269 = vrsqrt.f32 %v2433_v17  ;;  %v2407_v40 = vpop.xlane.xlu0 %2406  ;;  %v2530_v18 = vunpack.c.h.bf16 %v2516_v34 }
 0x437   : > { %v4260_v30 = vpop.eup %4259  ;;  %2500 = vst [vmem:[%s5845_s25 + $0x8] sm:$0xff] %v2487_v22  ;;  %v2552_v6 = vpack.c.bf16 %v5837_v49, %v5834_v42  ;;  %v2430_v45 = vadd.f32 1e-24, %v2407_v40  ;;  %v2409_v24 = vpop.xlane.xlu1 %2408 }
 0x438   : > { %v4262_v11 = vpop.eup %4261  ;;  %2499 = vst [vmem:[%s5845_s25] sm:$0xff] %v2486_v10  ;;  %v2551_v27 = vpack.c.bf16 %v5842_v8, %v5839_v37  ;;  %v2460_v21 = vmul.f32 %v4260_v30, %v5742_v46  ;;  %v2431_v28 = vadd.f32 1e-24, %v2409_v24  ;;  %v2524_v46 = vunpack.c.h.bf16 %v2513_v4  ;;  %v2518_v4 = vld [vmem:[%s5821_s29 + $0x38] sm:$0xff] }
 0x439   : > { %2560 = vst [vmem:[%s5821_s29 + $0x8] sm:$0xff] %v2552_v6  ;;  %v2461_v5 = vmul.f32 %v4262_v11, %v5754_v44  ;;  %4271 = vrsqrt.f32 %v2430_v45 }
 0x43a   : > { %2559 = vst [vmem:[%s5821_s29] sm:$0xff] %v2551_v27  ;;  %2476 = vst [vmem:[%s5333_s1 + $0x30] sm:$0xff] %v2460_v21  ;;  %v5859_v60 = vmax.f32 %v2525_v53, %v2460_v21  ;;  %4273 = vrsqrt.f32 %v2431_v28  ;;  %v2415_v12 = vpop.xlane.xlu0 %2414  ;;  %v2517_v53 = vld [vmem:[%s5821_s29 + $0x30] sm:$0xff]  ;;  %v2533_v27 = vunpack.c.l.bf16 %v2518_v4 }
 0x43b   : > { %v4264_v41 = vpop.eup %4263  ;;  %2477 = vst [vmem:[%s5333_s1 + $0x38] sm:$0xff] %v2461_v5  ;;  %v2489_v9 = vpack.c.bf16 %v2461_v5, %v2460_v21  ;;  %v5862_v25 = vmax.f32 %v2526_v52, %v2461_v5  ;;  %v2434_v35 = vadd.f32 1e-24, %v2415_v12  ;;  %v2417_v44 = vpop.xlane.xlu1 %2416  ;;  %v2532_v52 = vunpack.c.h.bf16 %v2517_v53 }
 0x43c   : > { %v4266_v54 = vpop.eup %4265  ;;  %v2458_v36 = vmul.f32 %v4264_v41, %v5748_v63  ;;  %v2435_v47 = vadd.f32 1e-24, %v2417_v44 }
 0x43d   : > { %2502 = vst [vmem:[%s5845_s25 + $0x18] sm:$0xff] %v2489_v9  ;;  %v2554_v14 = vpack.c.bf16 %v5862_v25, %v5859_v60  ;;  %v2459_v62 = vmul.f32 %v4266_v54, %v5757_v0  ;;  %4275 = vrsqrt.f32 %v2434_v35  ;;  %v2572_v54 = vld [vmem:[#allocation13 + $0x8] sm:$0xff] (!%p3325_p9) }
 0x43e   : > { %2474 = vst [vmem:[%s5333_s1 + $0x20] sm:$0xff] %v2458_v36  ;;  %v5871_v33 = vmax.f32 %v2523_v31, %v2458_v36  ;;  %4277 = vrsqrt.f32 %v2435_v47  ;;  %v2419_v29 = vpop.xlane.xlu0 %2418  ;;  %v2534_v31 = vunpack.c.h.bf16 %v2518_v4  ;;  %v2574_v47 = vld [vmem:[#allocation13 + $0x18] sm:$0xff] (!%p3325_p9) }
 0x43f   : > { %v4268_v57 = vpop.eup %4267  ;;  %2562 = vst [vmem:[%s5821_s29 + $0x18] sm:$0xff] %v2554_v14  ;;  %2475 = vst [vmem:[%s5333_s1 + $0x28] sm:$0xff] %v2459_v62  ;;  %v2488_v63 = vpack.c.bf16 %v2459_v62, %v2458_v36  ;;  %v5875_v48 = vmax.f32 %v2524_v46, %v2459_v62  ;;  %v2436_v0 = vadd.f32 1e-24, %v2419_v29  ;;  %v2421_v16 = vpop.xlane.xlu1 %2420  ;;  %v2573_v36 = vld [vmem:[#allocation13 + $0x10] sm:$0xff] (!%p3325_p9)  ;;  %v2575_v62 = vld [vmem:[#allocation13 + $0x20] sm:$0xff] (!%p3325_p9) }
 0x440   : > { %v4270_v32 = vpop.eup %4269  ;;  %v2464_v43 = vmul.f32 %v4268_v57, %v5768_v13  ;;  %v2437_v7 = vadd.f32 1e-24, %v2421_v16  ;;  %v3726_v14 = vpack.c.bf16 (!%p3325_p9), %v2574_v47, %v2573_v36  ;;  %v2577_v57 = vld [vmem:[#allocation13 + $0x30] sm:$0xff] (!%p3325_p9) }
 0x441   : > { %2501 = vst [vmem:[%s5845_s25 + $0x10] sm:$0xff] %v2488_v63  ;;  %v2553_v15 = vpack.c.bf16 %v5875_v48, %v5871_v33  ;;  %v2465_v50 = vmul.f32 %v4270_v32, %v5780_v1  ;;  %4279 = vrsqrt.f32 %v2436_v0  ;;  %v2755_v63 = vld [vmem:[#allocation14] sm:$0xff] (!%p3325_p9)  ;;  %v2757_v16 = vld [vmem:[#allocation14 + $0x10] sm:$0xff] (!%p3325_p9)  ;;  %v2758_v32 = vld [vmem:[#allocation14 + $0x18] sm:$0xff] (!%p3325_p9)  ;;  %v3734_v37 = vpack.c.bf16 (!%p3325_p9), %v2578_v59, %v2577_v57 }
 0x442   : > { %2480 = vst [vmem:[%s5333_s1 + $0x50] sm:$0xff] %v2464_v43  ;;  %v5884_v26 = vmax.f32 %v2529_v55, %v2464_v43  ;;  %4281 = vrsqrt.f32 %v2437_v7  ;;  %v2576_v55 = vld [vmem:[#allocation13 + $0x28] sm:$0xff] (!%p3325_p9)  ;;  %v2759_v7 = vld [vmem:[#allocation14 + $0x20] sm:$0xff] (!%p3325_p9) }
 0x443   : > { %v4272_v51 = vpop.eup %4271  ;;  %2561 = vst [vmem:[%s5821_s29 + $0x10] sm:$0xff] %v2553_v15  ;;  %2481 = vst [vmem:[%s5333_s1 + $0x58] sm:$0xff] %v2465_v50  ;;  %v2491_v13 = vpack.c.bf16 %v2465_v50, %v2464_v43  ;;  %v5888_v3 = vmax.f32 %v2530_v18, %v2465_v50  ;;  %v3730_v29 = vpack.c.bf16 (!%p3325_p9), %v2576_v55, %v2575_v62  ;;  %v2756_v18 = vld [vmem:[#allocation14 + $0x8] sm:$0xff] (!%p3325_p9)  ;;  %v2579_v50 = vld [vmem:[#allocation13 + $0x40] sm:$0xff] (!%p3325_p9) }
 0x444   : > { %v4274_v61 = vpop.eup %4273  ;;  %v2462_v1 = vmul.f32 %v4272_v51, %v5774_v56  ;;  %v2531_v56 = vunpack.c.l.bf16 %v2517_v53  ;;  %v3754_v0 = vpack.c.bf16 (!%p3325_p9), %v2756_v18, %v2755_v63  ;;  %v3758_v43 = vpack.c.bf16 (!%p3325_p9), %v2758_v32, %v2757_v16  ;;  %v2760_v15 = vld [vmem:[#allocation14 + $0x28] sm:$0xff] (!%p3325_p9)  ;;  %v2582_v53 = vld [vmem:[#allocation13 + $0x58] sm:$0xff] (!%p3325_p9) }
 0x445   : > { %2504 = vst [vmem:[%s5845_s25 + $0x28] sm:$0xff] %v2491_v13  ;;  %v2556_v17 = vpack.c.bf16 %v5888_v3, %v5884_v26  ;;  %v2463_v22 = vmul.f32 %v4274_v61, %v5784_v19  ;;  %v3762_v51 = vpack.c.bf16 (!%p3325_p9), %v2760_v15, %v2759_v7  ;;  %v2761_v13 = vld [vmem:[#allocation14 + $0x30] sm:$0xff] (!%p3325_p9) }
 0x446   : > { %2478 = vst [vmem:[%s5333_s1 + $0x40] sm:$0xff] %v2462_v1  ;;  %v5897_v10 = vmax.f32 %v2527_v23, %v2462_v1  ;;  %3755 = vmatprep.subr.bf16.mxu1 (!%p3325_p9), %v3754_v0  ;;  %v2580_v23 = vld [vmem:[#allocation13 + $0x48] sm:$0xff] (!%p3325_p9) }
 0x447   : > { %v4276_v40 = vpop.eup %4275  ;;  %2564 = vst [vmem:[%s5821_s29 + $0x28] sm:$0xff] %v2556_v17  ;;  %2479 = vst [vmem:[%s5333_s1 + $0x48] sm:$0xff] %v2463_v22  ;;  %v2490_v30 = vpack.c.bf16 %v2463_v22, %v2462_v1  ;;  %v5901_v6 = vmax.f32 %v2528_v38, %v2463_v22  ;;  %3757 = vmatpush3.bf16.msra.mxu1 (!%p3325_p9), %v3754_v0  ;;  %v2762_v38 = vld [vmem:[#allocation14 + $0x38] sm:$0xff] (!%p3325_p9)  ;;  %v3738_v61 = vpack.c.bf16 (!%p3325_p9), %v2580_v23, %v2579_v50  ;;  %v2581_v1 = vld [vmem:[#allocation13 + $0x50] sm:$0xff] (!%p3325_p9) }
 0x448   : > { %v4278_v45 = vpop.eup %4277  ;;  %v2466_v24 = vmul.f32 %v4276_v40, %v5800_v58  ;;  %3759 = vmatprep.subr.bf16.mxu1 (!%p3325_p9), %v3758_v43  ;;  %v3766_v17 = vpack.c.bf16 (!%p3325_p9), %v2762_v38, %v2761_v13  ;;  %v2763_v22 = vld [vmem:[#allocation14 + $0x40] sm:$0xff] (!%p3325_p9)  ;;  %v2764_v40 = vld [vmem:[#allocation14 + $0x48] sm:$0xff] (!%p3325_p9) }
 0x449   : > { %2503 = vst [vmem:[%s5845_s25 + $0x20] sm:$0xff] %v2490_v30  ;;  %v2555_v19 = vpack.c.bf16 %v5901_v6, %v5897_v10  ;;  %v2467_v11 = vmul.f32 %v4278_v45, %v5810_v39  ;;  %v3742_v30 = vpack.c.bf16 (!%p3325_p9), %v2582_v53, %v2581_v1  ;;  %v3770_v4 = vpack.c.bf16 (!%p3325_p9), %v2764_v40, %v2763_v22  ;;  %v2765_v45 = vld [vmem:[#allocation14 + $0x50] sm:$0xff] (!%p3325_p9) }
 0x44a   : > { %2482 = vst [vmem:[%s5333_s1 + $0x60] sm:$0xff] %v2466_v24  ;;  %v5911_v28 = vmax.f32 %v2531_v56, %v2466_v24  ;;  %v2583_v56 = vld [vmem:[#allocation13 + $0x60] sm:$0xff] (!%p3325_p9) }
 0x44b   : > { %v4280_v21 = vpop.eup %4279  ;;  %2563 = vst [vmem:[%s5821_s29 + $0x20] sm:$0xff] %v2555_v19  ;;  %2483 = vst [vmem:[%s5333_s1 + $0x68] sm:$0xff] %v2467_v11  ;;  %v2492_v5 = vpack.c.bf16 %v2467_v11, %v2466_v24  ;;  %v5914_v58 = vmax.f32 %v2532_v52, %v2467_v11  ;;  %3761 = vmatpush3.bf16.msra.mxu1 (!%p3325_p9), %v3758_v43  ;;  %v2584_v52 = vld [vmem:[#allocation13 + $0x68] sm:$0xff] (!%p3325_p9)  ;;  %v2766_v24 = vld [vmem:[#allocation14 + $0x58] sm:$0xff] (!%p3325_p9) }
 0x44c   : > { %v4282_v12 = vpop.eup %4281  ;;  %v2468_v41 = vmul.f32 %v4280_v21, %v5795_v2  ;;  %v2571_v2 = vld [vmem:[#allocation13] sm:$0xff] (!%p3325_p9)  ;;  %3763 = vmatprep.subr.bf16.mxu1 (!%p3325_p9), %v3762_v51  ;;  %v3746_v19 = vpack.c.bf16 (!%p3325_p9), %v2584_v52, %v2583_v56  ;;  %v2585_v11 = vld [vmem:[#allocation13 + $0x70] sm:$0xff] (!%p3325_p9)  ;;  %v3774_v21 = vpack.c.bf16 (!%p3325_p9), %v2766_v24, %v2765_v45 }
 0x44d   : > { %2505 = vst [vmem:[%s5845_s25 + $0x30] sm:$0xff] %v2492_v5  ;;  %v2557_v39 = vpack.c.bf16 %v5914_v58, %v5911_v28  ;;  %v2469_v9 = vmul.f32 %v4282_v12, %v5806_v20  ;;  %2570 = sbr.rel (%p3325_p9) target bundleno = 1597 (0x63d), region = 104  ;;  %v3722_v20 = vpack.c.bf16 (!%p3325_p9), %v2572_v54, %v2571_v2  ;;  %v2767_v5 = vld [vmem:[#allocation14 + $0x60] sm:$0xff] (!%p3325_p9) }
 0x44e   : > { %2484 = vst [vmem:[%s5333_s1 + $0x70] sm:$0xff] %v2468_v41  ;;  %v5923_v46 = vmax.f32 %v2533_v27, %v2468_v41  ;;  %v2586_v27 = vld [vmem:[#allocation13 + $0x78] sm:$0xff] (!%p3325_p9)  ;;  %v3327_v52 = vld [vmem:[%s6186_s27] ss:$0 sm:$0xff] (!%p3325_p9) }
 0x44f   : > { %2565 = vst [vmem:[%s5821_s29 + $0x30] sm:$0xff] %v2557_v39  ;;  %2485 = vst [vmem:[%s5333_s1 + $0x78] sm:$0xff] %v2469_v9  ;;  %v2493_v34 = vpack.c.bf16 %v2469_v9, %v2468_v41  ;;  %v5926_v35 = vmax.f32 %v2534_v31, %v2469_v9  ;;  %3723 = vmatprep.subr.bf16.mxu0 (!%p3325_p9), %v3722_v20  ;;  %3765 = vmatpush3.bf16.msra.mxu1 (!%p3325_p9), %v3762_v51  ;;  %v2768_v31 = vld [vmem:[#allocation14 + $0x68] sm:$0xff] (!%p3325_p9)  ;;  %s6185_s1 = sld [smem:[#allocation49_spill]] (!%p3325_p9) }
 0x450   : > { %3725 = vmatpush3.bf16.msra.mxu0 (!%p3325_p9), %v3722_v20  ;;  %3767 = vmatprep.subr.bf16.mxu1 (!%p3325_p9), %v3766_v17  ;;  %v3750_v12 = vpack.c.bf16 (!%p3325_p9), %v2586_v27, %v2585_v11  ;;  %v3778_v41 = vpack.c.bf16 (!%p3325_p9), %v2768_v31, %v2767_v5 }
 0x451   : > { %2506 = vst [vmem:[%s5845_s25 + $0x38] sm:$0xff] %v2493_v34  ;;  %v2558_v44 = vpack.c.bf16 %v5926_v35, %v5923_v46  ;;  %3727 = vmatprep.subr.bf16.mxu0 (!%p3325_p9), %v3726_v14 }
 0x453   : > { %2566 = vst [vmem:[%s5821_s29 + $0x38] sm:$0xff] %v2558_v44  ;;  %3769 = vmatpush3.bf16.msra.mxu1 (!%p3325_p9), %v3766_v17 }
 0x454   : > { %3729 = vmatpush3.bf16.msra.mxu0 %v3726_v14  ;;  %3771 = vmatprep.subr.bf16.mxu1 %v3770_v4 }
 0x455   : > { %3731 = vmatprep.subr.bf16.mxu0 %v3730_v29 }
 0x457   : > { %3773 = vmatpush3.bf16.msra.mxu1 %v3770_v4 }
 0x458   : > { %3733 = vmatpush3.bf16.msra.mxu0 %v3730_v29  ;;  %3775 = vmatprep.subr.bf16.mxu1 %v3774_v21 }
 0x459   : > { %3735 = vmatprep.subr.bf16.mxu0 %v3734_v37 }
 0x45b   : > { %3777 = vmatpush3.bf16.msra.mxu1 %v3774_v21 }
 0x45c   : > { %3737 = vmatpush3.bf16.msra.mxu0 %v3734_v37  ;;  %3779 = vmatprep.subr.bf16.mxu1 %v3778_v41 }
 0x45d   : > { %3739 = vmatprep.subr.bf16.mxu0 %v3738_v61 }
 0x45f   : > { %3781 = vmatpush3.bf16.msra.mxu1 %v3778_v41 }
 0x460   : > { %3741 = vmatpush3.bf16.msra.mxu0 %v3738_v61 }
 0x461   : > { %3743 = vmatprep.subr.bf16.mxu0 %v3742_v30 }
 0x464   : > { %3745 = vmatpush3.bf16.msra.mxu0 %v3742_v30 }
 0x465   : > { %3747 = vmatprep.subr.bf16.mxu0 %v3746_v19 }
 0x468   : > { %3749 = vmatpush3.bf16.msra.mxu0 %v3746_v19 }
 0x469   : > { %3751 = vmatprep.subr.bf16.mxu0 %v3750_v12 }
 0x46c   : > { %3753 = vmatpush3.bf16.msra.mxu0 %v3750_v12 }
 0x46f   : > { %3643 = vmatmul.mubr.f32.vlgmr.msra.gmra.mrb[0].mxu0 %v5842_v8 }
 0x470   : > { %3645 = vmatprep.mubr.f32.mxu0 %v5834_v42  ;;  %v2769_v42 = vld [vmem:[#allocation14 + $0x70] sm:$0xff] }
 0x473   : > { %3646 = vmatmul.mubr.f32.gmra.mrb[2].mxu0 %v5837_v49  ;;  %v2770_v49 = vld [vmem:[#allocation14 + $0x78] sm:$0xff] }
 0x474   : > { %3648 = vmatprep.mubr.f32.mxu0 %v5871_v33  ;;  %v3782_v8 = vpack.c.bf16 %v2770_v49, %v2769_v42 }
 0x476   : > { %3783 = vmatprep.subr.bf16.mxu1 %v3782_v8 }
 0x477   : > { %3649 = vmatmul.mubr.f32.gmra.mrb[4].mxu0 %v5875_v48  ;;  %3785 = vmatpush3.bf16.msra.mxu1 %v3782_v8 }
 0x478   : > { %3651 = vmatprep.mubr.f32.mxu0 %v5859_v60  ;;  %v3326_v60 = vld [vmem:[%s6185_s1] ss:$0 sm:$0xff] }
 0x47b   : > { %3652 = vmatmul.mubr.f32.gmra.mrb[6].mxu0 %v5862_v25 }
 0x47c   : > { %3654 = vmatprep.mubr.f32.mxu0 %v5897_v10 }
 0x47f   : > { %3655 = vmatmul.mubr.f32.gmra.mrb[8].mxu0 %v5901_v6 }
 0x480   : > { %3657 = vmatprep.mubr.f32.mxu0 %v5884_v26 }
 0x483   : > { %3658 = vmatmul.mubr.f32.gmra.mrb[10].mxu0 %v5888_v3 }
 0x484   : > { %3660 = vmatprep.mubr.f32.mxu0 %v5911_v28 }
 0x487   : > { %3661 = vmatmul.mubr.f32.gmra.mrb[12].mxu0 %v5914_v58 }
 0x488   : > { %3663 = vmatprep.mubr.f32.mxu0 %v5923_v46 }
 0x48b   : > { %3664 = vmatmul.mubr.f32.gmra.mrb[14].mxu0 %v5926_v35 }
 0x542   : > { %v3644_v25 = vpop.f32.mrb[0].mxu0 }
 0x543   : > { %v2666_v33 = vadd.f32 %v3644_v25, %v3326_v60  ;;  %v2660_v48 = vpop.f32.mrb[1].mxu0 }
 0x544   : > { %v2661_v26 = vadd.f32 %v3326_v60, %v2660_v48 }
 0x545   : > { %v2740_v6 = vmax.f32 %v2666_v33, 0.0 }
 0x546   : > { %v3647_v3 = vpop.f32.mrb[2].mxu0  ;;  %v2739_v10 = vmax.f32 %v2661_v26, 0.0 }
 0x547   : > { %v2676_v28 = vadd.f32 %v3647_v3, %v3326_v60  ;;  %v2670_v58 = vpop.f32.mrb[3].mxu0 }
 0x548   : > { %v2671_v39 = vadd.f32 %v3326_v60, %v2670_v58  ;;  %3698 = vmatprep.mubr.f32.mxu1 %v2739_v10 }
 0x549   : > { %3699 = vmatmul.mubr.f32.vlgmr.msra.gmra.mrb[0].mxu1 %v2740_v6  ;;  %v2742_v34 = vmax.f32 %v2676_v28, 0.0 }
 0x54a   : > { %v2741_v9 = vmax.f32 %v2671_v39, 0.0  ;;  %v3650_v46 = vpop.f32.mrb[4].mxu0 }
 0x54b   : > { %v2686_v35 = vadd.f32 %v3650_v46, %v3326_v60  ;;  %v2680_v44 = vpop.f32.mrb[5].mxu0 }
 0x54c   : > { %v2681_v2 = vadd.f32 %v3326_v60, %v2680_v44  ;;  %3701 = vmatprep.mubr.f32.mxu1 %v2741_v9 }
 0x54d   : > { %3702 = vmatmul.mubr.f32.gmra.mrb[2].mxu1 %v2742_v34  ;;  %v2744_v20 = vmax.f32 %v2686_v35, 0.0 }
 0x54e   : > { %v2743_v54 = vmax.f32 %v2681_v2, 0.0  ;;  %v3653_v36 = vpop.f32.mrb[6].mxu0 }
 0x54f   : > { %v2696_v47 = vadd.f32 %v3653_v36, %v3326_v60  ;;  %v2690_v14 = vpop.f32.mrb[7].mxu0 }
 0x550   : > { %v2691_v62 = vadd.f32 %v3326_v60, %v2690_v14  ;;  %3704 = vmatprep.mubr.f32.mxu1 %v2743_v54 }
 0x551   : > { %3705 = vmatmul.mubr.f32.gmra.mrb[4].mxu1 %v2744_v20  ;;  %v2746_v57 = vmax.f32 %v2696_v47, 0.0 }
 0x552   : > { %v2745_v55 = vmax.f32 %v2691_v62, 0.0  ;;  %v3656_v29 = vpop.f32.mrb[8].mxu0 }
 0x553   : > { %v2706_v63 = vadd.f32 %v3656_v29, %v3326_v60  ;;  %v2700_v18 = vpop.f32.mrb[9].mxu0 }
 0x554   : > { %v2701_v59 = vadd.f32 %v3326_v60, %v2700_v18  ;;  %3707 = vmatprep.mubr.f32.mxu1 %v2745_v55 }
 0x555   : > { %3708 = vmatmul.mubr.f32.gmra.mrb[6].mxu1 %v2746_v57  ;;  %v2748_v32 = vmax.f32 %v2706_v63, 0.0 }
 0x556   : > { %v2747_v0 = vmax.f32 %v2701_v59, 0.0  ;;  %v3659_v16 = vpop.f32.mrb[10].mxu0 }
 0x557   : > { %v2716_v43 = vadd.f32 %v3659_v16, %v3326_v60  ;;  %v2710_v7 = vpop.f32.mrb[11].mxu0 }
 0x558   : > { %v2711_v15 = vadd.f32 %v3326_v60, %v2710_v7  ;;  %3710 = vmatprep.mubr.f32.mxu1 %v2747_v0 }
 0x559   : > { %3711 = vmatmul.mubr.f32.gmra.mrb[8].mxu1 %v2748_v32  ;;  %v2750_v23 = vmax.f32 %v2716_v43, 0.0 }
 0x55a   : > { %v2749_v37 = vmax.f32 %v2711_v15, 0.0  ;;  %v3662_v50 = vpop.f32.mrb[12].mxu0 }
 0x55b   : > { %v2726_v51 = vadd.f32 %v3662_v50, %v3326_v60  ;;  %v2720_v13 = vpop.f32.mrb[13].mxu0 }
 0x55c   : > { %v2721_v38 = vadd.f32 %v3326_v60, %v2720_v13  ;;  %3713 = vmatprep.mubr.f32.mxu1 %v2749_v37 }
 0x55d   : > { %3714 = vmatmul.mubr.f32.gmra.mrb[10].mxu1 %v2750_v23  ;;  %v2752_v53 = vmax.f32 %v2726_v51, 0.0 }
 0x55e   : > { %v2751_v61 = vmax.f32 %v2721_v38, 0.0  ;;  %v3665_v1 = vpop.f32.mrb[14].mxu0 }
 0x55f   : > { %v2736_v17 = vadd.f32 %v3665_v1, %v3326_v60  ;;  %v2730_v22 = vpop.f32.mrb[15].mxu0 }
 0x560   : > { %v2731_v40 = vadd.f32 %v3326_v60, %v2730_v22  ;;  %3716 = vmatprep.mubr.f32.mxu1 %v2751_v61 }
 0x561   : > { %3717 = vmatmul.mubr.f32.gmra.mrb[12].mxu1 %v2752_v53  ;;  %v2754_v56 = vmax.f32 %v2736_v17, 0.0 }
 0x562   : > { %v2753_v30 = vmax.f32 %v2731_v40, 0.0 }
 0x564   : > { %3719 = vmatprep.mubr.f32.mxu1 %v2753_v30 }
 0x565   : > { %3720 = vmatmul.mubr.f32.gmra.mrb[14].mxu1 %v2754_v56 }
 0x61c   : > { %v3700_v4 = vpop.f32.mrb[0].mxu1 }
 0x61d   : > { %v2850_v45 = vadd.f32 %v3700_v4, %v3327_v52  ;;  %v2844_v24 = vpop.f32.mrb[1].mxu1 }
 0x61e   : > { %v2845_v19 = vadd.f32 %v3327_v52, %v2844_v24 }
 0x61f   : > { %2924 = vst [vmem:[%s5101_s12 + $0x8] sm:$0xff] %v2850_v45 }
 0x620   : > { %2923 = vst [vmem:[%s5101_s12] sm:$0xff] %v2845_v19  ;;  %v3703_v11 = vpop.f32.mrb[2].mxu1 }
 0x621   : > { %v2860_v27 = vadd.f32 %v3703_v11, %v3327_v52  ;;  %v2854_v21 = vpop.f32.mrb[3].mxu1 }
 0x622   : > { %v2855_v5 = vadd.f32 %v3327_v52, %v2854_v21 }
 0x623   : > { %2926 = vst [vmem:[%s5101_s12 + $0x18] sm:$0xff] %v2860_v27 }
 0x624   : > { %2925 = vst [vmem:[%s5101_s12 + $0x10] sm:$0xff] %v2855_v5  ;;  %v3706_v31 = vpop.f32.mrb[4].mxu1 }
 0x625   : > { %v2870_v12 = vadd.f32 %v3706_v31, %v3327_v52  ;;  %v2864_v41 = vpop.f32.mrb[5].mxu1 }
 0x626   : > { %v2865_v42 = vadd.f32 %v3327_v52, %v2864_v41 }
 0x627   : > { %2928 = vst [vmem:[%s5101_s12 + $0x28] sm:$0xff] %v2870_v12 }
 0x628   : > { %2927 = vst [vmem:[%s5101_s12 + $0x20] sm:$0xff] %v2865_v42  ;;  %v3709_v49 = vpop.f32.mrb[6].mxu1 }
 0x629   : > { %v2880_v8 = vadd.f32 %v3709_v49, %v3327_v52  ;;  %v2874_v60 = vpop.f32.mrb[7].mxu1 }
 0x62a   : > { %v2875_v25 = vadd.f32 %v3327_v52, %v2874_v60 }
 0x62b   : > { %2930 = vst [vmem:[%s5101_s12 + $0x38] sm:$0xff] %v2880_v8 }
 0x62c   : > { %2929 = vst [vmem:[%s5101_s12 + $0x30] sm:$0xff] %v2875_v25  ;;  %v3712_v33 = vpop.f32.mrb[8].mxu1 }
 0x62d   : > { %v2890_v48 = vadd.f32 %v3712_v33, %v3327_v52  ;;  %v2884_v26 = vpop.f32.mrb[9].mxu1 }
 0x62e   : > { %v2885_v3 = vadd.f32 %v3327_v52, %v2884_v26 }
 0x62f   : > { %2932 = vst [vmem:[%s5101_s12 + $0x48] sm:$0xff] %v2890_v48 }
 0x630   : > { %2931 = vst [vmem:[%s5101_s12 + $0x40] sm:$0xff] %v2885_v3  ;;  %v3715_v10 = vpop.f32.mrb[10].mxu1 }
 0x631   : > { %v2900_v6 = vadd.f32 %v3715_v10, %v3327_v52  ;;  %v2894_v28 = vpop.f32.mrb[11].mxu1 }
 0x632   : > { %v2895_v58 = vadd.f32 %v3327_v52, %v2894_v28 }
 0x633   : > { %2934 = vst [vmem:[%s5101_s12 + $0x58] sm:$0xff] %v2900_v6 }
 0x634   : > { %2933 = vst [vmem:[%s5101_s12 + $0x50] sm:$0xff] %v2895_v58  ;;  %v3718_v39 = vpop.f32.mrb[12].mxu1 }
 0x635   : > { %v2910_v9 = vadd.f32 %v3718_v39, %v3327_v52  ;;  %v2904_v46 = vpop.f32.mrb[13].mxu1 }
 0x636   : > { %v2905_v34 = vadd.f32 %v3327_v52, %v2904_v46 }
 0x637   : > { %2936 = vst [vmem:[%s5101_s12 + $0x68] sm:$0xff] %v2910_v9 }
 0x638   : > { %2935 = vst [vmem:[%s5101_s12 + $0x60] sm:$0xff] %v2905_v34  ;;  %v3721_v35 = vpop.f32.mrb[14].mxu1 }
 0x639   : > { %v2920_v44 = vadd.f32 %v3721_v35, %v3327_v52  ;;  %v2914_v2 = vpop.f32.mrb[15].mxu1 }
 0x63a   : > { %v2915_v54 = vadd.f32 %v3327_v52, %v2914_v2 }
 0x63b   : > { %2938 = vst [vmem:[%s5101_s12 + $0x78] sm:$0xff] %v2920_v44 }
 0x63c   : > { %2937 = vst [vmem:[%s5101_s12 + $0x70] sm:$0xff] %v2915_v54 }
 0x63d PF: > { %s6187_s19 = sld [smem:[#allocation28_spill]]  ;;  %s6188_s21 = sld [smem:[#allocation27_spill]] }
 0x63e   : > { %s6190_s22 = sld [smem:[#allocation32_spill]]  ;;  %s2955_s5 = sshll.u32 %s5101_s12, 4  ;;  %s5974_s5 = int_to_ptr.vmem [resolvable:$true] %s2955_s5 }
 0x63f   : > { %s6191_s7 = sld [smem:[#allocation51_spill]]  ;;  %s5983_s14 = scalar_lea.sflag [#allocation7], %s610_s24 }
 0x640   : > { %s4488_s9 = scalar_lea.vmem %s5974_s5, 2048  ;;  %s4641_s12 = smov [#allocation16]  }
 0x641   : > { %p4489_p10 = scmp.ne.s32.totalorder %s5974_s5, %s4488_s9  ;;  %s4492_s0 = sshll.u32 %s4641_s12, 4  ;;  %s4493_s0 = int_to_ptr.vmem [resolvable:$false] %s4492_s0 }
 0x642   : > { %s4494_s17 = scalar_lea.vmem %s4493_s0, 4096  ;;  %p4495_p1 = scmp.lt.s32.totalorder %s5974_s5, %s4493_s0 }
 0x643   : > { %p2947_p11 = scmp.eq.s32.totalorder %s6187_s19, 4  ;;  %p4496_p0 = scmp.lt.s32.totalorder %s4494_s17, %s4488_s9 }
 0x644   : > { %p6192_p7 = scmp.ne.s32.totalorder %s6190_s22, 0 }
 0x645   : > { %s6225_s21 = smov (!%p2947_p11, %s6188_s21), 0  ;;  %p4497_p8 = por %p4496_p0, %p4495_p1 }
 0x646   : > { %s3337_s28 = sshll.u32 %s6225_s21, 11  ;;  %p4490_p4 = pnand %p4489_p10, %p6192_p7 }
 0x647   : > { %s5979_s18 = scalar_lea.hbm %s6191_s7, %s3337_s28 }
 0x648   : > { %p4491_p5 = pneg %p4490_p4 }
 0x64a   : > { %p4498_p6 = pnand %p4497_p8, %p4491_p5 }
 0x64c   : > { %4501 = shalt.err (!%p4498_p6)
}
 0x64d   : > { %s4502_s24 = scalar_lea.hbm %s5979_s18, 2048  ;;  %s4506_s25 = scalar_lea.hbm %s6191_s7, 6144 }
 0x64e   : > { %p4503_p2 = scmp.ne.s32.totalorder %s5979_s18, %s4502_s24  ;;  %p4507_p13 = scmp.lt.u32.totalorder %s5979_s18, %s6191_s7 }
 0x64f   : > { %p4508_p9 = scmp.lt.u32.totalorder %s4506_s25, %s4502_s24  ;;  %p4510_p10 = scmp.lt.u32.totalorder %s4502_s24, %s5979_s18 }
 0x650   : > { %p4504_p12 = pnand %p4503_p2, %p6192_p7 }
 0x651   : > { %p4509_p11 = por %p4508_p9, %p4507_p13 }
 0x652   : > { %p4505_p3 = pneg %p4504_p12 }
 0x653   : > { %p4511_p4 = por %p4510_p10, %p4509_p11 }
 0x655   : > { %p4512_p5 = pnand %p4511_p4, %p4505_p3 }
 0x657   : > { %4515 = shalt.err (!%p4512_p5)
}
 0x658   : > { %s4642_s1 = smov 128   ;;  %s4643_s16 = smov 8  }
 0x659   : > { %3808 = dma.vmem_to_hbm [thread:$0]  (%p6192_p7), %s5974_s5, 2048, %s5979_s18, %s5983_s14, %s4642_s1, %s4642_s1, %s4643_s16  }
 0x65a PF: > { %s6193_s3 = sld [smem:[#allocation23_spill]]  ;;  %s6194_s27 = sld [smem:[#allocation33_spill]] }
 0x65b   : > { %p3846_p1 = scmp.ge.s32.totalorder %s4626_s13, 2 }
 0x660   : > { %s2970_s19 = sand.u32 1, %s6193_s3   ;;  %p6195_p0 = scmp.ne.s32.totalorder %s6194_s27, 0 }
 0x661   : > { %s2971_s21 = scalar_lea.sflag [#allocation7], %s2970_s19 }
 0x662   : > { %p3834_p8 = pnand %p3846_p1, %p6195_p0 }
 0x664   : > { %4581 = dma.done.wait (!%p3834_p8), %s2971_s21, 2048  }
 0x665   : > { %4583 = vsyncadd (!%p3834_p8), %s2971_s21, 4294965248  ;;  %s28_s13 = sadd.s32 1, %s4626_s13   ;;  %s6196_s21 = sld [smem:[#allocation24_spill]] }
 0x666   : > { %p25_p6 = scmp.ge.s32.totalorder %s28_s13, 17   ;;  %s6197_s20 = sld [smem:[#allocation37_spill]] }
 0x667   : > { %s6198_s24 = sld [smem:[#allocation25_spill]]  ;;  %s6199_s25 = sld [smem:[#allocation26_spill]] }
 0x668   : > { %s6200_s26 = sld [smem:[#allocation36_spill]]  ;;  %s6201_s27 = sld [smem:[#allocation29_spill]] }
 0x669   : > { %s6202_s29 = sld [smem:[#allocation34_spill]]  ;;  %s6203_s5 = sld [smem:[#allocation35_spill]] }
 0x66a   : > { %s6204_s22 = smov %s4594_s23  ;;  %s6206_s28 = smov %s4622_s30 }
 0x66b   :  { %27 = sbr.rel (!%p25_p6) target bundleno = 21 (0x15), region = 172 }
 0x66c   : > { %s6205_s23 = smov %s6197_s20 }
 0x66f   : > { %s6207_s30 = smov %s6203_s5 }
 0x672   :  { %2976 = vsyncpa [#allocation6], 1 }
 0x673   :  { %2978 = vsyncpa [#allocation6 + $0x1], 1 }
 0x674   :  { %2979 = vsyncpa [#allocation9], 1 }
 0x675   :  { %2980 = vsyncpa [#allocation15], 1 }
 0x676   :  { %2981 = vsyncpa [#allocation7], 1 }
 0x677   :  { %2983 = vsyncpa [#allocation7 + $0x1], 1 }

</bundles_post_ra>
